<compile_context>
chip_gen: v7x
topology: tpu7x:2x2x1
jax: 0.10.0
libtpu: 0.0.40
codegen_flags: <defaults>
</compile_context>

<pallas_src>
import functools
import math

import jax
import jax.numpy as jnp
from jax.experimental import pallas as pl
from jax.experimental.pallas import tpu as pltpu

SQRT_HALF = math.sqrt(0.5)
BN_EPS = 1e-5
LANE = 128
GLU_PACK = 128      # packed GLU output width (lane dense)
GLU_HALF = 64       # gate half sits GLU_HALF lanes above the lin half


def _num_tensorcores() -> int:
    """2 TensorCores per chip on v7x, 1 on v5e/v6e (best effort detection)."""
    try:
        kind = jax.devices()[0].device_kind.lower()
    except Exception:
        return 1
    return 2 if "v7" in kind else 1


def tabnet_kernel(
    x_ref,            # [rows, D]          raw (pre-BN) features, rows = G*vb
    bn_scale_ref,     # [1, D]             input-BN affine (full-batch stats, folded)
    bn_shift_ref,     # [1, D]
    sh_w0_ref,        # [D, 128]           shared GLU layer 0 (lin@[0:H], gate@[64:64+H])
    sh_w1_ref,        # [128, 128]         shared GLU layer 1 (rows [H:128] zero)
    dep_w0_ref,       # [L+1, 128, 128]    dependent GLU layer 0, per feat transformer
    dep_w1_ref,       # [L+1, 128, 128]    dependent GLU layer 1
    attn_w_ref,       # [L, 128, D]        only rows [F:F+A] non-zero
    attn_bn_w_ref,    # [L, 1, D]
    attn_bn_b_ref,    # [L, 1, D]
    lin_w_ref,        # [128, OP]          only rows [0:F] non-zero; OP lane dense
    lin_b_ref,        # [1, OP]
    out_ref,          # [rows, OP]
    *,
    num_layers: int,
    gamma: float,
    num_ghost: int,   # ghost batches handled by this grid step
    ghost_rows: int,  # virtual batch size (rows per ghost batch)
):
    f32 = jnp.float32
    rows = num_ghost * ghost_rows

    def glu(h, w):
        # Single fused Linear(in, 2H, bias=False) + GLU.  The packed weight
        # puts lin at lanes [0:H] and gate at lanes [64:64+H]; a half-vreg
        # lane rotation aligns gate under lin (sign of the shift is irrelevant
        # for a rotation by exactly half the 128-lane width).  Lanes outside
        # [0:H] carry zeros / junk that every consumer kills with zero weight
        # rows, so no lane slicing is ever needed.
        y = jnp.dot(h.astype(w.dtype), w, preferred_element_type=f32)
        g = pltpu.roll(y, GLU_HALF, axis=1)
        return y * jax.nn.sigmoid(g)

    def feat_transformer(h, t):
        # shared GLU block (no_first_residual=True, 2 layers, shared weights)
        h = glu(h, sh_w0_ref[...])
        h = h * SQRT_HALF + glu(h, sh_w1_ref[...])
        # dependent GLU block (2 layers, with residual), per-transformer weights
        h = h * SQRT_HALF + glu(h, dep_w0_ref[t])
        h = h * SQRT_HALF + glu(h, dep_w1_ref[t])
        return h

    # Input BatchNorm1d: full-batch training stats folded to scale/shift.
    x = x_ref[...] * bn_scale_ref[...] + bn_shift_ref[...]

    prior = jnp.ones_like(x)
    out = feat_transformer(x, 0)           # [rows, 128]; attn half via padded attn_w
    acc = jnp.zeros_like(out)

    for i in range(num_layers):             # static unroll (L == 3)
        attn_w = attn_w_ref[i]
        # AttentiveTransformer linear; only rows [F:F+A] of attn_w are non-zero,
        # so this equals out[:, F:F+A] @ W with no lane slice.
        a = jnp.dot(out.astype(attn_w.dtype), attn_w, preferred_element_type=f32)

        # GhostBatchNorm1d: per-virtual-batch stats (two-pass variance).
        a3 = a.reshape(num_ghost, ghost_rows, a.shape[-1])
        mean = jnp.mean(a3, axis=1, keepdims=True)
        cen = a3 - mean
        var = jnp.mean(cen * cen, axis=1, keepdims=True)
        scale = attn_bn_w_ref[i] * jax.lax.rsqrt(var + BN_EPS)
        shift = attn_bn_b_ref[i] - mean * scale
        a = (a3 * scale + shift).reshape(rows, a.shape[-1])

        # softmax(prior * a) with max subtraction; approx reciprocal -> EUP slot
        a = prior * a
        a = a - jnp.max(a, axis=-1, keepdims=True)
        e = jnp.exp(a)
        mask = e * pl.reciprocal(jnp.sum(e, axis=-1, keepdims=True), approx=True)

        out = feat_transformer(mask * x, i + 1)
        # relu over the full packed width; only rows [0:F] of lin_w are
        # non-zero, so junk lanes never reach the output.
        acc = acc + jnp.maximum(out, 0.0)
        prior = (gamma - mask) * prior

    lin_w = lin_w_ref[...]
    out_ref[...] = (
        jnp.dot(acc.astype(lin_w.dtype), lin_w, preferred_element_type=f32)
        + lin_b_ref[...]
    )


def tabnet_forward(
    x_flat,
    params,
    *,
    num_layers,
    split_feat,
    split_attn,
    gamma,
    virtual_batch_size=512,
    matmul_dtype=jnp.bfloat16,
):
    batch, in_ch = x_flat.shape
    hidden = split_feat + split_attn
    out_channels = params["lin_w"].shape[1]
    out_pad = max(LANE, ((out_channels + LANE - 1) // LANE) * LANE)
    f32 = jnp.float32

    assert hidden <= GLU_HALF and GLU_HALF + hidden <= GLU_PACK, (
        "packed single-dot GLU layout requires hidden <= 64")

    # GhostBatchNorm chunking (AttentiveTransformer BNs).  torch.chunk yields
    # equal chunks when batch % num_chunks == 0; that case maps to the kernel.
    num_chunks = max(1, math.ceil(batch / virtual_batch_size))
    # TODO(synk): ragged torch.chunk ghost-batch splits (batch % num_chunks != 0)
    # are not supported by the equal-sized in-kernel reshape.
    assert batch % num_chunks == 0, "batch must split into equal ghost batches"
    vb = batch // num_chunks

    # Grid steps: one fat step (all ghost batches) on single-TC chips; two
    # "parallel" steps on v7x so both TensorCores get work.
    n_tc = _num_tensorcores()
    num_steps = n_tc if (n_tc > 1 and num_chunks % n_tc == 0) else 1
    rows = batch // num_steps
    if rows % 8 != 0:          # keep the sublane dim of the x/out blocks aligned
        num_steps, rows = 1, batch
    chunks_per_step = num_chunks // num_steps

    x_flat = x_flat.astype(f32)

    # Input BatchNorm1d (plain BN: full-batch training stats, biased variance,
    # two-pass) folded into a single scale/shift pair -> one FMA in the kernel.
    mean = jnp.mean(x_flat, axis=0, keepdims=True)
    cen = x_flat - mean
    var = jnp.mean(cen * cen, axis=0, keepdims=True)
    bn_scale = params["bn_w"] * jax.lax.rsqrt(var + BN_EPS)
    bn_shift = params["bn_b"] - mean * bn_scale

    def pack_glu(w, in_rows):
        # [..., fan_in, 2H] -> [..., in_rows, 128]: lin half at cols [0:H],
        # gate half at cols [64:64+H]; rows beyond fan_in (and all other cols)
        # are zero so junk lanes of the previous layer contribute nothing.
        fan_in = w.shape[-2]
        packed = jnp.zeros(w.shape[:-2] + (in_rows, GLU_PACK), f32)
        packed = packed.at[..., :fan_in, :hidden].set(w[..., :hidden])
        packed = packed.at[..., :fan_in, GLU_HALF:GLU_HALF + hidden].set(w[..., hidden:])
        return packed.astype(matmul_dtype)

    sh_w0 = pack_glu(params["sh_w0"], in_ch)
    sh_w1 = pack_glu(params["sh_w1"], GLU_PACK)
    dep_w0 = pack_glu(params["dep_w0"], GLU_PACK)
    dep_w1 = pack_glu(params["dep_w1"], GLU_PACK)

    # Attention linear consumes the full packed hidden vector: only the attn
    # rows [F:F+A] are non-zero, so the kernel never slices out[:, F:].
    attn_w = (
        jnp.zeros((num_layers, GLU_PACK, in_ch), f32)
        .at[:, split_feat:split_feat + split_attn, :]
        .set(params["attn_w"])
        .astype(matmul_dtype)
    )

    # Final linear: only the feature rows [0:F] are non-zero; columns padded
    # to a lane-dense multiple of 128 (unmasked stores).
    lin_w = (
        jnp.zeros((GLU_PACK, out_pad), f32)
        .at[:split_feat, :out_channels]
        .set(params["lin_w"])
        .astype(matmul_dtype)
    )
    lin_b = jnp.zeros((1, out_pad), f32).at[:, :out_channels].set(params["lin_b"])

    args = (
        x_flat, bn_scale, bn_shift,
        sh_w0, sh_w1, dep_w0, dep_w1,
        attn_w, params["attn_bn_w"].astype(f32), params["attn_bn_b"].astype(f32),
        lin_w, lin_b,
    )

    def whole(a):
        # Grid-invariant weight block (constant index map -> fetched once).
        # TODO(synk): at production H/L, single-buffer these
        # (pipeline_mode=pl.Buffered(1) or a persistent VMEM scratch) to halve
        # resident weight VMEM; irrelevant at these toy sizes.
        return pl.BlockSpec(a.shape, lambda i, nd=a.ndim: (0,) * nd)

    in_specs = ([pl.BlockSpec((rows, in_ch), lambda i: (i, 0))]
                + [whole(a) for a in args[1:]])
    out_specs = pl.BlockSpec((rows, out_pad), lambda i: (i, 0))

    kernel = functools.partial(
        tabnet_kernel,
        num_layers=num_layers, gamma=gamma,
        num_ghost=chunks_per_step, ghost_rows=vb,
    )

    out_padded = pl.pallas_call(
        kernel,
        grid=(num_steps,),
        out_shape=jax.ShapeDtypeStruct((batch, out_pad), f32),
        in_specs=in_specs,
        out_specs=out_specs,
        compiler_params=pltpu.CompilerParams(
            dimension_semantics=("parallel",),       # ghost-batch groups -> v7x TCs
            vmem_limit_bytes=32 * 1024 * 1024,       # actual budget < 2 MiB here
        ),
    )(*args)
    return out_padded[:, :out_channels]


# ---------------------------------------------------------------------------
# Pure-JAX reference (mirrors the PyTorch forward, incl. GhostBatchNorm).
# ---------------------------------------------------------------------------
def tabnet_reference(x_flat, params, *, num_layers, split_feat, split_attn, gamma,
                     virtual_batch_size=512):
    hidden = split_feat + split_attn
    batch = x_flat.shape[0]
    num_chunks = max(1, math.ceil(batch / virtual_batch_size))

    def bn(x, w, b):
        m = jnp.mean(x, axis=0, keepdims=True)
        v = jnp.mean((x - m) ** 2, axis=0, keepdims=True)
        return (x - m) / jnp.sqrt(v + BN_EPS) * w + b

    def ghost_bn(x, w, b):
        chunks = jnp.array_split(x, num_chunks, axis=0)
        return jnp.concatenate([bn(c, w, b) for c in chunks], axis=0)

    def glu(h, w):
        y = h @ w
        return y[:, :hidden] * jax.nn.sigmoid(y[:, hidden:])

    def feat_tf(h, t):
        h = glu(h, params["sh_w0"])
        h = h * SQRT_HALF + glu(h, params["sh_w1"])
        h = h * SQRT_HALF + glu(h, params["dep_w0"][t])
        h = h * SQRT_HALF + glu(h, params["dep_w1"][t])
        return h

    x = bn(x_flat, params["bn_w"], params["bn_b"])       # plain BN (full batch)
    prior = jnp.ones_like(x)
    attention_x = feat_tf(x, 0)[:, split_feat:]
    acc = jnp.zeros((batch, split_feat), jnp.float32)
    for i in range(num_layers):
        a = ghost_bn(attention_x @ params["attn_w"][i],
                     params["attn_bn_w"][i], params["attn_bn_b"][i])
        mask = jax.nn.softmax(prior * a, axis=-1)
        out = feat_tf(mask * x, i + 1)
        acc = acc + jax.nn.relu(out[:, :split_feat])
        attention_x = out[:, split_feat:]
        prior = (gamma - mask) * prior
    return acc @ params["lin_w"] + params["lin_b"]


def make_params(key, *, in_channels, split_feat, split_attn, num_layers, out_channels):
    hidden = split_feat + split_attn
    keys = jax.random.split(key, 8)

    def linear_init(k, fan_in, shape):
        # Mimic PyTorch Linear reset_parameters: U(-1/sqrt(fan_in), 1/sqrt(fan_in)).
        bound = 1.0 / math.sqrt(fan_in)
        return jax.random.uniform(k, shape, jnp.float32, -bound, bound)

    return {
        # BatchNorm1d.reset_parameters(): weight=1, bias=0
        "bn_w": jnp.ones((1, in_channels), jnp.float32),
        "bn_b": jnp.zeros((1, in_channels), jnp.float32),
        "sh_w0": linear_init(keys[0], in_channels, (in_channels, 2 * hidden)),
        "sh_w1": linear_init(keys[1], hidden, (hidden, 2 * hidden)),
        "dep_w0": linear_init(keys[2], hidden, (num_layers + 1, hidden, 2 * hidden)),
        "dep_w1": linear_init(keys[3], hidden, (num_layers + 1, hidden, 2 * hidden)),
        "attn_w": linear_init(keys[4], split_attn, (num_layers, split_attn, in_channels)),
        "attn_bn_w": jnp.ones((num_layers, 1, in_channels), jnp.float32),
        "attn_bn_b": jnp.zeros((num_layers, 1, in_channels), jnp.float32),
        "lin_w": linear_init(keys[5], split_feat, (split_feat, out_channels)),
        "lin_b": linear_init(keys[6], split_feat, (1, out_channels)),
    }


if __name__ == "__main__":
    # Model hyperparameters (small, consistent with the PyTorch module).
    num_cols = 8
    cat_emb_channels = 2
    in_channels = cat_emb_channels * num_cols        # 16
    split_feat_channels = 16
    split_attn_channels = 16
    num_layers = 3
    out_channels = 8
    gamma = 1.3

    key = jax.random.PRNGKey(0)
    kx1, kx2, kp = jax.random.split(key, 3)

    # TODO(synk): StypeWiseFeatureEncoder (torch_frame stype encoders) has no
    # Pallas equivalent; we start from its output, the encoded feature tensor
    # of shape [batch, num_cols, cat_emb_channels].
    params = make_params(
        kp,
        in_channels=in_channels,
        split_feat=split_feat_channels,
        split_attn=split_attn_channels,
        num_layers=num_layers,
        out_channels=out_channels,
    )

    # (batch, virtual_batch_size, key): second case exercises multiple ghost
    # batches per grid step (G=4 or 2x2 on v7x) and the per-virtual-batch
    # GhostBatchNorm statistics computed inside the kernel.
    cases = [(64, 512, kx1), (128, 32, kx2)]
    for batch, vbs, kx in cases:
        x_enc = jax.random.normal(kx, (batch, num_cols, cat_emb_channels), jnp.float32)
        x_flat = x_enc.reshape(batch, in_channels)    # x.view(B, prod(rest))

        out = tabnet_forward(
            x_flat, params,
            num_layers=num_layers,
            split_feat=split_feat_channels,
            split_attn=split_attn_channels,
            gamma=gamma,
            virtual_batch_size=vbs,
        )
        out = jax.block_until_ready(out)

        ref = tabnet_reference(
            x_flat, params,
            num_layers=num_layers,
            split_feat=split_feat_channels,
            split_attn=split_attn_channels,
            gamma=gamma,
            virtual_batch_size=vbs,
        )

        assert out.shape == (batch, out_channels)
        assert bool(jnp.all(jnp.isfinite(out)))
        # Tolerance accounts for bf16 MXU operands (f32 accumulate) vs f32 reference.
        err = float(jnp.max(jnp.abs(out - ref)))
        assert bool(jnp.allclose(out, ref, rtol=3e-2, atol=3e-2)), f"max abs err {err}"

    print("KERNEL_OK")
</pallas_src>

<mosaic_0001>
module attributes {stable_mosaic.version = 11 : i64} {
  func.func @tabnet_kernel(%arg0: i32, %arg1: memref<64x16xf32, #tpu.memory_space<vmem>>, %arg2: memref<1x16xf32, #tpu.memory_space<vmem>>, %arg3: memref<1x16xf32, #tpu.memory_space<vmem>>, %arg4: memref<16x128xbf16, #tpu.memory_space<vmem>>, %arg5: memref<128x128xbf16, #tpu.memory_space<vmem>>, %arg6: memref<4x128x128xbf16, #tpu.memory_space<vmem>>, %arg7: memref<4x128x128xbf16, #tpu.memory_space<vmem>>, %arg8: memref<3x128x16xbf16, #tpu.memory_space<vmem>>, %arg9: memref<3x1x16xf32, #tpu.memory_space<vmem>>, %arg10: memref<3x1x16xf32, #tpu.memory_space<vmem>>, %arg11: memref<128x128xbf16, #tpu.memory_space<vmem>>, %arg12: memref<1x128xf32, #tpu.memory_space<vmem>>, %arg13: memref<64x128xf32, #tpu.memory_space<vmem>>) attributes {dimension_semantics = [#tpu.dimension_semantics<parallel>], iteration_bounds = array<i64: 1>, scalar_prefetch = 0 : i64, scratch_operands = 0 : i64, tpu.core_type = #tpu.core_type<tc>, window_params = [{transform_indices = @transform_0, window_bounds = array<i64: 64, 16>}, {pipeline_mode = #tpu.pipeline_mode<synchronous>, transform_indices = @transform_1, window_bounds = array<i64: 1, 16>}, {pipeline_mode = #tpu.pipeline_mode<synchronous>, transform_indices = @transform_2, window_bounds = array<i64: 1, 16>}, {pipeline_mode = #tpu.pipeline_mode<synchronous>, transform_indices = @transform_3, window_bounds = array<i64: 16, 128>}, {pipeline_mode = #tpu.pipeline_mode<synchronous>, transform_indices = @transform_4, window_bounds = array<i64: 128, 128>}, {pipeline_mode = #tpu.pipeline_mode<synchronous>, transform_indices = @transform_5, window_bounds = array<i64: 4, 128, 128>}, {pipeline_mode = #tpu.pipeline_mode<synchronous>, transform_indices = @transform_6, window_bounds = array<i64: 4, 128, 128>}, {pipeline_mode = #tpu.pipeline_mode<synchronous>, transform_indices = @transform_7, window_bounds = array<i64: 3, 128, 16>}, {pipeline_mode = #tpu.pipeline_mode<synchronous>, transform_indices = @transform_8, window_bounds = array<i64: 3, 1, 16>}, {pipeline_mode = #tpu.pipeline_mode<synchronous>, transform_indices = @transform_9, window_bounds = array<i64: 3, 1, 16>}, {pipeline_mode = #tpu.pipeline_mode<synchronous>, transform_indices = @transform_10, window_bounds = array<i64: 128, 128>}, {pipeline_mode = #tpu.pipeline_mode<synchronous>, transform_indices = @transform_11, window_bounds = array<i64: 1, 128>}, {transform_indices = @transform_12, window_bounds = array<i64: 64, 128>}]} {
    %c0 = arith.constant 0 : index
    %c0_0 = arith.constant 0 : index
    %0 = vector.load %arg1[%c0, %c0_0] : memref<64x16xf32, #tpu.memory_space<vmem>>, vector<64x16xf32>
    %c0_1 = arith.constant 0 : index
    %c0_2 = arith.constant 0 : index
    %1 = vector.load %arg2[%c0_1, %c0_2] : memref<1x16xf32, #tpu.memory_space<vmem>>, vector<1x16xf32>
    %2 = vector.broadcast %1 : vector<1x16xf32> to vector<64x16xf32>
    %3 = arith.mulf %0, %2 : vector<64x16xf32>
    %c0_3 = arith.constant 0 : index
    %c0_4 = arith.constant 0 : index
    %4 = vector.load %arg3[%c0_3, %c0_4] : memref<1x16xf32, #tpu.memory_space<vmem>>, vector<1x16xf32>
    %5 = vector.broadcast %4 : vector<1x16xf32> to vector<64x16xf32>
    %6 = arith.addf %3, %5 : vector<64x16xf32>
    %cst = arith.constant 1.000000e+00 : f32
    %7 = vector.broadcast %cst : f32 to vector<64x16xf32>
    %c0_5 = arith.constant 0 : index
    %c0_6 = arith.constant 0 : index
    %8 = vector.load %arg4[%c0_5, %c0_6] : memref<16x128xbf16, #tpu.memory_space<vmem>>, vector<16x128xbf16>
    %9 = arith.truncf %6 : vector<64x16xf32> to vector<64x16xbf16>
    %cst_7 = arith.constant dense<0.000000e+00> : vector<64x128xf32>
    %10 = tpu.matmul %9, %8, %cst_7 {dimension_numbers = #tpu.dot_dimension_numbers<[1], [0], [0], [1], [0, 0, 1, 1], [], []>} : vector<64x16xbf16>, vector<16x128xbf16>, vector<64x128xf32> -> vector<64x128xf32>
    %c64_i32 = arith.constant 64 : i32
    %11 = tpu.dynamic_rotate %10 by %c64_i32 dim 1 : vector<64x128xf32>, i32 -> vector<64x128xf32>
    %12 = arith.negf %11 : vector<64x128xf32>
    %13 = math.exp %12 : vector<64x128xf32>
    %cst_8 = arith.constant 1.000000e+00 : f32
    %14 = vector.broadcast %cst_8 : f32 to vector<64x128xf32>
    %15 = arith.addf %14, %13 : vector<64x128xf32>
    %16 = arith.divf %14, %15 : vector<64x128xf32>
    %17 = arith.mulf %10, %16 : vector<64x128xf32>
    %cst_9 = arith.constant 0.707106769 : f32
    %18 = vector.broadcast %cst_9 : f32 to vector<64x128xf32>
    %19 = arith.mulf %17, %18 : vector<64x128xf32>
    %c0_10 = arith.constant 0 : index
    %c0_11 = arith.constant 0 : index
    %20 = vector.load %arg5[%c0_10, %c0_11] : memref<128x128xbf16, #tpu.memory_space<vmem>>, vector<128x128xbf16>
    %21 = arith.truncf %17 : vector<64x128xf32> to vector<64x128xbf16>
    %cst_12 = arith.constant dense<0.000000e+00> : vector<64x128xf32>
    %22 = tpu.matmul %21, %20, %cst_12 {dimension_numbers = #tpu.dot_dimension_numbers<[1], [0], [0], [1], [0, 0, 1, 1], [], []>} : vector<64x128xbf16>, vector<128x128xbf16>, vector<64x128xf32> -> vector<64x128xf32>
    %c64_i32_13 = arith.constant 64 : i32
    %23 = tpu.dynamic_rotate %22 by %c64_i32_13 dim 1 : vector<64x128xf32>, i32 -> vector<64x128xf32>
    %24 = arith.negf %23 : vector<64x128xf32>
    %25 = math.exp %24 : vector<64x128xf32>
    %cst_14 = arith.constant 1.000000e+00 : f32
    %26 = vector.broadcast %cst_14 : f32 to vector<64x128xf32>
    %27 = arith.addf %26, %25 : vector<64x128xf32>
    %28 = arith.divf %26, %27 : vector<64x128xf32>
    %29 = arith.mulf %22, %28 : vector<64x128xf32>
    %30 = arith.addf %19, %29 : vector<64x128xf32>
    %cst_15 = arith.constant 0.707106769 : f32
    %31 = vector.broadcast %cst_15 : f32 to vector<64x128xf32>
    %32 = arith.mulf %30, %31 : vector<64x128xf32>
    %c0_16 = arith.constant 0 : index
    %c0_17 = arith.constant 0 : index
    %c0_18 = arith.constant 0 : index
    %33 = vector.load %arg6[%c0_16, %c0_17, %c0_18] : memref<4x128x128xbf16, #tpu.memory_space<vmem>>, vector<1x128x128xbf16>
    %34 = vector.shape_cast %33 : vector<1x128x128xbf16> to vector<128x128xbf16>
    %35 = arith.truncf %30 : vector<64x128xf32> to vector<64x128xbf16>
    %cst_19 = arith.constant dense<0.000000e+00> : vector<64x128xf32>
    %36 = tpu.matmul %35, %34, %cst_19 {dimension_numbers = #tpu.dot_dimension_numbers<[1], [0], [0], [1], [0, 0, 1, 1], [], []>} : vector<64x128xbf16>, vector<128x128xbf16>, vector<64x128xf32> -> vector<64x128xf32>
    %c64_i32_20 = arith.constant 64 : i32
    %37 = tpu.dynamic_rotate %36 by %c64_i32_20 dim 1 : vector<64x128xf32>, i32 -> vector<64x128xf32>
    %38 = arith.negf %37 : vector<64x128xf32>
    %39 = math.exp %38 : vector<64x128xf32>
    %cst_21 = arith.constant 1.000000e+00 : f32
    %40 = vector.broadcast %cst_21 : f32 to vector<64x128xf32>
    %41 = arith.addf %40, %39 : vector<64x128xf32>
    %42 = arith.divf %40, %41 : vector<64x128xf32>
    %43 = arith.mulf %36, %42 : vector<64x128xf32>
    %44 = arith.addf %32, %43 : vector<64x128xf32>
    %cst_22 = arith.constant 0.707106769 : f32
    %45 = vector.broadcast %cst_22 : f32 to vector<64x128xf32>
    %46 = arith.mulf %44, %45 : vector<64x128xf32>
    %c0_23 = arith.constant 0 : index
    %c0_24 = arith.constant 0 : index
    %c0_25 = arith.constant 0 : index
    %47 = vector.load %arg7[%c0_23, %c0_24, %c0_25] : memref<4x128x128xbf16, #tpu.memory_space<vmem>>, vector<1x128x128xbf16>
    %48 = vector.shape_cast %47 : vector<1x128x128xbf16> to vector<128x128xbf16>
    %49 = arith.truncf %44 : vector<64x128xf32> to vector<64x128xbf16>
    %cst_26 = arith.constant dense<0.000000e+00> : vector<64x128xf32>
    %50 = tpu.matmul %49, %48, %cst_26 {dimension_numbers = #tpu.dot_dimension_numbers<[1], [0], [0], [1], [0, 0, 1, 1], [], []>} : vector<64x128xbf16>, vector<128x128xbf16>, vector<64x128xf32> -> vector<64x128xf32>
    %c64_i32_27 = arith.constant 64 : i32
    %51 = tpu.dynamic_rotate %50 by %c64_i32_27 dim 1 : vector<64x128xf32>, i32 -> vector<64x128xf32>
    %52 = arith.negf %51 : vector<64x128xf32>
    %53 = math.exp %52 : vector<64x128xf32>
    %cst_28 = arith.constant 1.000000e+00 : f32
    %54 = vector.broadcast %cst_28 : f32 to vector<64x128xf32>
    %55 = arith.addf %54, %53 : vector<64x128xf32>
    %56 = arith.divf %54, %55 : vector<64x128xf32>
    %57 = arith.mulf %50, %56 : vector<64x128xf32>
    %58 = arith.addf %46, %57 : vector<64x128xf32>
    %cst_29 = arith.constant 0.000000e+00 : f32
    %59 = vector.broadcast %cst_29 : f32 to vector<64x128xf32>
    %c0_30 = arith.constant 0 : index
    %c0_31 = arith.constant 0 : index
    %c0_32 = arith.constant 0 : index
    %60 = vector.load %arg8[%c0_30, %c0_31, %c0_32] : memref<3x128x16xbf16, #tpu.memory_space<vmem>>, vector<1x128x16xbf16>
    %61 = vector.shape_cast %60 : vector<1x128x16xbf16> to vector<128x16xbf16>
    %62 = arith.truncf %58 : vector<64x128xf32> to vector<64x128xbf16>
    %cst_33 = arith.constant dense<0.000000e+00> : vector<64x16xf32>
    %63 = tpu.matmul %62, %61, %cst_33 {dimension_numbers = #tpu.dot_dimension_numbers<[1], [0], [0], [1], [0, 0, 1, 1], [], []>} : vector<64x128xbf16>, vector<128x16xbf16>, vector<64x16xf32> -> vector<64x16xf32>
    %64 = vector.shape_cast %63 : vector<64x16xf32> to vector<1x64x16xf32>
    %cst_34 = arith.constant dense<0.000000e+00> : vector<1x16xf32>
    %65 = vector.multi_reduction <add>, %64, %cst_34 [1] : vector<1x64x16xf32> to vector<1x16xf32>
    %66 = vector.shape_cast %65 : vector<1x16xf32> to vector<1x1x16xf32>
    %cst_35 = arith.constant 6.400000e+01 : f32
    %67 = vector.broadcast %cst_35 : f32 to vector<1x1x16xf32>
    %68 = arith.divf %66, %67 : vector<1x1x16xf32>
    %69 = vector.broadcast %68 : vector<1x1x16xf32> to vector<1x64x16xf32>
    %70 = arith.subf %64, %69 : vector<1x64x16xf32>
    %71 = arith.mulf %70, %70 : vector<1x64x16xf32>
    %cst_36 = arith.constant dense<0.000000e+00> : vector<1x16xf32>
    %72 = vector.multi_reduction <add>, %71, %cst_36 [1] : vector<1x64x16xf32> to vector<1x16xf32>
    %73 = vector.shape_cast %72 : vector<1x16xf32> to vector<1x1x16xf32>
    %cst_37 = arith.constant 6.400000e+01 : f32
    %74 = vector.broadcast %cst_37 : f32 to vector<1x1x16xf32>
    %75 = arith.divf %73, %74 : vector<1x1x16xf32>
    %c0_38 = arith.constant 0 : index
    %c0_39 = arith.constant 0 : index
    %c0_40 = arith.constant 0 : index
    %76 = vector.load %arg9[%c0_38, %c0_39, %c0_40] : memref<3x1x16xf32, #tpu.memory_space<vmem>>, vector<1x1x16xf32>
    %77 = vector.shape_cast %76 : vector<1x1x16xf32> to vector<1x16xf32>
    %cst_41 = arith.constant 9.99999974E-6 : f32
    %78 = vector.broadcast %cst_41 : f32 to vector<1x1x16xf32>
    %79 = arith.addf %75, %78 : vector<1x1x16xf32>
    %80 = math.rsqrt %79 : vector<1x1x16xf32>
    %81 = vector.shape_cast %77 : vector<1x16xf32> to vector<1x1x16xf32>
    %82 = arith.mulf %81, %80 : vector<1x1x16xf32>
    %c0_42 = arith.constant 0 : index
    %c0_43 = arith.constant 0 : index
    %c0_44 = arith.constant 0 : index
    %83 = vector.load %arg10[%c0_42, %c0_43, %c0_44] : memref<3x1x16xf32, #tpu.memory_space<vmem>>, vector<1x1x16xf32>
    %84 = vector.shape_cast %83 : vector<1x1x16xf32> to vector<1x16xf32>
    %85 = arith.mulf %68, %82 : vector<1x1x16xf32>
    %86 = vector.shape_cast %84 : vector<1x16xf32> to vector<1x1x16xf32>
    %87 = arith.subf %86, %85 : vector<1x1x16xf32>
    %88 = vector.broadcast %82 : vector<1x1x16xf32> to vector<1x64x16xf32>
    %89 = arith.mulf %64, %88 : vector<1x64x16xf32>
    %90 = vector.broadcast %87 : vector<1x1x16xf32> to vector<1x64x16xf32>
    %91 = arith.addf %89, %90 : vector<1x64x16xf32>
    %92 = vector.shape_cast %91 : vector<1x64x16xf32> to vector<64x16xf32>
    %93 = arith.mulf %7, %92 : vector<64x16xf32>
    %cst_45 = arith.constant dense<0xFF800000> : vector<64xf32>
    %94 = vector.multi_reduction <maximumf>, %93, %cst_45 [1] : vector<64x16xf32> to vector<64xf32>
    %95 = vector.shape_cast %94 : vector<64xf32> to vector<64x1xf32>
    %96 = vector.broadcast %95 : vector<64x1xf32> to vector<64x16xf32>
    %97 = arith.subf %93, %96 : vector<64x16xf32>
    %98 = math.exp %97 : vector<64x16xf32>
    %cst_46 = arith.constant dense<0.000000e+00> : vector<64xf32>
    %99 = vector.multi_reduction <add>, %98, %cst_46 [1] : vector<64x16xf32> to vector<64xf32>
    %100 = vector.shape_cast %99 : vector<64xf32> to vector<64x1xf32>
    %101 = tpu.reciprocal %100 {approx = true} : vector<64x1xf32> -> vector<64x1xf32>
    %102 = vector.broadcast %101 : vector<64x1xf32> to vector<64x16xf32>
    %103 = arith.mulf %98, %102 : vector<64x16xf32>
    %104 = arith.mulf %103, %6 : vector<64x16xf32>
    %c0_47 = arith.constant 0 : index
    %c0_48 = arith.constant 0 : index
    %105 = vector.load %arg4[%c0_47, %c0_48] : memref<16x128xbf16, #tpu.memory_space<vmem>>, vector<16x128xbf16>
    %106 = arith.truncf %104 : vector<64x16xf32> to vector<64x16xbf16>
    %cst_49 = arith.constant dense<0.000000e+00> : vector<64x128xf32>
    %107 = tpu.matmul %106, %105, %cst_49 {dimension_numbers = #tpu.dot_dimension_numbers<[1], [0], [0], [1], [0, 0, 1, 1], [], []>} : vector<64x16xbf16>, vector<16x128xbf16>, vector<64x128xf32> -> vector<64x128xf32>
    %c64_i32_50 = arith.constant 64 : i32
    %108 = tpu.dynamic_rotate %107 by %c64_i32_50 dim 1 : vector<64x128xf32>, i32 -> vector<64x128xf32>
    %109 = arith.negf %108 : vector<64x128xf32>
    %110 = math.exp %109 : vector<64x128xf32>
    %cst_51 = arith.constant 1.000000e+00 : f32
    %111 = vector.broadcast %cst_51 : f32 to vector<64x128xf32>
    %112 = arith.addf %111, %110 : vector<64x128xf32>
    %113 = arith.divf %111, %112 : vector<64x128xf32>
    %114 = arith.mulf %107, %113 : vector<64x128xf32>
    %cst_52 = arith.constant 0.707106769 : f32
    %115 = vector.broadcast %cst_52 : f32 to vector<64x128xf32>
    %116 = arith.mulf %114, %115 : vector<64x128xf32>
    %c0_53 = arith.constant 0 : index
    %c0_54 = arith.constant 0 : index
    %117 = vector.load %arg5[%c0_53, %c0_54] : memref<128x128xbf16, #tpu.memory_space<vmem>>, vector<128x128xbf16>
    %118 = arith.truncf %114 : vector<64x128xf32> to vector<64x128xbf16>
    %cst_55 = arith.constant dense<0.000000e+00> : vector<64x128xf32>
    %119 = tpu.matmul %118, %117, %cst_55 {dimension_numbers = #tpu.dot_dimension_numbers<[1], [0], [0], [1], [0, 0, 1, 1], [], []>} : vector<64x128xbf16>, vector<128x128xbf16>, vector<64x128xf32> -> vector<64x128xf32>
    %c64_i32_56 = arith.constant 64 : i32
    %120 = tpu.dynamic_rotate %119 by %c64_i32_56 dim 1 : vector<64x128xf32>, i32 -> vector<64x128xf32>
    %121 = arith.negf %120 : vector<64x128xf32>
    %122 = math.exp %121 : vector<64x128xf32>
    %cst_57 = arith.constant 1.000000e+00 : f32
    %123 = vector.broadcast %cst_57 : f32 to vector<64x128xf32>
    %124 = arith.addf %123, %122 : vector<64x128xf32>
    %125 = arith.divf %123, %124 : vector<64x128xf32>
    %126 = arith.mulf %119, %125 : vector<64x128xf32>
    %127 = arith.addf %116, %126 : vector<64x128xf32>
    %cst_58 = arith.constant 0.707106769 : f32
    %128 = vector.broadcast %cst_58 : f32 to vector<64x128xf32>
    %129 = arith.mulf %127, %128 : vector<64x128xf32>
    %c1 = arith.constant 1 : index
    %c0_59 = arith.constant 0 : index
    %c0_60 = arith.constant 0 : index
    %130 = vector.load %arg6[%c1, %c0_59, %c0_60] : memref<4x128x128xbf16, #tpu.memory_space<vmem>>, vector<1x128x128xbf16>
    %131 = vector.shape_cast %130 : vector<1x128x128xbf16> to vector<128x128xbf16>
    %132 = arith.truncf %127 : vector<64x128xf32> to vector<64x128xbf16>
    %cst_61 = arith.constant dense<0.000000e+00> : vector<64x128xf32>
    %133 = tpu.matmul %132, %131, %cst_61 {dimension_numbers = #tpu.dot_dimension_numbers<[1], [0], [0], [1], [0, 0, 1, 1], [], []>} : vector<64x128xbf16>, vector<128x128xbf16>, vector<64x128xf32> -> vector<64x128xf32>
    %c64_i32_62 = arith.constant 64 : i32
    %134 = tpu.dynamic_rotate %133 by %c64_i32_62 dim 1 : vector<64x128xf32>, i32 -> vector<64x128xf32>
    %135 = arith.negf %134 : vector<64x128xf32>
    %136 = math.exp %135 : vector<64x128xf32>
    %cst_63 = arith.constant 1.000000e+00 : f32
    %137 = vector.broadcast %cst_63 : f32 to vector<64x128xf32>
    %138 = arith.addf %137, %136 : vector<64x128xf32>
    %139 = arith.divf %137, %138 : vector<64x128xf32>
    %140 = arith.mulf %133, %139 : vector<64x128xf32>
    %141 = arith.addf %129, %140 : vector<64x128xf32>
    %cst_64 = arith.constant 0.707106769 : f32
    %142 = vector.broadcast %cst_64 : f32 to vector<64x128xf32>
    %143 = arith.mulf %141, %142 : vector<64x128xf32>
    %c1_65 = arith.constant 1 : index
    %c0_66 = arith.constant 0 : index
    %c0_67 = arith.constant 0 : index
    %144 = vector.load %arg7[%c1_65, %c0_66, %c0_67] : memref<4x128x128xbf16, #tpu.memory_space<vmem>>, vector<1x128x128xbf16>
    %145 = vector.shape_cast %144 : vector<1x128x128xbf16> to vector<128x128xbf16>
    %146 = arith.truncf %141 : vector<64x128xf32> to vector<64x128xbf16>
    %cst_68 = arith.constant dense<0.000000e+00> : vector<64x128xf32>
    %147 = tpu.matmul %146, %145, %cst_68 {dimension_numbers = #tpu.dot_dimension_numbers<[1], [0], [0], [1], [0, 0, 1, 1], [], []>} : vector<64x128xbf16>, vector<128x128xbf16>, vector<64x128xf32> -> vector<64x128xf32>
    %c64_i32_69 = arith.constant 64 : i32
    %148 = tpu.dynamic_rotate %147 by %c64_i32_69 dim 1 : vector<64x128xf32>, i32 -> vector<64x128xf32>
    %149 = arith.negf %148 : vector<64x128xf32>
    %150 = math.exp %149 : vector<64x128xf32>
    %cst_70 = arith.constant 1.000000e+00 : f32
    %151 = vector.broadcast %cst_70 : f32 to vector<64x128xf32>
    %152 = arith.addf %151, %150 : vector<64x128xf32>
    %153 = arith.divf %151, %152 : vector<64x128xf32>
    %154 = arith.mulf %147, %153 : vector<64x128xf32>
    %155 = arith.addf %143, %154 : vector<64x128xf32>
    %cst_71 = arith.constant 0.000000e+00 : f32
    %156 = vector.broadcast %cst_71 : f32 to vector<64x128xf32>
    %157 = arith.maximumf %155, %156 : vector<64x128xf32>
    %158 = arith.addf %59, %157 : vector<64x128xf32>
    %cst_72 = arith.constant 1.300000e+00 : f32
    %159 = vector.broadcast %cst_72 : f32 to vector<64x16xf32>
    %160 = arith.subf %159, %103 : vector<64x16xf32>
    %161 = arith.mulf %160, %7 : vector<64x16xf32>
    %c1_73 = arith.constant 1 : index
    %c0_74 = arith.constant 0 : index
    %c0_75 = arith.constant 0 : index
    %162 = vector.load %arg8[%c1_73, %c0_74, %c0_75] : memref<3x128x16xbf16, #tpu.memory_space<vmem>>, vector<1x128x16xbf16>
    %163 = vector.shape_cast %162 : vector<1x128x16xbf16> to vector<128x16xbf16>
    %164 = arith.truncf %155 : vector<64x128xf32> to vector<64x128xbf16>
    %cst_76 = arith.constant dense<0.000000e+00> : vector<64x16xf32>
    %165 = tpu.matmul %164, %163, %cst_76 {dimension_numbers = #tpu.dot_dimension_numbers<[1], [0], [0], [1], [0, 0, 1, 1], [], []>} : vector<64x128xbf16>, vector<128x16xbf16>, vector<64x16xf32> -> vector<64x16xf32>
    %166 = vector.shape_cast %165 : vector<64x16xf32> to vector<1x64x16xf32>
    %cst_77 = arith.constant dense<0.000000e+00> : vector<1x16xf32>
    %167 = vector.multi_reduction <add>, %166, %cst_77 [1] : vector<1x64x16xf32> to vector<1x16xf32>
    %168 = vector.shape_cast %167 : vector<1x16xf32> to vector<1x1x16xf32>
    %cst_78 = arith.constant 6.400000e+01 : f32
    %169 = vector.broadcast %cst_78 : f32 to vector<1x1x16xf32>
    %170 = arith.divf %168, %169 : vector<1x1x16xf32>
    %171 = vector.broadcast %170 : vector<1x1x16xf32> to vector<1x64x16xf32>
    %172 = arith.subf %166, %171 : vector<1x64x16xf32>
    %173 = arith.mulf %172, %172 : vector<1x64x16xf32>
    %cst_79 = arith.constant dense<0.000000e+00> : vector<1x16xf32>
    %174 = vector.multi_reduction <add>, %173, %cst_79 [1] : vector<1x64x16xf32> to vector<1x16xf32>
    %175 = vector.shape_cast %174 : vector<1x16xf32> to vector<1x1x16xf32>
    %cst_80 = arith.constant 6.400000e+01 : f32
    %176 = vector.broadcast %cst_80 : f32 to vector<1x1x16xf32>
    %177 = arith.divf %175, %176 : vector<1x1x16xf32>
    %c1_81 = arith.constant 1 : index
    %c0_82 = arith.constant 0 : index
    %c0_83 = arith.constant 0 : index
    %178 = vector.load %arg9[%c1_81, %c0_82, %c0_83] : memref<3x1x16xf32, #tpu.memory_space<vmem>>, vector<1x1x16xf32>
    %179 = vector.shape_cast %178 : vector<1x1x16xf32> to vector<1x16xf32>
    %cst_84 = arith.constant 9.99999974E-6 : f32
    %180 = vector.broadcast %cst_84 : f32 to vector<1x1x16xf32>
    %181 = arith.addf %177, %180 : vector<1x1x16xf32>
    %182 = math.rsqrt %181 : vector<1x1x16xf32>
    %183 = vector.shape_cast %179 : vector<1x16xf32> to vector<1x1x16xf32>
    %184 = arith.mulf %183, %182 : vector<1x1x16xf32>
    %c1_85 = arith.constant 1 : index
    %c0_86 = arith.constant 0 : index
    %c0_87 = arith.constant 0 : index
    %185 = vector.load %arg10[%c1_85, %c0_86, %c0_87] : memref<3x1x16xf32, #tpu.memory_space<vmem>>, vector<1x1x16xf32>
    %186 = vector.shape_cast %185 : vector<1x1x16xf32> to vector<1x16xf32>
    %187 = arith.mulf %170, %184 : vector<1x1x16xf32>
    %188 = vector.shape_cast %186 : vector<1x16xf32> to vector<1x1x16xf32>
    %189 = arith.subf %188, %187 : vector<1x1x16xf32>
    %190 = vector.broadcast %184 : vector<1x1x16xf32> to vector<1x64x16xf32>
    %191 = arith.mulf %166, %190 : vector<1x64x16xf32>
    %192 = vector.broadcast %189 : vector<1x1x16xf32> to vector<1x64x16xf32>
    %193 = arith.addf %191, %192 : vector<1x64x16xf32>
    %194 = vector.shape_cast %193 : vector<1x64x16xf32> to vector<64x16xf32>
    %195 = arith.mulf %161, %194 : vector<64x16xf32>
    %cst_88 = arith.constant dense<0xFF800000> : vector<64xf32>
    %196 = vector.multi_reduction <maximumf>, %195, %cst_88 [1] : vector<64x16xf32> to vector<64xf32>
    %197 = vector.shape_cast %196 : vector<64xf32> to vector<64x1xf32>
    %198 = vector.broadcast %197 : vector<64x1xf32> to vector<64x16xf32>
    %199 = arith.subf %195, %198 : vector<64x16xf32>
    %200 = math.exp %199 : vector<64x16xf32>
    %cst_89 = arith.constant dense<0.000000e+00> : vector<64xf32>
    %201 = vector.multi_reduction <add>, %200, %cst_89 [1] : vector<64x16xf32> to vector<64xf32>
    %202 = vector.shape_cast %201 : vector<64xf32> to vector<64x1xf32>
    %203 = tpu.reciprocal %202 {approx = true} : vector<64x1xf32> -> vector<64x1xf32>
    %204 = vector.broadcast %203 : vector<64x1xf32> to vector<64x16xf32>
    %205 = arith.mulf %200, %204 : vector<64x16xf32>
    %206 = arith.mulf %205, %6 : vector<64x16xf32>
    %c0_90 = arith.constant 0 : index
    %c0_91 = arith.constant 0 : index
    %207 = vector.load %arg4[%c0_90, %c0_91] : memref<16x128xbf16, #tpu.memory_space<vmem>>, vector<16x128xbf16>
    %208 = arith.truncf %206 : vector<64x16xf32> to vector<64x16xbf16>
    %cst_92 = arith.constant dense<0.000000e+00> : vector<64x128xf32>
    %209 = tpu.matmul %208, %207, %cst_92 {dimension_numbers = #tpu.dot_dimension_numbers<[1], [0], [0], [1], [0, 0, 1, 1], [], []>} : vector<64x16xbf16>, vector<16x128xbf16>, vector<64x128xf32> -> vector<64x128xf32>
    %c64_i32_93 = arith.constant 64 : i32
    %210 = tpu.dynamic_rotate %209 by %c64_i32_93 dim 1 : vector<64x128xf32>, i32 -> vector<64x128xf32>
    %211 = arith.negf %210 : vector<64x128xf32>
    %212 = math.exp %211 : vector<64x128xf32>
    %cst_94 = arith.constant 1.000000e+00 : f32
    %213 = vector.broadcast %cst_94 : f32 to vector<64x128xf32>
    %214 = arith.addf %213, %212 : vector<64x128xf32>
    %215 = arith.divf %213, %214 : vector<64x128xf32>
    %216 = arith.mulf %209, %215 : vector<64x128xf32>
    %cst_95 = arith.constant 0.707106769 : f32
    %217 = vector.broadcast %cst_95 : f32 to vector<64x128xf32>
    %218 = arith.mulf %216, %217 : vector<64x128xf32>
    %c0_96 = arith.constant 0 : index
    %c0_97 = arith.constant 0 : index
    %219 = vector.load %arg5[%c0_96, %c0_97] : memref<128x128xbf16, #tpu.memory_space<vmem>>, vector<128x128xbf16>
    %220 = arith.truncf %216 : vector<64x128xf32> to vector<64x128xbf16>
    %cst_98 = arith.constant dense<0.000000e+00> : vector<64x128xf32>
    %221 = tpu.matmul %220, %219, %cst_98 {dimension_numbers = #tpu.dot_dimension_numbers<[1], [0], [0], [1], [0, 0, 1, 1], [], []>} : vector<64x128xbf16>, vector<128x128xbf16>, vector<64x128xf32> -> vector<64x128xf32>
    %c64_i32_99 = arith.constant 64 : i32
    %222 = tpu.dynamic_rotate %221 by %c64_i32_99 dim 1 : vector<64x128xf32>, i32 -> vector<64x128xf32>
    %223 = arith.negf %222 : vector<64x128xf32>
    %224 = math.exp %223 : vector<64x128xf32>
    %cst_100 = arith.constant 1.000000e+00 : f32
    %225 = vector.broadcast %cst_100 : f32 to vector<64x128xf32>
    %226 = arith.addf %225, %224 : vector<64x128xf32>
    %227 = arith.divf %225, %226 : vector<64x128xf32>
    %228 = arith.mulf %221, %227 : vector<64x128xf32>
    %229 = arith.addf %218, %228 : vector<64x128xf32>
    %cst_101 = arith.constant 0.707106769 : f32
    %230 = vector.broadcast %cst_101 : f32 to vector<64x128xf32>
    %231 = arith.mulf %229, %230 : vector<64x128xf32>
    %c2 = arith.constant 2 : index
    %c0_102 = arith.constant 0 : index
    %c0_103 = arith.constant 0 : index
    %232 = vector.load %arg6[%c2, %c0_102, %c0_103] : memref<4x128x128xbf16, #tpu.memory_space<vmem>>, vector<1x128x128xbf16>
    %233 = vector.shape_cast %232 : vector<1x128x128xbf16> to vector<128x128xbf16>
    %234 = arith.truncf %229 : vector<64x128xf32> to vector<64x128xbf16>
    %cst_104 = arith.constant dense<0.000000e+00> : vector<64x128xf32>
    %235 = tpu.matmul %234, %233, %cst_104 {dimension_numbers = #tpu.dot_dimension_numbers<[1], [0], [0], [1], [0, 0, 1, 1], [], []>} : vector<64x128xbf16>, vector<128x128xbf16>, vector<64x128xf32> -> vector<64x128xf32>
    %c64_i32_105 = arith.constant 64 : i32
    %236 = tpu.dynamic_rotate %235 by %c64_i32_105 dim 1 : vector<64x128xf32>, i32 -> vector<64x128xf32>
    %237 = arith.negf %236 : vector<64x128xf32>
    %238 = math.exp %237 : vector<64x128xf32>
    %cst_106 = arith.constant 1.000000e+00 : f32
    %239 = vector.broadcast %cst_106 : f32 to vector<64x128xf32>
    %240 = arith.addf %239, %238 : vector<64x128xf32>
    %241 = arith.divf %239, %240 : vector<64x128xf32>
    %242 = arith.mulf %235, %241 : vector<64x128xf32>
    %243 = arith.addf %231, %242 : vector<64x128xf32>
    %cst_107 = arith.constant 0.707106769 : f32
    %244 = vector.broadcast %cst_107 : f32 to vector<64x128xf32>
    %245 = arith.mulf %243, %244 : vector<64x128xf32>
    %c2_108 = arith.constant 2 : index
    %c0_109 = arith.constant 0 : index
    %c0_110 = arith.constant 0 : index
    %246 = vector.load %arg7[%c2_108, %c0_109, %c0_110] : memref<4x128x128xbf16, #tpu.memory_space<vmem>>, vector<1x128x128xbf16>
    %247 = vector.shape_cast %246 : vector<1x128x128xbf16> to vector<128x128xbf16>
    %248 = arith.truncf %243 : vector<64x128xf32> to vector<64x128xbf16>
    %cst_111 = arith.constant dense<0.000000e+00> : vector<64x128xf32>
    %249 = tpu.matmul %248, %247, %cst_111 {dimension_numbers = #tpu.dot_dimension_numbers<[1], [0], [0], [1], [0, 0, 1, 1], [], []>} : vector<64x128xbf16>, vector<128x128xbf16>, vector<64x128xf32> -> vector<64x128xf32>
    %c64_i32_112 = arith.constant 64 : i32
    %250 = tpu.dynamic_rotate %249 by %c64_i32_112 dim 1 : vector<64x128xf32>, i32 -> vector<64x128xf32>
    %251 = arith.negf %250 : vector<64x128xf32>
    %252 = math.exp %251 : vector<64x128xf32>
    %cst_113 = arith.constant 1.000000e+00 : f32
    %253 = vector.broadcast %cst_113 : f32 to vector<64x128xf32>
    %254 = arith.addf %253, %252 : vector<64x128xf32>
    %255 = arith.divf %253, %254 : vector<64x128xf32>
    %256 = arith.mulf %249, %255 : vector<64x128xf32>
    %257 = arith.addf %245, %256 : vector<64x128xf32>
    %cst_114 = arith.constant 0.000000e+00 : f32
    %258 = vector.broadcast %cst_114 : f32 to vector<64x128xf32>
    %259 = arith.maximumf %257, %258 : vector<64x128xf32>
    %260 = arith.addf %158, %259 : vector<64x128xf32>
    %cst_115 = arith.constant 1.300000e+00 : f32
    %261 = vector.broadcast %cst_115 : f32 to vector<64x16xf32>
    %262 = arith.subf %261, %205 : vector<64x16xf32>
    %263 = arith.mulf %262, %161 : vector<64x16xf32>
    %c2_116 = arith.constant 2 : index
    %c0_117 = arith.constant 0 : index
    %c0_118 = arith.constant 0 : index
    %264 = vector.load %arg8[%c2_116, %c0_117, %c0_118] : memref<3x128x16xbf16, #tpu.memory_space<vmem>>, vector<1x128x16xbf16>
    %265 = vector.shape_cast %264 : vector<1x128x16xbf16> to vector<128x16xbf16>
    %266 = arith.truncf %257 : vector<64x128xf32> to vector<64x128xbf16>
    %cst_119 = arith.constant dense<0.000000e+00> : vector<64x16xf32>
    %267 = tpu.matmul %266, %265, %cst_119 {dimension_numbers = #tpu.dot_dimension_numbers<[1], [0], [0], [1], [0, 0, 1, 1], [], []>} : vector<64x128xbf16>, vector<128x16xbf16>, vector<64x16xf32> -> vector<64x16xf32>
    %268 = vector.shape_cast %267 : vector<64x16xf32> to vector<1x64x16xf32>
    %cst_120 = arith.constant dense<0.000000e+00> : vector<1x16xf32>
    %269 = vector.multi_reduction <add>, %268, %cst_120 [1] : vector<1x64x16xf32> to vector<1x16xf32>
    %270 = vector.shape_cast %269 : vector<1x16xf32> to vector<1x1x16xf32>
    %cst_121 = arith.constant 6.400000e+01 : f32
    %271 = vector.broadcast %cst_121 : f32 to vector<1x1x16xf32>
    %272 = arith.divf %270, %271 : vector<1x1x16xf32>
    %273 = vector.broadcast %272 : vector<1x1x16xf32> to vector<1x64x16xf32>
    %274 = arith.subf %268, %273 : vector<1x64x16xf32>
    %275 = arith.mulf %274, %274 : vector<1x64x16xf32>
    %cst_122 = arith.constant dense<0.000000e+00> : vector<1x16xf32>
    %276 = vector.multi_reduction <add>, %275, %cst_122 [1] : vector<1x64x16xf32> to vector<1x16xf32>
    %277 = vector.shape_cast %276 : vector<1x16xf32> to vector<1x1x16xf32>
    %cst_123 = arith.constant 6.400000e+01 : f32
    %278 = vector.broadcast %cst_123 : f32 to vector<1x1x16xf32>
    %279 = arith.divf %277, %278 : vector<1x1x16xf32>
    %c2_124 = arith.constant 2 : index
    %c0_125 = arith.constant 0 : index
    %c0_126 = arith.constant 0 : index
    %280 = vector.load %arg9[%c2_124, %c0_125, %c0_126] : memref<3x1x16xf32, #tpu.memory_space<vmem>>, vector<1x1x16xf32>
    %281 = vector.shape_cast %280 : vector<1x1x16xf32> to vector<1x16xf32>
    %cst_127 = arith.constant 9.99999974E-6 : f32
    %282 = vector.broadcast %cst_127 : f32 to vector<1x1x16xf32>
    %283 = arith.addf %279, %282 : vector<1x1x16xf32>
    %284 = math.rsqrt %283 : vector<1x1x16xf32>
    %285 = vector.shape_cast %281 : vector<1x16xf32> to vector<1x1x16xf32>
    %286 = arith.mulf %285, %284 : vector<1x1x16xf32>
    %c2_128 = arith.constant 2 : index
    %c0_129 = arith.constant 0 : index
    %c0_130 = arith.constant 0 : index
    %287 = vector.load %arg10[%c2_128, %c0_129, %c0_130] : memref<3x1x16xf32, #tpu.memory_space<vmem>>, vector<1x1x16xf32>
    %288 = vector.shape_cast %287 : vector<1x1x16xf32> to vector<1x16xf32>
    %289 = arith.mulf %272, %286 : vector<1x1x16xf32>
    %290 = vector.shape_cast %288 : vector<1x16xf32> to vector<1x1x16xf32>
    %291 = arith.subf %290, %289 : vector<1x1x16xf32>
    %292 = vector.broadcast %286 : vector<1x1x16xf32> to vector<1x64x16xf32>
    %293 = arith.mulf %268, %292 : vector<1x64x16xf32>
    %294 = vector.broadcast %291 : vector<1x1x16xf32> to vector<1x64x16xf32>
    %295 = arith.addf %293, %294 : vector<1x64x16xf32>
    %296 = vector.shape_cast %295 : vector<1x64x16xf32> to vector<64x16xf32>
    %297 = arith.mulf %263, %296 : vector<64x16xf32>
    %cst_131 = arith.constant dense<0xFF800000> : vector<64xf32>
    %298 = vector.multi_reduction <maximumf>, %297, %cst_131 [1] : vector<64x16xf32> to vector<64xf32>
    %299 = vector.shape_cast %298 : vector<64xf32> to vector<64x1xf32>
    %300 = vector.broadcast %299 : vector<64x1xf32> to vector<64x16xf32>
    %301 = arith.subf %297, %300 : vector<64x16xf32>
    %302 = math.exp %301 : vector<64x16xf32>
    %cst_132 = arith.constant dense<0.000000e+00> : vector<64xf32>
    %303 = vector.multi_reduction <add>, %302, %cst_132 [1] : vector<64x16xf32> to vector<64xf32>
    %304 = vector.shape_cast %303 : vector<64xf32> to vector<64x1xf32>
    %305 = tpu.reciprocal %304 {approx = true} : vector<64x1xf32> -> vector<64x1xf32>
    %306 = vector.broadcast %305 : vector<64x1xf32> to vector<64x16xf32>
    %307 = arith.mulf %302, %306 : vector<64x16xf32>
    %308 = arith.mulf %307, %6 : vector<64x16xf32>
    %c0_133 = arith.constant 0 : index
    %c0_134 = arith.constant 0 : index
    %309 = vector.load %arg4[%c0_133, %c0_134] : memref<16x128xbf16, #tpu.memory_space<vmem>>, vector<16x128xbf16>
    %310 = arith.truncf %308 : vector<64x16xf32> to vector<64x16xbf16>
    %cst_135 = arith.constant dense<0.000000e+00> : vector<64x128xf32>
    %311 = tpu.matmul %310, %309, %cst_135 {dimension_numbers = #tpu.dot_dimension_numbers<[1], [0], [0], [1], [0, 0, 1, 1], [], []>} : vector<64x16xbf16>, vector<16x128xbf16>, vector<64x128xf32> -> vector<64x128xf32>
    %c64_i32_136 = arith.constant 64 : i32
    %312 = tpu.dynamic_rotate %311 by %c64_i32_136 dim 1 : vector<64x128xf32>, i32 -> vector<64x128xf32>
    %313 = arith.negf %312 : vector<64x128xf32>
    %314 = math.exp %313 : vector<64x128xf32>
    %cst_137 = arith.constant 1.000000e+00 : f32
    %315 = vector.broadcast %cst_137 : f32 to vector<64x128xf32>
    %316 = arith.addf %315, %314 : vector<64x128xf32>
    %317 = arith.divf %315, %316 : vector<64x128xf32>
    %318 = arith.mulf %311, %317 : vector<64x128xf32>
    %cst_138 = arith.constant 0.707106769 : f32
    %319 = vector.broadcast %cst_138 : f32 to vector<64x128xf32>
    %320 = arith.mulf %318, %319 : vector<64x128xf32>
    %c0_139 = arith.constant 0 : index
    %c0_140 = arith.constant 0 : index
    %321 = vector.load %arg5[%c0_139, %c0_140] : memref<128x128xbf16, #tpu.memory_space<vmem>>, vector<128x128xbf16>
    %322 = arith.truncf %318 : vector<64x128xf32> to vector<64x128xbf16>
    %cst_141 = arith.constant dense<0.000000e+00> : vector<64x128xf32>
    %323 = tpu.matmul %322, %321, %cst_141 {dimension_numbers = #tpu.dot_dimension_numbers<[1], [0], [0], [1], [0, 0, 1, 1], [], []>} : vector<64x128xbf16>, vector<128x128xbf16>, vector<64x128xf32> -> vector<64x128xf32>
    %c64_i32_142 = arith.constant 64 : i32
    %324 = tpu.dynamic_rotate %323 by %c64_i32_142 dim 1 : vector<64x128xf32>, i32 -> vector<64x128xf32>
    %325 = arith.negf %324 : vector<64x128xf32>
    %326 = math.exp %325 : vector<64x128xf32>
    %cst_143 = arith.constant 1.000000e+00 : f32
    %327 = vector.broadcast %cst_143 : f32 to vector<64x128xf32>
    %328 = arith.addf %327, %326 : vector<64x128xf32>
    %329 = arith.divf %327, %328 : vector<64x128xf32>
    %330 = arith.mulf %323, %329 : vector<64x128xf32>
    %331 = arith.addf %320, %330 : vector<64x128xf32>
    %cst_144 = arith.constant 0.707106769 : f32
    %332 = vector.broadcast %cst_144 : f32 to vector<64x128xf32>
    %333 = arith.mulf %331, %332 : vector<64x128xf32>
    %c3 = arith.constant 3 : index
    %c0_145 = arith.constant 0 : index
    %c0_146 = arith.constant 0 : index
    %334 = vector.load %arg6[%c3, %c0_145, %c0_146] : memref<4x128x128xbf16, #tpu.memory_space<vmem>>, vector<1x128x128xbf16>
    %335 = vector.shape_cast %334 : vector<1x128x128xbf16> to vector<128x128xbf16>
    %336 = arith.truncf %331 : vector<64x128xf32> to vector<64x128xbf16>
    %cst_147 = arith.constant dense<0.000000e+00> : vector<64x128xf32>
    %337 = tpu.matmul %336, %335, %cst_147 {dimension_numbers = #tpu.dot_dimension_numbers<[1], [0], [0], [1], [0, 0, 1, 1], [], []>} : vector<64x128xbf16>, vector<128x128xbf16>, vector<64x128xf32> -> vector<64x128xf32>
    %c64_i32_148 = arith.constant 64 : i32
    %338 = tpu.dynamic_rotate %337 by %c64_i32_148 dim 1 : vector<64x128xf32>, i32 -> vector<64x128xf32>
    %339 = arith.negf %338 : vector<64x128xf32>
    %340 = math.exp %339 : vector<64x128xf32>
    %cst_149 = arith.constant 1.000000e+00 : f32
    %341 = vector.broadcast %cst_149 : f32 to vector<64x128xf32>
    %342 = arith.addf %341, %340 : vector<64x128xf32>
    %343 = arith.divf %341, %342 : vector<64x128xf32>
    %344 = arith.mulf %337, %343 : vector<64x128xf32>
    %345 = arith.addf %333, %344 : vector<64x128xf32>
    %cst_150 = arith.constant 0.707106769 : f32
    %346 = vector.broadcast %cst_150 : f32 to vector<64x128xf32>
    %347 = arith.mulf %345, %346 : vector<64x128xf32>
    %c3_151 = arith.constant 3 : index
    %c0_152 = arith.constant 0 : index
    %c0_153 = arith.constant 0 : index
    %348 = vector.load %arg7[%c3_151, %c0_152, %c0_153] : memref<4x128x128xbf16, #tpu.memory_space<vmem>>, vector<1x128x128xbf16>
    %349 = vector.shape_cast %348 : vector<1x128x128xbf16> to vector<128x128xbf16>
    %350 = arith.truncf %345 : vector<64x128xf32> to vector<64x128xbf16>
    %cst_154 = arith.constant dense<0.000000e+00> : vector<64x128xf32>
    %351 = tpu.matmul %350, %349, %cst_154 {dimension_numbers = #tpu.dot_dimension_numbers<[1], [0], [0], [1], [0, 0, 1, 1], [], []>} : vector<64x128xbf16>, vector<128x128xbf16>, vector<64x128xf32> -> vector<64x128xf32>
    %c64_i32_155 = arith.constant 64 : i32
    %352 = tpu.dynamic_rotate %351 by %c64_i32_155 dim 1 : vector<64x128xf32>, i32 -> vector<64x128xf32>
    %353 = arith.negf %352 : vector<64x128xf32>
    %354 = math.exp %353 : vector<64x128xf32>
    %cst_156 = arith.constant 1.000000e+00 : f32
    %355 = vector.broadcast %cst_156 : f32 to vector<64x128xf32>
    %356 = arith.addf %355, %354 : vector<64x128xf32>
    %357 = arith.divf %355, %356 : vector<64x128xf32>
    %358 = arith.mulf %351, %357 : vector<64x128xf32>
    %359 = arith.addf %347, %358 : vector<64x128xf32>
    %cst_157 = arith.constant 0.000000e+00 : f32
    %360 = vector.broadcast %cst_157 : f32 to vector<64x128xf32>
    %361 = arith.maximumf %359, %360 : vector<64x128xf32>
    %362 = arith.addf %260, %361 : vector<64x128xf32>
    %c0_158 = arith.constant 0 : index
    %c0_159 = arith.constant 0 : index
    %363 = vector.load %arg11[%c0_158, %c0_159] : memref<128x128xbf16, #tpu.memory_space<vmem>>, vector<128x128xbf16>
    %364 = arith.truncf %362 : vector<64x128xf32> to vector<64x128xbf16>
    %cst_160 = arith.constant dense<0.000000e+00> : vector<64x128xf32>
    %365 = tpu.matmul %364, %363, %cst_160 {dimension_numbers = #tpu.dot_dimension_numbers<[1], [0], [0], [1], [0, 0, 1, 1], [], []>} : vector<64x128xbf16>, vector<128x128xbf16>, vector<64x128xf32> -> vector<64x128xf32>
    %c0_161 = arith.constant 0 : index
    %c0_162 = arith.constant 0 : index
    %366 = vector.load %arg12[%c0_161, %c0_162] : memref<1x128xf32, #tpu.memory_space<vmem>>, vector<1x128xf32>
    %367 = vector.broadcast %366 : vector<1x128xf32> to vector<64x128xf32>
    %368 = arith.addf %365, %367 : vector<64x128xf32>
    %c0_163 = arith.constant 0 : index
    %c0_164 = arith.constant 0 : index
    %369 = vector.load %arg13[%c0_163, %c0_164] : memref<64x128xf32, #tpu.memory_space<vmem>>, vector<64x128xf32>
    tpu.vector_store %arg13[%c0_163, %c0_164], %368 {strides = array<i32>} : memref<64x128xf32, #tpu.memory_space<vmem>>, vector<64x128xf32>,
    return
  }
  func.func @transform_0(%arg0: i32) -> (i32, i32) {
    %c0_i32 = arith.constant 0 : i32
    %c0_i32_0 = arith.constant 0 : i32
    return %arg0, %c0_i32 : i32, i32
  }
  func.func @transform_1(%arg0: i32) -> (i32, i32) {
    %c0_i32 = arith.constant 0 : i32
    %c0_i32_0 = arith.constant 0 : i32
    %c0_i32_1 = arith.constant 0 : i32
    return %c0_i32, %c0_i32_0 : i32, i32
  }
  func.func @transform_2(%arg0: i32) -> (i32, i32) {
    %c0_i32 = arith.constant 0 : i32
    %c0_i32_0 = arith.constant 0 : i32
    %c0_i32_1 = arith.constant 0 : i32
    return %c0_i32, %c0_i32_0 : i32, i32
  }
  func.func @transform_3(%arg0: i32) -> (i32, i32) {
    %c0_i32 = arith.constant 0 : i32
    %c0_i32_0 = arith.constant 0 : i32
    %c0_i32_1 = arith.constant 0 : i32
    return %c0_i32, %c0_i32_0 : i32, i32
  }
  func.func @transform_4(%arg0: i32) -> (i32, i32) {
    %c0_i32 = arith.constant 0 : i32
    %c0_i32_0 = arith.constant 0 : i32
    %c0_i32_1 = arith.constant 0 : i32
    return %c0_i32, %c0_i32_0 : i32, i32
  }
  func.func @transform_5(%arg0: i32) -> (i32, i32, i32) {
    %c0_i32 = arith.constant 0 : i32
    %c0_i32_0 = arith.constant 0 : i32
    %c0_i32_1 = arith.constant 0 : i32
    %c0_i32_2 = arith.constant 0 : i32
    return %c0_i32, %c0_i32_0, %c0_i32_1 : i32, i32, i32
  }
  func.func @transform_6(%arg0: i32) -> (i32, i32, i32) {
    %c0_i32 = arith.constant 0 : i32
    %c0_i32_0 = arith.constant 0 : i32
    %c0_i32_1 = arith.constant 0 : i32
    %c0_i32_2 = arith.constant 0 : i32
    return %c0_i32, %c0_i32_0, %c0_i32_1 : i32, i32, i32
  }
  func.func @transform_7(%arg0: i32) -> (i32, i32, i32) {
    %c0_i32 = arith.constant 0 : i32
    %c0_i32_0 = arith.constant 0 : i32
    %c0_i32_1 = arith.constant 0 : i32
    %c0_i32_2 = arith.constant 0 : i32
    return %c0_i32, %c0_i32_0, %c0_i32_1 : i32, i32, i32
  }
  func.func @transform_8(%arg0: i32) -> (i32, i32, i32) {
    %c0_i32 = arith.constant 0 : i32
    %c0_i32_0 = arith.constant 0 : i32
    %c0_i32_1 = arith.constant 0 : i32
    %c0_i32_2 = arith.constant 0 : i32
    return %c0_i32, %c0_i32_0, %c0_i32_1 : i32, i32, i32
  }
  func.func @transform_9(%arg0: i32) -> (i32, i32, i32) {
    %c0_i32 = arith.constant 0 : i32
    %c0_i32_0 = arith.constant 0 : i32
    %c0_i32_1 = arith.constant 0 : i32
    %c0_i32_2 = arith.constant 0 : i32
    return %c0_i32, %c0_i32_0, %c0_i32_1 : i32, i32, i32
  }
  func.func @transform_10(%arg0: i32) -> (i32, i32) {
    %c0_i32 = arith.constant 0 : i32
    %c0_i32_0 = arith.constant 0 : i32
    %c0_i32_1 = arith.constant 0 : i32
    return %c0_i32, %c0_i32_0 : i32, i32
  }
  func.func @transform_11(%arg0: i32) -> (i32, i32) {
    %c0_i32 = arith.constant 0 : i32
    %c0_i32_0 = arith.constant 0 : i32
    %c0_i32_1 = arith.constant 0 : i32
    return %c0_i32, %c0_i32_0 : i32, i32
  }
  func.func @transform_12(%arg0: i32) -> (i32, i32) {
    %c0_i32 = arith.constant 0 : i32
    %c0_i32_0 = arith.constant 0 : i32
    return %arg0, %c0_i32 : i32, i32
  }
}

</mosaic_0001>

<bundles_post_ra>
// kernel: tpu_custom_call.1
= control target key start
LH: loop header
LB: loop body
LE: loop exit
PB: predicated region body
PF: predicated region fallthrough
CT: control target
= control target key end

     0   :  { %17 = vsyncpa [#allocation3], 0  ;;  %s8222_s0 = inlined_call_operand.vmem [shape: f32[64,16], index: 0, kind: input, shape index: {}]   ;;  %s8223_s1 = inlined_call_operand.hbm [shape: f32[1,16], index: 1, kind: input, shape index: {}]   ;;  %s8224_s2 = inlined_call_operand.hbm [shape: f32[1,16], index: 2, kind: input, shape index: {}]   ;;  %s8225_s3 = inlined_call_operand.hbm [shape: bf16[16,128], index: 3, kind: input, shape index: {}]   ;;  %s8226_s4 = inlined_call_operand.hbm [shape: bf16[128,128], index: 4, kind: input, shape index: {}]   ;;  %s8227_s5 = inlined_call_operand.vmem [shape: bf16[4,128,128], index: 5, kind: input, shape index: {}]   ;;  %s8228_s6 = inlined_call_operand.hbm [shape: bf16[4,128,128], index: 6, kind: input, shape index: {}]   ;;  %s8229_s7 = inlined_call_operand.vmem [shape: bf16[3,128,16], index: 7, kind: input, shape index: {}]   ;;  %s8230_s8 = inlined_call_operand.vmem [shape: f32[3,1,16], index: 8, kind: input, shape index: {}]   ;;  %s8231_s9 = inlined_call_operand.vmem [shape: f32[3,1,16], index: 9, kind: input, shape index: {}]   ;;  %s8232_s10 = inlined_call_operand.vmem [shape: bf16[128,128], index: 10, kind: input, shape index: {}]   ;;  %s8233_s11 = inlined_call_operand.vmem [shape: f32[1,128], index: 11, kind: input, shape index: {}]   ;;  %s8234_s12 = inlined_call_operand.hbm [shape: f32[64,128], index: 12, kind: output, shape index: {}]  }
   0x1   :  { %18 = vsyncpa [#allocation6], 0 }
   0x2   :  { %19 = vsyncpa [#allocation9], 0 }
   0x3   :  { %20 = vsyncpa [#allocation4], 0  ;;  %s6326_s21 = smov [#allocation5]   ;;  %s6186_s25 = scalar_lea.hbm %s8224_s2, 16 }
   0x4   :  { %s39_s22 = sshll.u32 %s6326_s21, 4  ;;  %p6187_p0 = scmp.ne.s32.totalorder %s8224_s2, %s6186_s25  ;;  %s40_s22 = int_to_ptr.vmem [resolvable:$true] %s39_s22 }
   0x5   :  { %p6190_p1 = scmp.lt.u32.totalorder %s6186_s25, %s8224_s2 }
   0x7   :  { %p6192_p2 = pnand %p6190_p1, %p6187_p0 }
   0x9   :  { %6195 = shalt.err (!%p6192_p2)
}
   0xa   :  { %s6196_s30 = scalar_lea.vmem %s40_s22, 16  ;;  %s6200_s13 = scalar_lea.vmem %s40_s22, 32 }
   0xb   :  { %p6197_p3 = scmp.ne.s32.totalorder %s40_s22, %s6196_s30  ;;  %p6201_p4 = scmp.lt.s32.totalorder %s40_s22, %s40_s22 }
   0xc   :  { %p6202_p5 = scmp.lt.s32.totalorder %s6200_s13, %s6196_s30 }
   0xe   :  { %p6203_p6 = por %p6202_p5, %p6201_p4 }
  0x10   :  { %p6204_p7 = pnand %p6203_p6, %p6197_p3 }
  0x12   :  { %6207 = shalt.err (!%p6204_p7)
}
  0x13   :  { %42 = dma.hbm_to_vmem [thread:$0]  %s8224_s2, 16, %s40_s22, [#allocation6]  }
  0x14   :  { %s6327_s16 = smov [#allocation8]   ;;  %s6328_s18 = smov [#allocation2]  }
  0x15   :  { %s60_s17 = sshll.u32 %s6327_s16, 4  ;;  %s29_s19 = sshll.u32 %s6328_s18, 4  ;;  %s61_s17 = int_to_ptr.vmem [resolvable:$true] %s60_s17  ;;  %s30_s19 = int_to_ptr.vmem [resolvable:$true] %s29_s19 }
  0x16   :  { %s6208_s23 = scalar_lea.hbm %s8226_s4, 1024 }
  0x17   :  { %p6209_p8 = scmp.ne.s32.totalorder %s8226_s4, %s6208_s23  ;;  %p6212_p9 = scmp.lt.u32.totalorder %s6208_s23, %s8226_s4 }
  0x19   :  { %p6214_p10 = pnand %p6212_p9, %p6209_p8 }
  0x1b   :  { %6217 = shalt.err (!%p6214_p10)
}
  0x1c   :  { %s6218_s2 = scalar_lea.vmem %s61_s17, 1024  ;;  %p6223_p12 = scmp.lt.s32.totalorder %s61_s17, %s61_s17 }
  0x1d   :  { %p6219_p11 = scmp.ne.s32.totalorder %s61_s17, %s6218_s2  ;;  %p6224_p13 = scmp.lt.s32.totalorder %s6218_s2, %s6218_s2 }
  0x1f   :  { %p6225_p0 = por %p6224_p13, %p6223_p12 }
  0x21   :  { %p6226_p1 = pnand %p6225_p0, %p6219_p11 }
  0x23   :  { %6229 = shalt.err (!%p6226_p1)
}
  0x24   :  { %s6329_s22 = smov 64   ;;  %s6330_s28 = smov 4  }
  0x25   :  { %66 = dma.hbm_to_vmem [thread:$0]  %s8226_s4, 1024, %s61_s17, [#allocation9], %s6329_s22, %s6329_s22, %s6330_s28  }
  0x26   :  { %s6230_s15 = scalar_lea.hbm %s8223_s1, 16 }
  0x27   :  { %p6231_p2 = scmp.ne.s32.totalorder %s8223_s1, %s6230_s15  ;;  %p6234_p3 = scmp.lt.u32.totalorder %s6230_s15, %s8223_s1 }
  0x29   :  { %p6236_p4 = pnand %p6234_p3, %p6231_p2 }
  0x2b   :  { %6239 = shalt.err (!%p6236_p4)
}
  0x2c   :  { %s6240_s23 = scalar_lea.vmem %s30_s19, 16  ;;  %s6244_s24 = scalar_lea.vmem %s30_s19, 32 }
  0x2d   :  { %p6241_p5 = scmp.ne.s32.totalorder %s30_s19, %s6240_s23  ;;  %p6245_p6 = scmp.lt.s32.totalorder %s30_s19, %s30_s19 }
  0x2e   :  { %p6246_p7 = scmp.lt.s32.totalorder %s6244_s24, %s6240_s23 }
  0x30   :  { %p6247_p8 = por %p6246_p7, %p6245_p6 }
  0x32   :  { %p6248_p9 = pnand %p6247_p8, %p6241_p5 }
  0x34   :  { %6251 = shalt.err (!%p6248_p9)
}
  0x35   :  { %32 = dma.hbm_to_vmem [thread:$0]  %s8223_s1, 16, %s30_s19, [#allocation3]  }
  0x36   :  { %s6331_s25 = smov [#allocation7]   ;;  %s6332_s27 = smov [#allocation10]  }
  0x37   :  { %s48_s26 = sshll.u32 %s6331_s25, 4  ;;  %s74_s2 = sshll.u32 %s6332_s27, 4  ;;  %s49_s26 = int_to_ptr.vmem [resolvable:$true] %s48_s26  ;;  %s75_s2 = int_to_ptr.vmem [resolvable:$true] %s74_s2 }
  0x38   :  { %s6252_s13 = scalar_lea.hbm %s8225_s3, 128 }
  0x39   :  { %p6253_p10 = scmp.ne.s32.totalorder %s8225_s3, %s6252_s13  ;;  %p6256_p11 = scmp.lt.u32.totalorder %s6252_s13, %s8225_s3 }
  0x3b   :  { %p6258_p12 = pnand %p6256_p11, %p6253_p10 }
  0x3d   :  { %6261 = shalt.err (!%p6258_p12)
}
  0x3e   :  { %s6262_s1 = scalar_lea.vmem %s49_s26, 128  ;;  %p6267_p0 = scmp.lt.s32.totalorder %s49_s26, %s49_s26 }
  0x3f   :  { %p6263_p13 = scmp.ne.s32.totalorder %s49_s26, %s6262_s1  ;;  %p6268_p1 = scmp.lt.s32.totalorder %s6262_s1, %s6262_s1 }
  0x41   :  { %p6269_p2 = por %p6268_p1, %p6267_p0 }
  0x43   :  { %p6270_p3 = pnand %p6269_p2, %p6263_p13 }
  0x45   :  { %6273 = shalt.err (!%p6270_p3)
}
  0x46   :  { %54 = dma.hbm_to_vmem [thread:$0]  %s8225_s3, 128, %s49_s26, [#allocation6], %s6329_s22, %s6329_s22, %s6330_s28  }
  0x47   :  { %s6274_s24 = scalar_lea.hbm %s8228_s6, 4096 }
  0x48   :  { %p6275_p4 = scmp.ne.s32.totalorder %s8228_s6, %s6274_s24  ;;  %p6278_p5 = scmp.lt.u32.totalorder %s6274_s24, %s8228_s6 }
  0x4a   :  { %p6280_p6 = pnand %p6278_p5, %p6275_p4 }
  0x4c   :  { %6283 = shalt.err (!%p6280_p6)
}
  0x4d   :  { %s6284_s29 = scalar_lea.vmem %s75_s2, 4096  ;;  %p6289_p8 = scmp.lt.s32.totalorder %s75_s2, %s75_s2 }
  0x4e   :  { %p6285_p7 = scmp.ne.s32.totalorder %s75_s2, %s6284_s29  ;;  %p6290_p9 = scmp.lt.s32.totalorder %s6284_s29, %s6284_s29 }
  0x50   :  { %p6291_p10 = por %p6290_p9, %p6289_p8 }
  0x52   :  { %p6292_p11 = pnand %p6291_p10, %p6285_p7 }
  0x54   :  { %6295 = shalt.err (!%p6292_p11)
}
  0x55   :  { %80 = dma.hbm_to_vmem [thread:$0]  %s8228_s6, 4096, %s75_s2, [#allocation9], %s6329_s22, %s6329_s22, %s6330_s28  }
  0x56   :  { %6318 = dma.done.wait [#allocation3], 16  }
  0x57   :  { %6319 = vsyncadd [#allocation3], 4294967280 }
  0x58   :  { %6320 = dma.done.wait [#allocation6], 144  }
  0x59   :  { %6321 = vsyncadd [#allocation6], 4294967152 }
  0x5a   :  { %6322 = dma.done.wait [#allocation9], 5120  }
  0x5b   :  { %6323 = vsyncadd [#allocation9], 4294962176  ;;  %v5448_v0 = vld [vmem:[#allocation7] sm:$0xff]   ;;  %v4466_v3 = vld [vmem:[#allocation2] ss:$0 sm:$0xff]  ;;  %vm157_vm0 = vcmask 130048  }
  0x5c   :  { %v107_v1 = vld [vmem:[%s8222_s0] sm:$0xff]  ;;  %v108_v2 = vld [vmem:[%s8222_s0 + $0x8] sm:$0xff]  ;;  %5014 = vmatprep.subr.bf16.mxu0 %v5448_v0  ;;  %v109_v7 = vld [vmem:[%s8222_s0 + $0x10] sm:$0xff]  ;;  %s6333_s20 = smov [#allocation11]  }
  0x5d   :  { %v122_v4 = vmul.f32 %v4466_v3, %v107_v1  ;;  %v123_v5 = vmul.f32 %v4466_v3, %v108_v2  ;;  %v4467_v6 = vld [vmem:[#allocation5] ss:$0 sm:$0xff]  ;;  %v110_v8 = vld [vmem:[%s8222_s0 + $0x18] sm:$0xff]  ;;  %5015 = vmatpush3.bf16.msra.mxu0 %v5448_v0  ;;  %v124_v9 = vmul.f32 %v4466_v3, %v109_v7  ;;  %v112_v12 = vld [vmem:[%s8222_s0 + $0x28] sm:$0xff]  ;;  %s4452_s21 = sshll.u32 %s6333_s20, 4  ;;  %s4453_s21 = int_to_ptr.vmem [resolvable:$true] %s4452_s21 }
  0x5e   :  { %v125_v10 = vmul.f32 %v4466_v3, %v110_v8  ;;  %v111_v11 = vld [vmem:[%s8222_s0 + $0x20] sm:$0xff]  ;;  %v113_v13 = vld [vmem:[%s8222_s0 + $0x30] sm:$0xff]  ;;  %v127_v17 = vmul.f32 %v4466_v3, %v112_v12  ;;  %v114_v18 = vld [vmem:[%s8222_s0 + $0x38] sm:$0xff]  ;;  %p6301_p13 = scmp.lt.s32.totalorder %s4453_s21, %s4453_s21 }
  0x5f   :  { %v6491_v14 = vadd.f32 %v4467_v6, %v122_v4  ;;  %v6493_v15 = vadd.f32 %v4467_v6, %v123_v5  ;;  %v126_v16 = vmul.f32 %v4466_v3, %v111_v11  ;;  %v6498_v19 = vadd.f32 %v4467_v6, %v124_v9  ;;  %v6522_v31 = vld [vmem:[#allocation8] sm:$0xff]   ;;  %v6526_v32 = vld [vmem:[#allocation8 + $0x8] sm:$0xff]   ;;  %v6530_v33 = vld [vmem:[#allocation8 + $0x10] sm:$0xff]  }
  0x60   :  { %v6500_v20 = vadd.f32 %v4467_v6, %v125_v10  ;;  %v128_v21 = vmul.f32 %v4466_v3, %v113_v13  ;;  %v129_v22 = vmul.f32 %v4466_v3, %v114_v18  ;;  %v6506_v25 = vadd.f32 %v4467_v6, %v127_v17  ;;  %5024 = vmatprep.subr.bf16.mxu1 %v6522_v31  ;;  %v6546_v38 = vld [vmem:[#allocation8 + $0x18] sm:$0xff]   ;;  %v6556_v40 = vld [vmem:[#allocation8 + $0x20] sm:$0xff]   ;;  %v6570_v44 = vld [vmem:[#allocation8 + $0x28] sm:$0xff]  }
  0x61   :  { %v147_v23 = vpack.c.bf16 %v6493_v15, %v6491_v14  ;;  %v6504_v24 = vadd.f32 %v4467_v6, %v126_v16  ;;  %5025 = vmatpush3.bf16.msra.mxu1 %v6522_v31  ;;  %v6578_v45 = vld [vmem:[#allocation8 + $0x30] sm:$0xff]   ;;  %v6582_v46 = vld [vmem:[#allocation8 + $0x38] sm:$0xff]  }
  0x62   :  { %v148_v26 = vpack.c.bf16 %v6500_v20, %v6498_v19  ;;  %v6514_v28 = vadd.f32 %v4467_v6, %v128_v21  ;;  %v6516_v29 = vadd.f32 %v4467_v6, %v129_v22  ;;  %5026 = vmatprep.subr.bf16.mxu1 %v6526_v32 }
  0x63   :  { %5016 = vmatprep.mubr.msk.bf16.mxu0 %vm157_vm0, %v147_v23  ;;  %v149_v27 = vpack.c.bf16 %v6506_v25, %v6504_v24 }
  0x64   :  { %5017 = vmatmul.mubr.msk.bf16.vlgmr.msra.gmra.mrb[0].mxu0 %vm157_vm0, %v148_v26  ;;  %8245 = vst [vmem:[#allocation16_spill] sm:$0xff] %v6514_v28  ;;  %8246 = vst [vmem:[#allocation17_spill] sm:$0xff] %v6516_v29  ;;  %v150_v30 = vpack.c.bf16 %v6516_v29, %v6514_v28 }
  0x65   :  { %5020 = vmatprep.mubr.msk.bf16.mxu0 %vm157_vm0, %v149_v27  ;;  %5027 = vmatpush3.bf16.msra.mxu1 %v6526_v32 }
  0x66   :  { %5028 = vmatprep.subr.bf16.mxu1 %v6530_v33 }
  0x69   :  { %5029 = vmatpush3.bf16.msra.mxu1 %v6530_v33 }
  0x6a   :  { %5030 = vmatprep.subr.bf16.mxu1 %v6546_v38 }
  0x6c   :  { %5021 = vmatmul.mubr.msk.bf16.gmra.mrb[4].mxu0 %vm157_vm0, %v150_v30 }
  0x6d   :  { %5031 = vmatpush3.bf16.msra.mxu1 %v6546_v38 }
  0x6e   :  { %5032 = vmatprep.subr.bf16.mxu1 %v6556_v40 }
  0x71   :  { %5033 = vmatpush3.bf16.msra.mxu1 %v6556_v40 }
  0x72   :  { %5034 = vmatprep.subr.bf16.mxu1 %v6570_v44 }
  0x75   :  { %5035 = vmatpush3.bf16.msra.mxu1 %v6570_v44 }
  0x76   :  { %5036 = vmatprep.subr.bf16.mxu1 %v6578_v45 }
  0x79   :  { %5037 = vmatpush3.bf16.msra.mxu1 %v6578_v45 }
  0x7a   :  { %5038 = vmatprep.subr.bf16.mxu1 %v6582_v46 }
  0x7d   :  { %5039 = vmatpush3.bf16.msra.mxu1 %v6582_v46 }
 0x137   :  { %v6532_v34 = vpop.f32.mrb[0].mxu0 }
 0x138   :  { %239 = vrot.lane.b32.xlu1 %v6532_v34, %s6329_s22  ;;  %v6537_v35 = vpop.f32.mrb[1].mxu0 }
 0x139   :  { %235 = vrot.lane.b32.xlu0 %v6537_v35, %s6329_s22  ;;  %v6542_v36 = vpop.f32.mrb[2].mxu0 }
 0x13a   :  { %v6544_v37 = vpop.f32.mrb[3].mxu0 }
 0x13c   :  { %241 = vrot.lane.b32.xlu1 %v6542_v36, %s6329_s22 }
 0x13d   :  { %237 = vrot.lane.b32.xlu0 %v6544_v37, %s6329_s22 }
 0x13f   :  { %v6554_v39 = vpop.f32.mrb[4].mxu0 }
 0x140   :  { %v6558_v41 = vpop.f32.mrb[5].mxu0 }
 0x141   :  { %243 = vrot.lane.b32.xlu0 %v6558_v41, %s6329_s22  ;;  %v6562_v42 = vpop.f32.mrb[6].mxu0 }
 0x142   :  { %v6565_v43 = vpop.f32.mrb[7].mxu0 }
 0x143   :  { %245 = vrot.lane.b32.xlu1 %v6565_v43, %s6329_s22 }
 0x145   :  { %247 = vrot.lane.b32.xlu0 %v6554_v39, %s6329_s22 }
 0x147   :  { %249 = vrot.lane.b32.xlu1 %v6562_v42, %s6329_s22 }
 0x1aa   :  { %v240_v47 = vpop.permute.xlu1 %239 }
 0x1ab   :  { %v4475_v48 = vmul.f32 -1.442695, %v240_v47  ;;  %v236_v49 = vpop.permute.xlu0 %235 }
 0x1ac   :  { %v4473_v50 = vmul.f32 -1.442695, %v236_v49 }
 0x1ad   :  { %5553 = vpow2.f32 %v4475_v48 }
 0x1ae   :  { %5555 = vpow2.f32 %v4473_v50  ;;  %v242_v51 = vpop.permute.xlu1 %241 }
 0x1af   :  { %v4476_v52 = vmul.f32 -1.442695, %v242_v51  ;;  %v238_v53 = vpop.permute.xlu0 %237 }
 0x1b0   :  { %v4474_v54 = vmul.f32 -1.442695, %v238_v53 }
 0x1b1   :  { %5557 = vpow2.f32 %v4476_v52 }
 0x1b2   :  { %5559 = vpow2.f32 %v4474_v54 }
 0x1b3   :  { %v244_v55 = vpop.permute.xlu0 %243 }
 0x1b4   :  { %v4477_v56 = vmul.f32 -1.442695, %v244_v55 }
 0x1b5   :  { %v246_v57 = vpop.permute.xlu1 %245 }
 0x1b6   :  { %5561 = vpow2.f32 %v4477_v56  ;;  %v4478_v58 = vmul.f32 -1.442695, %v246_v57  ;;  %v5459_v57 = vld [vmem:[%s8227_s5 + $0x10] sm:$0xff]  }
 0x1b7   :  { %v5554_v59 = vpop.eup %5553  ;;  %v248_v60 = vpop.permute.xlu0 %247 }
 0x1b8   :  { %v5556_v61 = vpop.eup %5555  ;;  %v277_v62 = vadd.f32 1.0, %v5554_v59  ;;  %5563 = vpow2.f32 %v4478_v58  ;;  %v4479_v63 = vmul.f32 -1.442695, %v248_v60  ;;  %v5460_v58 = vld [vmem:[%s8227_s5 + $0x18] sm:$0xff]  }
 0x1b9   :  { %v275_v0 = vadd.f32 1.0, %v5556_v61  ;;  %v250_v1 = vpop.permute.xlu1 %249  ;;  %v5461_v61 = vld [vmem:[%s8227_s5 + $0x20] sm:$0xff]  }
 0x1ba   :  { %5565 = vrcp.f32 %v277_v62  ;;  %v4480_v2 = vmul.f32 -1.442695, %v250_v1  ;;  %v5463_v1 = vld [vmem:[%s8227_s5 + $0x30] sm:$0xff]  }
 0x1bb   :  { %v5558_v3 = vpop.eup %5557  ;;  %5567 = vrcp.f32 %v275_v0  ;;  %v5462_v0 = vld [vmem:[%s8227_s5 + $0x28] sm:$0xff]  }
 0x1bc   :  { %v5560_v4 = vpop.eup %5559  ;;  %v278_v5 = vadd.f32 1.0, %v5558_v3  ;;  %5569 = vpow2.f32 %v4479_v63 }
 0x1bd   :  { %v276_v6 = vadd.f32 1.0, %v5560_v4  ;;  %5571 = vpow2.f32 %v4480_v2  ;;  %v5464_v2 = vld [vmem:[%s8227_s5 + $0x38] sm:$0xff]  }
 0x1be   :  { %5573 = vrcp.f32 %v278_v5 }
 0x1bf   :  { %5575 = vrcp.f32 %v276_v6 }
 0x1c0   :  { %v5562_v7 = vpop.eup %5561 }
 0x1c1   :  { %v279_v8 = vadd.f32 1.0, %v5562_v7 }
 0x1c2   :  { %v5564_v9 = vpop.eup %5563 }
 0x1c3   :  { %5577 = vrcp.f32 %v279_v8  ;;  %v280_v10 = vadd.f32 1.0, %v5564_v9 }
 0x1c4   :  { %v5566_v11 = vpop.eup %5565 }
 0x1c5   :  { %v5568_v12 = vpop.eup %5567  ;;  %5579 = vrcp.f32 %v280_v10  ;;  %v6587_v23 = vmul.f32 %v5566_v11, %v6532_v34 }
 0x1c6   :  { %v5570_v13 = vpop.eup %5569  ;;  %v6593_v27 = vmul.f32 %v5568_v12, %v6537_v35 }
 0x1c7   :  { %v5572_v16 = vpop.eup %5571  ;;  %v281_v17 = vadd.f32 1.0, %v5570_v13 }
 0x1c8   :  { %v5574_v18 = vpop.eup %5573  ;;  %v282_v21 = vadd.f32 1.0, %v5572_v16 }
 0x1c9   :  { %v5576_v22 = vpop.eup %5575  ;;  %5581 = vrcp.f32 %v281_v17  ;;  %v6590_v26 = vmul.f32 %v5574_v18, %v6542_v36 }
 0x1ca   :  { %5583 = vrcp.f32 %v282_v21  ;;  %v6596_v30 = vmul.f32 %v5576_v22, %v6544_v37 }
 0x1cb   :  { %v332_v47 = vpack.c.bf16 %v6590_v26, %v6587_v23 }
 0x1cc   :  { %v331_v48 = vpack.c.bf16 %v6596_v30, %v6593_v27 }
 0x1cd   :  { %v5578_v49 = vpop.eup %5577 }
 0x1ce   :  { %5040 = vmatprep.mubr.bf16.mxu1 %v331_v48  ;;  %v6603_v36 = vmul.f32 %v5578_v49, %v6558_v41  ;;  %v5457_v41 = vld [vmem:[%s8227_s5] sm:$0xff]  }
 0x1cf   :  { %v5580_v34 = vpop.eup %5579  ;;  %5041 = vmatmul.mubr.bf16.vlgmr.msra.gmra.mrb[0].mxu1 %v332_v47  ;;  %5048 = vmatprep.subr.bf16.mxu0 %v5457_v41 }
 0x1d0   :  { %v6606_v50 = vmul.f32 %v5580_v34, %v6565_v43  ;;  %5049 = vmatpush3.bf16.msra.mxu0 %v5457_v41  ;;  %v5458_v43 = vld [vmem:[%s8227_s5 + $0x8] sm:$0xff]  }
 0x1d1   :  { %5050 = vmatprep.subr.bf16.mxu0 %v5458_v43 }
 0x1d2   :  { %v333_v35 = vpack.c.bf16 %v6606_v50, %v6603_v36 }
 0x1d3   :  { %v5582_v37 = vpop.eup %5581 }
 0x1d4   :  { %v5584_v51 = vpop.eup %5583  ;;  %5044 = vmatprep.mubr.bf16.mxu1 %v333_v35  ;;  %v6611_v52 = vmul.f32 %v5582_v37, %v6554_v39  ;;  %5051 = vmatpush3.bf16.msra.mxu0 %v5458_v43 }
 0x1d5   :  { %v6614_v53 = vmul.f32 %v5584_v51, %v6562_v42  ;;  %5052 = vmatprep.subr.bf16.mxu0 %v5459_v57 }
 0x1d7   :  { %v334_v54 = vpack.c.bf16 %v6614_v53, %v6611_v52 }
 0x1d8   :  { %5053 = vmatpush3.bf16.msra.mxu0 %v5459_v57 }
 0x1d9   :  { %5045 = vmatmul.mubr.bf16.gmra.mrb[4].mxu1 %v334_v54  ;;  %5054 = vmatprep.subr.bf16.mxu0 %v5460_v58 }
 0x1dc   :  { %5055 = vmatpush3.bf16.msra.mxu0 %v5460_v58 }
 0x1dd   :  { %5056 = vmatprep.subr.bf16.mxu0 %v5461_v61 }
 0x1e0   :  { %5057 = vmatpush3.bf16.msra.mxu0 %v5461_v61 }
 0x1e1   :  { %5058 = vmatprep.subr.bf16.mxu0 %v5462_v0 }
 0x1e4   :  { %5059 = vmatpush3.bf16.msra.mxu0 %v5462_v0 }
 0x1e5   :  { %5060 = vmatprep.subr.bf16.mxu0 %v5463_v1 }
 0x1e8   :  { %5061 = vmatpush3.bf16.msra.mxu0 %v5463_v1  ;;  %v307_v1 = vmul.f32 0.70710677, %v6593_v27 }
 0x1e9   :  { %5062 = vmatprep.subr.bf16.mxu0 %v5464_v2 }
 0x1ec   :  { %5063 = vmatpush3.bf16.msra.mxu0 %v5464_v2 }
 0x2a2   :  { %v6624_v55 = vpop.f32.mrb[0].mxu1 }
 0x2a3   :  { %v6626_v39 = vpop.f32.mrb[1].mxu1 }
 0x2a4   :  { %v6628_v42 = vpop.f32.mrb[2].mxu1  ;;  %448 = vrot.lane.b32.xlu0 %v6626_v39, %s6329_s22 }
 0x2a5   :  { %v6632_v56 = vpop.f32.mrb[3].mxu1 }
 0x2a6   :  { %450 = vrot.lane.b32.xlu1 %v6632_v56, %s6329_s22 }
 0x2a8   :  { %452 = vrot.lane.b32.xlu0 %v6624_v55, %s6329_s22 }
 0x2aa   :  { %454 = vrot.lane.b32.xlu1 %v6628_v42, %s6329_s22 }
 0x2ac   :  { %v6646_v59 = vpop.f32.mrb[4].mxu1 }
 0x2ad   :  { %v6648_v60 = vpop.f32.mrb[5].mxu1 }
 0x2ae   :  { %456 = vrot.lane.b32.xlu0 %v6648_v60, %s6329_s22  ;;  %v6655_v62 = vpop.f32.mrb[6].mxu1 }
 0x2af   :  { %v6657_v63 = vpop.f32.mrb[7].mxu1 }
 0x2b0   :  { %458 = vrot.lane.b32.xlu1 %v6657_v63, %s6329_s22 }
 0x2b2   :  { %460 = vrot.lane.b32.xlu0 %v6646_v59, %s6329_s22 }
 0x2b4   :  { %462 = vrot.lane.b32.xlu1 %v6655_v62, %s6329_s22 }
 0x316   :  { %v449_v3 = vpop.permute.xlu0 %448 }
 0x317   :  { %v4489_v4 = vmul.f32 -1.442695, %v449_v3 }
 0x318   :  { %v451_v5 = vpop.permute.xlu1 %450 }
 0x319   :  { %5585 = vpow2.f32 %v4489_v4  ;;  %v4490_v6 = vmul.f32 -1.442695, %v451_v5 }
 0x31a   :  { %v453_v7 = vpop.permute.xlu0 %452 }
 0x31b   :  { %5587 = vpow2.f32 %v4490_v6  ;;  %v4491_v8 = vmul.f32 -1.442695, %v453_v7  ;;  %v308_v6 = vmul.f32 0.70710677, %v6596_v30 }
 0x31c   :  { %v455_v9 = vpop.permute.xlu1 %454 }
 0x31d   :  { %5589 = vpow2.f32 %v4491_v8  ;;  %v4492_v10 = vmul.f32 -1.442695, %v455_v9 }
 0x31f   :  { %5591 = vpow2.f32 %v4492_v10 }
 0x320   :  { %v457_v11 = vpop.permute.xlu0 %456 }
 0x321   :  { %v4493_v12 = vmul.f32 -1.442695, %v457_v11  ;;  %v309_v11 = vmul.f32 0.70710677, %v6587_v23 }
 0x322   :  { %v459_v13 = vpop.permute.xlu1 %458 }
 0x323   :  { %v5586_v16 = vpop.eup %5585  ;;  %5593 = vpow2.f32 %v4493_v12  ;;  %v4494_v17 = vmul.f32 -1.442695, %v459_v13  ;;  %v310_v13 = vmul.f32 0.70710677, %v6590_v26  ;;  %v312_v26 = vmul.f32 0.70710677, %v6606_v50 }
 0x324   :  { %v488_v18 = vadd.f32 1.0, %v5586_v16  ;;  %v461_v21 = vpop.permute.xlu0 %460 }
 0x325   :  { %v5588_v22 = vpop.eup %5587  ;;  %5595 = vpow2.f32 %v4494_v17  ;;  %v4495_v47 = vmul.f32 -1.442695, %v461_v21 }
 0x326   :  { %5597 = vrcp.f32 %v488_v18  ;;  %v489_v48 = vadd.f32 1.0, %v5588_v22  ;;  %v463_v49 = vpop.permute.xlu1 %462 }
 0x327   :  { %v5590_v34 = vpop.eup %5589  ;;  %5599 = vpow2.f32 %v4495_v47  ;;  %v4496_v35 = vmul.f32 -1.442695, %v463_v49 }
 0x328   :  { %5601 = vrcp.f32 %v489_v48  ;;  %v490_v37 = vadd.f32 1.0, %v5590_v34  ;;  %v313_v34 = vmul.f32 0.70710677, %v6611_v52  ;;  %v5465_v52 = vld [vmem:[#allocation10] sm:$0xff]  }
 0x329   :  { %v5592_v51 = vpop.eup %5591  ;;  %5603 = vpow2.f32 %v4496_v35  ;;  %5072 = vmatprep.subr.bf16.mxu1 %v5465_v52 }
 0x32a   :  { %5605 = vrcp.f32 %v490_v37  ;;  %v491_v54 = vadd.f32 1.0, %v5592_v51  ;;  %5073 = vmatpush3.bf16.msra.mxu1 %v5465_v52 }
 0x32c   :  { %5607 = vrcp.f32 %v491_v54 }
 0x32d   :  { %v5594_v41 = vpop.eup %5593 }
 0x32e   :  { %v492_v43 = vadd.f32 1.0, %v5594_v41 }
 0x32f   :  { %v5596_v57 = vpop.eup %5595 }
 0x330   :  { %v5598_v58 = vpop.eup %5597  ;;  %5609 = vrcp.f32 %v492_v43  ;;  %v493_v61 = vadd.f32 1.0, %v5596_v57  ;;  %v5467_v57 = vld [vmem:[#allocation10 + $0x10] sm:$0xff]  }
 0x331   :  { %v5600_v0 = vpop.eup %5599  ;;  %v512_v2 = vmul.f32 %v5598_v58, %v6626_v39  ;;  %v5468_v58 = vld [vmem:[#allocation10 + $0x18] sm:$0xff]  }
 0x332   :  { %v5602_v3 = vpop.eup %5601  ;;  %5611 = vrcp.f32 %v493_v61  ;;  %v494_v4 = vadd.f32 1.0, %v5600_v0 }
 0x333   :  { %v5604_v5 = vpop.eup %5603  ;;  %v513_v7 = vmul.f32 %v5602_v3, %v6632_v56  ;;  %v6678_v8 = vadd.f32 %v512_v2, %v307_v1  ;;  %v5469_v1 = vld [vmem:[#allocation10 + $0x20] sm:$0xff]  }
 0x334   :  { %v5606_v9 = vpop.eup %5605  ;;  %5613 = vrcp.f32 %v494_v4  ;;  %v495_v10 = vadd.f32 1.0, %v5604_v5  ;;  %v5470_v4 = vld [vmem:[#allocation10 + $0x28] sm:$0xff]   ;;  %v5471_v5 = vld [vmem:[#allocation10 + $0x30] sm:$0xff]  }
 0x335   :  { %v6681_v12 = vadd.f32 %v513_v7, %v308_v6  ;;  %v514_v27 = vmul.f32 %v5606_v9, %v6624_v55  ;;  %v311_v55 = vmul.f32 0.70710677, %v6603_v36  ;;  %v5472_v6 = vld [vmem:[#allocation10 + $0x38] sm:$0xff]  }
 0x336   :  { %v5608_v39 = vpop.eup %5607  ;;  %5615 = vrcp.f32 %v495_v10  ;;  %v6746_v7 = vld [vmem:[#allocation7] sm:$0xff]  }
 0x337   :  { %v552_v30 = vpack.c.bf16 %v6681_v12, %v6678_v8  ;;  %v515_v56 = vmul.f32 %v5608_v39, %v6628_v42  ;;  %v6688_v16 = vadd.f32 %v514_v27, %v309_v11 }
 0x339   :  { %5064 = vmatprep.mubr.bf16.mxu0 %v552_v30  ;;  %v6690_v17 = vadd.f32 %v515_v56, %v310_v13 }
 0x33a   :  { %v5610_v18 = vpop.eup %5609 }
 0x33b   :  { %v553_v23 = vpack.c.bf16 %v6690_v17, %v6688_v16  ;;  %v516_v21 = vmul.f32 %v5610_v18, %v6648_v60  ;;  %v314_v60 = vmul.f32 0.70710677, %v6614_v53 }
 0x33c   :  { %v5612_v22 = vpop.eup %5611 }
 0x33d   :  { %5065 = vmatmul.mubr.bf16.vlgmr.msra.gmra.mrb[8].mxu0 %v553_v23  ;;  %v517_v47 = vmul.f32 %v5612_v22, %v6657_v63  ;;  %v6698_v42 = vadd.f32 %v516_v21, %v311_v55 }
 0x33e   :  { %v5614_v48 = vpop.eup %5613 }
 0x33f   :  { %v6700_v49 = vadd.f32 %v517_v47, %v312_v26  ;;  %v518_v35 = vmul.f32 %v5614_v48, %v6646_v59  ;;  %v5466_v59 = vld [vmem:[#allocation10 + $0x8] sm:$0xff]  }
 0x340   :  { %v5616_v37 = vpop.eup %5615  ;;  %5074 = vmatprep.subr.bf16.mxu1 %v5466_v59 }
 0x341   :  { %v554_v36 = vpack.c.bf16 %v6700_v49, %v6698_v42  ;;  %v519_v51 = vmul.f32 %v5616_v37, %v6655_v62  ;;  %v6708_v50 = vadd.f32 %v518_v35, %v313_v34  ;;  %5075 = vmatpush3.bf16.msra.mxu1 %v5466_v59 }
 0x342   :  { %5076 = vmatprep.subr.bf16.mxu1 %v5467_v57 }
 0x343   :  { %5068 = vmatprep.mubr.bf16.mxu0 %v554_v36  ;;  %v6710_v63 = vadd.f32 %v519_v51, %v314_v60 }
 0x345   :  { %v555_v54 = vpack.c.bf16 %v6710_v63, %v6708_v50  ;;  %5077 = vmatpush3.bf16.msra.mxu1 %v5467_v57 }
 0x346   :  { %5078 = vmatprep.subr.bf16.mxu1 %v5468_v58 }
 0x347   :  { %5069 = vmatmul.mubr.bf16.gmra.mrb[12].mxu0 %v555_v54 }
 0x349   :  { %5079 = vmatpush3.bf16.msra.mxu1 %v5468_v58 }
 0x34a   :  { %5080 = vmatprep.subr.bf16.mxu1 %v5469_v1 }
 0x34d   :  { %5081 = vmatpush3.bf16.msra.mxu1 %v5469_v1 }
 0x34e   :  { %5082 = vmatprep.subr.bf16.mxu1 %v5470_v4 }
 0x351   :  { %5083 = vmatpush3.bf16.msra.mxu1 %v5470_v4 }
 0x352   :  { %5084 = vmatprep.subr.bf16.mxu1 %v5471_v5 }
 0x355   :  { %5085 = vmatpush3.bf16.msra.mxu1 %v5471_v5 }
 0x356   :  { %5086 = vmatprep.subr.bf16.mxu1 %v5472_v6 }
 0x359   :  { %5087 = vmatpush3.bf16.msra.mxu1 %v5472_v6  ;;  %v528_v6 = vmul.f32 0.70710677, %v6678_v8 }
 0x35a   :  { %5120 = vmatprep.subr.bf16.mxu1 %v6746_v7 }
 0x410   :  { %v6714_v41 = vpop.f32.mrb[8].mxu0 }
 0x411   :  { %v6716_v43 = vpop.f32.mrb[9].mxu0 }
 0x412   :  { %669 = vrot.lane.b32.xlu0 %v6716_v43, %s6329_s22  ;;  %v6720_v53 = vpop.f32.mrb[10].mxu0 }
 0x413   :  { %v6722_v62 = vpop.f32.mrb[11].mxu0 }
 0x414   :  { %671 = vrot.lane.b32.xlu1 %v6722_v62, %s6329_s22 }
 0x416   :  { %673 = vrot.lane.b32.xlu0 %v6714_v41, %s6329_s22 }
 0x418   :  { %675 = vrot.lane.b32.xlu1 %v6720_v53, %s6329_s22 }
 0x41a   :  { %v6730_v61 = vpop.f32.mrb[12].mxu0 }
 0x41b   :  { %v6732_v0 = vpop.f32.mrb[13].mxu0 }
 0x41c   :  { %677 = vrot.lane.b32.xlu0 %v6732_v0, %s6329_s22  ;;  %v6736_v2 = vpop.f32.mrb[14].mxu0 }
 0x41d   :  { %v6738_v3 = vpop.f32.mrb[15].mxu0 }
 0x41e   :  { %679 = vrot.lane.b32.xlu1 %v6738_v3, %s6329_s22 }
 0x420   :  { %681 = vrot.lane.b32.xlu0 %v6730_v61, %s6329_s22 }
 0x422   :  { %683 = vrot.lane.b32.xlu1 %v6736_v2, %s6329_s22 }
 0x484   :  { %v670_v9 = vpop.permute.xlu0 %669 }
 0x485   :  { %v4505_v10 = vmul.f32 -1.442695, %v670_v9 }
 0x486   :  { %v672_v11 = vpop.permute.xlu1 %671 }
 0x487   :  { %5617 = vpow2.f32 %v4505_v10  ;;  %v4506_v27 = vmul.f32 -1.442695, %v672_v11 }
 0x488   :  { %v674_v39 = vpop.permute.xlu0 %673 }
 0x489   :  { %5619 = vpow2.f32 %v4506_v27  ;;  %v4507_v13 = vmul.f32 -1.442695, %v674_v39  ;;  %v529_v39 = vmul.f32 0.70710677, %v6681_v12  ;;  %v531_v12 = vmul.f32 0.70710677, %v6690_v17 }
 0x48a   :  { %v676_v30 = vpop.permute.xlu1 %675 }
 0x48b   :  { %5621 = vpow2.f32 %v4507_v13  ;;  %v4508_v56 = vmul.f32 -1.442695, %v676_v30 }
 0x48d   :  { %5623 = vpow2.f32 %v4508_v56 }
 0x48e   :  { %v678_v18 = vpop.permute.xlu0 %677 }
 0x48f   :  { %v4509_v23 = vmul.f32 -1.442695, %v678_v18 }
 0x490   :  { %v680_v55 = vpop.permute.xlu1 %679 }
 0x491   :  { %v5618_v21 = vpop.eup %5617  ;;  %5625 = vpow2.f32 %v4509_v23  ;;  %v4510_v22 = vmul.f32 -1.442695, %v680_v55  ;;  %v530_v55 = vmul.f32 0.70710677, %v6688_v16 }
 0x492   :  { %v709_v26 = vadd.f32 1.0, %v5618_v21  ;;  %v682_v47 = vpop.permute.xlu0 %681 }
 0x493   :  { %v5620_v48 = vpop.eup %5619  ;;  %5627 = vpow2.f32 %v4510_v22  ;;  %v4511_v34 = vmul.f32 -1.442695, %v682_v47 }
 0x494   :  { %5629 = vrcp.f32 %v709_v26  ;;  %v710_v35 = vadd.f32 1.0, %v5620_v48  ;;  %v684_v37 = vpop.permute.xlu1 %683 }
 0x495   :  { %v5622_v36 = vpop.eup %5621  ;;  %5631 = vpow2.f32 %v4511_v34  ;;  %v4512_v60 = vmul.f32 -1.442695, %v684_v37 }
 0x496   :  { %5633 = vrcp.f32 %v710_v35  ;;  %v711_v51 = vadd.f32 1.0, %v5622_v36  ;;  %v533_v35 = vmul.f32 0.70710677, %v6700_v49 }
 0x497   :  { %v5624_v54 = vpop.eup %5623  ;;  %5635 = vpow2.f32 %v4512_v60  ;;  %v534_v60 = vmul.f32 0.70710677, %v6708_v50  ;;  %v5473_v50 = vld [vmem:[%s8229_s7] sm:$0xff]  }
 0x498   :  { %5637 = vrcp.f32 %v711_v51  ;;  %v712_v52 = vadd.f32 1.0, %v5624_v54  ;;  %v535_v54 = vmul.f32 0.70710677, %v6710_v63  ;;  %5096 = vmatprep.subr.bf16.mxu0 %v5473_v50  ;;  %v5474_v63 = vld [vmem:[%s8229_s7 + $0x8] sm:$0xff]  }
 0x499   :  { %5097 = vmatpush3.bf16.msra.mxu0 %v5473_v50 }
 0x49a   :  { %5639 = vrcp.f32 %v712_v52  ;;  %5098 = vmatprep.subr.bf16.mxu0 %v5474_v63 }
 0x49b   :  { %v5626_v59 = vpop.eup %5625 }
 0x49c   :  { %v713_v57 = vadd.f32 1.0, %v5626_v59 }
 0x49d   :  { %v5628_v58 = vpop.eup %5627  ;;  %5099 = vmatpush3.bf16.msra.mxu0 %v5474_v63 }
 0x49e   :  { %v5630_v1 = vpop.eup %5629  ;;  %5641 = vrcp.f32 %v713_v57  ;;  %v714_v4 = vadd.f32 1.0, %v5628_v58  ;;  %v5475_v58 = vld [vmem:[%s8229_s7 + $0x10] sm:$0xff]  }
 0x49f   :  { %v5632_v5 = vpop.eup %5631  ;;  %v733_v9 = vmul.f32 %v5630_v1, %v6716_v43  ;;  %5100 = vmatprep.subr.bf16.mxu0 %v5475_v58  ;;  %v5476_v1 = vld [vmem:[%s8229_s7 + $0x18] sm:$0xff]  }
 0x4a0   :  { %v5634_v10 = vpop.eup %5633  ;;  %5643 = vrcp.f32 %v714_v4  ;;  %v715_v11 = vadd.f32 1.0, %v5632_v5 }
 0x4a1   :  { %v5636_v27 = vpop.eup %5635  ;;  %v734_v13 = vmul.f32 %v5634_v10, %v6722_v62  ;;  %v6753_v30 = vadd.f32 %v733_v9, %v528_v6  ;;  %5101 = vmatpush3.bf16.msra.mxu0 %v5475_v58  ;;  %v5477_v6 = vld [vmem:[%s8229_s7 + $0x20] sm:$0xff]  }
 0x4a2   :  { %v5638_v56 = vpop.eup %5637  ;;  %5645 = vrcp.f32 %v715_v11  ;;  %v716_v18 = vadd.f32 1.0, %v5636_v27  ;;  %5102 = vmatprep.subr.bf16.mxu0 %v5476_v1  ;;  %v5478_v11 = vld [vmem:[%s8229_s7 + $0x28] sm:$0xff]   ;;  %v5479_v27 = vld [vmem:[%s8229_s7 + $0x30] sm:$0xff]  }
 0x4a3   :  { %v6755_v23 = vadd.f32 %v734_v13, %v529_v39  ;;  %v735_v8 = vmul.f32 %v5638_v56, %v6714_v41  ;;  %v532_v41 = vmul.f32 0.70710677, %v6698_v42  ;;  %v5480_v39 = vld [vmem:[%s8229_s7 + $0x38] sm:$0xff]  }
 0x4a4   :  { %v5640_v43 = vpop.eup %5639  ;;  %5647 = vrcp.f32 %v716_v18 }
 0x4a5   :  { %v773_v21 = vpack.c.bf16 %v6755_v23, %v6753_v30  ;;  %v736_v62 = vmul.f32 %v5640_v43, %v6720_v53  ;;  %v6763_v22 = vadd.f32 %v735_v8, %v530_v55  ;;  %5103 = vmatpush3.bf16.msra.mxu0 %v5476_v1 }
 0x4a6   :  { %5104 = vmatprep.subr.bf16.mxu0 %v5477_v6 }
 0x4a7   :  { %5088 = vmatprep.mubr.bf16.mxu1 %v773_v21  ;;  %v6765_v26 = vadd.f32 %v736_v62, %v531_v12 }
 0x4a8   :  { %v5642_v47 = vpop.eup %5641 }
 0x4a9   :  { %v774_v16 = vpack.c.bf16 %v6765_v26, %v6763_v22  ;;  %v737_v48 = vmul.f32 %v5642_v47, %v6732_v0  ;;  %5105 = vmatpush3.bf16.msra.mxu0 %v5477_v6 }
 0x4aa   :  { %v5644_v34 = vpop.eup %5643  ;;  %5106 = vmatprep.subr.bf16.mxu0 %v5478_v11 }
 0x4ab   :  { %5089 = vmatmul.mubr.bf16.vlgmr.msra.gmra.mrb[8].mxu1 %v774_v16  ;;  %v738_v17 = vmul.f32 %v5644_v34, %v6738_v3  ;;  %v6773_v53 = vadd.f32 %v737_v48, %v532_v41 }
 0x4ac   :  { %v5646_v37 = vpop.eup %5645  ;;  %5121 = vmatpush3.bf16.msra.mxu1 %v6746_v7 }
 0x4ad   :  { %v6776_v36 = vadd.f32 %v738_v17, %v533_v35  ;;  %v739_v51 = vmul.f32 %v5646_v37, %v6730_v61  ;;  %5107 = vmatpush3.bf16.msra.mxu0 %v5478_v11 }
 0x4ae   :  { %v5648_v42 = vpop.eup %5647  ;;  %5108 = vmatprep.subr.bf16.mxu0 %v5479_v27 }
 0x4af   :  { %v775_v0 = vpack.c.bf16 %v6776_v36, %v6773_v53  ;;  %v740_v49 = vmul.f32 %v5648_v42, %v6736_v2  ;;  %v6784_v3 = vadd.f32 %v739_v51, %v534_v60 }
 0x4b1   :  { %5092 = vmatprep.mubr.bf16.mxu1 %v775_v0  ;;  %v6786_v52 = vadd.f32 %v740_v49, %v535_v54  ;;  %5109 = vmatpush3.bf16.msra.mxu0 %v5479_v27  ;;  %v749_v27 = vmul.f32 0.70710677, %v6753_v30 }
 0x4b2   :  { %5110 = vmatprep.subr.bf16.mxu0 %v5480_v39 }
 0x4b3   :  { %v776_v7 = vpack.c.bf16 %v6786_v52, %v6784_v3 }
 0x4b5   :  { %5093 = vmatmul.mubr.bf16.gmra.mrb[12].mxu1 %v776_v7  ;;  %5111 = vmatpush3.bf16.msra.mxu0 %v5480_v39 }
 0x4b6   :  { %5130 = vmatprep.subr.bf16.mxu0 %v6522_v31 }
 0x57e   :  { %v6796_v61 = vpop.f32.mrb[8].mxu1 }
 0x57f   :  { %v6798_v2 = vpop.f32.mrb[9].mxu1 }
 0x580   :  { %890 = vrot.lane.b32.xlu0 %v6798_v2, %s6329_s22  ;;  %v6802_v59 = vpop.f32.mrb[10].mxu1 }
 0x581   :  { %v6804_v57 = vpop.f32.mrb[11].mxu1 }
 0x582   :  { %892 = vrot.lane.b32.xlu1 %v6804_v57, %s6329_s22 }
 0x584   :  { %894 = vrot.lane.b32.xlu0 %v6796_v61, %s6329_s22 }
 0x586   :  { %896 = vrot.lane.b32.xlu1 %v6802_v59, %s6329_s22 }
 0x588   :  { %v6818_v4 = vpop.f32.mrb[12].mxu1 }
 0x589   :  { %v6820_v5 = vpop.f32.mrb[13].mxu1 }
 0x58a   :  { %898 = vrot.lane.b32.xlu0 %v6820_v5, %s6329_s22  ;;  %v6827_v9 = vpop.f32.mrb[14].mxu1 }
 0x58b   :  { %v6829_v10 = vpop.f32.mrb[15].mxu1 }
 0x58c   :  { %900 = vrot.lane.b32.xlu1 %v6829_v10, %s6329_s22 }
 0x58e   :  { %902 = vrot.lane.b32.xlu0 %v6818_v4, %s6329_s22 }
 0x590   :  { %904 = vrot.lane.b32.xlu1 %v6827_v9, %s6329_s22 }
 0x5f2   :  { %v891_v13 = vpop.permute.xlu0 %890 }
 0x5f3   :  { %v4521_v56 = vmul.f32 -1.442695, %v891_v13 }
 0x5f4   :  { %v893_v18 = vpop.permute.xlu1 %892 }
 0x5f5   :  { %5649 = vpow2.f32 %v4521_v56  ;;  %v4522_v55 = vmul.f32 -1.442695, %v893_v18 }
 0x5f6   :  { %v895_v8 = vpop.permute.xlu0 %894 }
 0x5f7   :  { %5651 = vpow2.f32 %v4522_v55  ;;  %v4523_v43 = vmul.f32 -1.442695, %v895_v8  ;;  %v750_v55 = vmul.f32 0.70710677, %v6755_v23 }
 0x5f8   :  { %v897_v21 = vpop.permute.xlu1 %896 }
 0x5f9   :  { %5653 = vpow2.f32 %v4523_v43  ;;  %v4524_v12 = vmul.f32 -1.442695, %v897_v21 }
 0x5fb   :  { %5655 = vpow2.f32 %v4524_v12 }
 0x5fc   :  { %v899_v62 = vpop.permute.xlu0 %898 }
 0x5fd   :  { %v4525_v47 = vmul.f32 -1.442695, %v899_v62 }
 0x5fe   :  { %v901_v16 = vpop.permute.xlu1 %900 }
 0x5ff   :  { %v5650_v41 = vpop.eup %5649  ;;  %5657 = vpow2.f32 %v4525_v47  ;;  %v4526_v48 = vmul.f32 -1.442695, %v901_v16  ;;  %v751_v47 = vmul.f32 0.70710677, %v6763_v22  ;;  %v754_v22 = vmul.f32 0.70710677, %v6776_v36 }
 0x600   :  { %v930_v34 = vadd.f32 1.0, %v5650_v41  ;;  %v903_v35 = vpop.permute.xlu0 %902  ;;  %v752_v41 = vmul.f32 0.70710677, %v6765_v26 }
 0x601   :  { %v5652_v17 = vpop.eup %5651  ;;  %5659 = vpow2.f32 %v4526_v48  ;;  %v4527_v37 = vmul.f32 -1.442695, %v903_v35 }
 0x602   :  { %5661 = vrcp.f32 %v930_v34  ;;  %v931_v60 = vadd.f32 1.0, %v5652_v17  ;;  %v905_v51 = vpop.permute.xlu1 %904  ;;  %v753_v17 = vmul.f32 0.70710677, %v6773_v53 }
 0x603   :  { %v5654_v42 = vpop.eup %5653  ;;  %5663 = vpow2.f32 %v4527_v37  ;;  %v4528_v0 = vmul.f32 -1.442695, %v905_v51 }
 0x604   :  { %5665 = vrcp.f32 %v931_v60  ;;  %v932_v54 = vadd.f32 1.0, %v5654_v42 }
 0x605   :  { %v5656_v49 = vpop.eup %5655  ;;  %5667 = vpow2.f32 %v4528_v0 }
 0x606   :  { %5669 = vrcp.f32 %v932_v54  ;;  %v933_v7 = vadd.f32 1.0, %v5656_v49 }
 0x608   :  { %5671 = vrcp.f32 %v933_v7 }
 0x609   :  { %v5658_v50 = vpop.eup %5657 }
 0x60a   :  { %v934_v63 = vadd.f32 1.0, %v5658_v50 }
 0x60b   :  { %v5660_v58 = vpop.eup %5659 }
 0x60c   :  { %v5662_v1 = vpop.eup %5661  ;;  %5673 = vrcp.f32 %v934_v63  ;;  %v935_v6 = vadd.f32 1.0, %v5660_v58 }
 0x60d   :  { %v5664_v11 = vpop.eup %5663  ;;  %v954_v39 = vmul.f32 %v5662_v1, %v6798_v2 }
 0x60e   :  { %v5666_v13 = vpop.eup %5665  ;;  %5675 = vrcp.f32 %v935_v6  ;;  %v936_v56 = vadd.f32 1.0, %v5664_v11 }
 0x60f   :  { %v5668_v18 = vpop.eup %5667  ;;  %v955_v8 = vmul.f32 %v5666_v13, %v6804_v57  ;;  %v962_v43 = vadd.f32 %v954_v39, %v749_v27 }
 0x610   :  { %v5670_v21 = vpop.eup %5669  ;;  %5677 = vrcp.f32 %v936_v56  ;;  %v937_v12 = vadd.f32 1.0, %v5668_v18 }
 0x611   :  { %v963_v62 = vadd.f32 %v955_v8, %v750_v55  ;;  %v956_v16 = vmul.f32 %v5670_v21, %v6796_v61 }
 0x612   :  { %v5672_v30 = vpop.eup %5671  ;;  %5679 = vrcp.f32 %v937_v12 }
 0x613   :  { %v986_v2 = vpack.c.bf16 %v963_v62, %v962_v43  ;;  %v957_v48 = vmul.f32 %v5672_v30, %v6802_v59  ;;  %v964_v34 = vadd.f32 %v956_v16, %v751_v47  ;;  %v755_v59 = vmul.f32 0.70710677, %v6784_v3 }
 0x615   :  { %5112 = vmatprep.mubr.bf16.mxu0 %v986_v2  ;;  %v965_v23 = vadd.f32 %v957_v48, %v752_v41 }
 0x616   :  { %v5674_v57 = vpop.eup %5673 }
 0x617   :  { %v987_v35 = vpack.c.bf16 %v965_v23, %v964_v34  ;;  %v958_v37 = vmul.f32 %v5674_v57, %v6820_v5  ;;  %v756_v5 = vmul.f32 0.70710677, %v6786_v52 }
 0x618   :  { %v5676_v60 = vpop.eup %5675 }
 0x619   :  { %5113 = vmatmul.mubr.bf16.vlgmr.msra.gmra.mrb[16].mxu0 %v987_v35  ;;  %v959_v61 = vmul.f32 %v5676_v60, %v6829_v10  ;;  %v966_v51 = vadd.f32 %v958_v37, %v753_v17 }
 0x61a   :  { %v5678_v42 = vpop.eup %5677  ;;  %5131 = vmatpush3.bf16.msra.mxu0 %v6522_v31 }
 0x61b   :  { %v967_v26 = vadd.f32 %v959_v61, %v754_v22  ;;  %v960_v0 = vmul.f32 %v5678_v42, %v6818_v4  ;;  %5132 = vmatprep.subr.bf16.mxu0 %v6526_v32 }
 0x61c   :  { %v5680_v53 = vpop.eup %5679 }
 0x61d   :  { %v988_v54 = vpack.c.bf16 %v967_v26, %v966_v51  ;;  %v961_v49 = vmul.f32 %v5680_v53, %v6827_v9  ;;  %v968_v36 = vadd.f32 %v960_v0, %v755_v59 }
 0x61e   :  { %5133 = vmatpush3.bf16.msra.mxu0 %v6526_v32 }
 0x61f   :  { %5116 = vmatprep.mubr.bf16.mxu0 %v988_v54  ;;  %v969_v10 = vadd.f32 %v961_v49, %v756_v5  ;;  %5134 = vmatprep.subr.bf16.mxu0 %v6530_v33 }
 0x621   :  { %v989_v31 = vpack.c.bf16 %v969_v10, %v968_v36 }
 0x622   :  { %5135 = vmatpush3.bf16.msra.mxu0 %v6530_v33 }
 0x623   :  { %5117 = vmatmul.mubr.bf16.gmra.mrb[20].mxu0 %v989_v31  ;;  %5136 = vmatprep.subr.bf16.mxu0 %v6546_v38 }
 0x626   :  { %5137 = vmatpush3.bf16.msra.mxu0 %v6546_v38 }
 0x627   :  { %5138 = vmatprep.subr.bf16.mxu0 %v6556_v40 }
 0x62a   :  { %5139 = vmatpush3.bf16.msra.mxu0 %v6556_v40 }
 0x62b   :  { %5140 = vmatprep.subr.bf16.mxu0 %v6570_v44 }
 0x62e   :  { %5141 = vmatpush3.bf16.msra.mxu0 %v6570_v44 }
 0x62f   :  { %5142 = vmatprep.subr.bf16.mxu0 %v6578_v45 }
 0x632   :  { %5143 = vmatpush3.bf16.msra.mxu0 %v6578_v45 }
 0x633   :  { %5144 = vmatprep.subr.bf16.mxu0 %v6582_v46 }
 0x636   :  { %5145 = vmatpush3.bf16.msra.mxu0 %v6582_v46 }
 0x6ec   :  { %v6878_v32 = vpop.f32.mrb[16].mxu0 }
 0x6ed   :  { %v6880_v33 = vpop.f32.mrb[17].mxu0  ;;  %v1106_v45 = vsel %vm157_vm0, %v6878_v32, 0.0 }
 0x6ee   :  { %v6882_v38 = vpop.f32.mrb[18].mxu0  ;;  %v1103_v40 = vsel %vm157_vm0, %v6880_v33, 0.0 }
 0x6ef   :  { %v6884_v3 = vpop.f32.mrb[19].mxu0  ;;  %v1108_v46 = vsel %vm157_vm0, %v6882_v38, 0.0 }
 0x6f0   :  { %v1104_v44 = vsel %vm157_vm0, %v6884_v3, 0.0 }
 0x6f1   :  { %v1105_v52 = vadd.f32 %v1104_v44, %v1103_v40 }
 0x6f3   :  { %v1107_v4 = vadd.f32 %v1106_v45, %v1105_v52 }
 0x6f5   :  { %v1109_v9 = vadd.f32 %v1108_v46, %v1107_v4 }
 0x6f6   :  { %v6894_v7 = vpop.f32.mrb[20].mxu0 }
 0x6f7   :  { %v6896_v50 = vpop.f32.mrb[21].mxu0  ;;  %v1114_v39 = vsel %vm157_vm0, %v6894_v7, 0.0 }
 0x6f8   :  { %v1110_v63 = vsel %vm157_vm0, %v6896_v50, 0.0  ;;  %v6900_v58 = vpop.f32.mrb[22].mxu0 }
 0x6f9   :  { %v1111_v1 = vadd.f32 %v1110_v63, %v1109_v9  ;;  %v6902_v6 = vpop.f32.mrb[23].mxu0  ;;  %v1116_v56 = vsel %vm157_vm0, %v6900_v58, 0.0 }
 0x6fa   :  { %v1112_v11 = vsel %vm157_vm0, %v6902_v6, 0.0 }
 0x6fb   :  { %v1113_v27 = vadd.f32 %v1112_v11, %v1111_v1 }
 0x6fd   :  { %v1115_v13 = vadd.f32 %v1114_v39, %v1113_v27 }
 0x6ff   :  { %v1117_v18 = vadd.f32 %v1116_v56, %v1115_v13  ;;  %v1172_v56 = vlaneseq }
 0x701   :  { %v1118_v55 = vrot.slane %v1117_v18, 4 }
 0x703   :  { %v1119_v8 = vadd.f32 %v1118_v55, %v1117_v18  ;;  %v1173_v18 = vshrl.u32 %v1172_v56, 7  ;;  %v1164_v55 = vld [vmem:[%s8230_s8] sm:$0x1] }
 0x705   :  { %v1120_v43 = vrot.slane %v1119_v8, 2 }
 0x707   :  { %v1121_v21 = vadd.f32 %v1120_v43, %v1119_v8  ;;  %v6929_v8 = vsub.s32 0, %v1173_v18 }
 0x709   :  { %v1122_v12 = vrot.slane %v1121_v21, 1 }
 0x70b   :  { %v1123_v62 = vadd.f32 %v1122_v12, %v1121_v21  ;;  %v1168_v12 = vld [vmem:[%s8231_s9] sm:$0x1] }
 0x70d   :  { %v1125_v47 = vmul.f32 0.015625, %v1123_v62 }
 0x70f   :  { %v1126_v16 = vsub.f32 %v6880_v33, %v1125_v47  ;;  %v1127_v30 = vsub.f32 %v6884_v3, %v1125_v47  ;;  %v1128_v2 = vsub.f32 %v6878_v32, %v1125_v47  ;;  %v1129_v41 = vsub.f32 %v6882_v38, %v1125_v47 }
 0x710   :  { %v1130_v48 = vsub.f32 %v6896_v50, %v1125_v47  ;;  %v1131_v34 = vsub.f32 %v6902_v6, %v1125_v47  ;;  %v1132_v23 = vsub.f32 %v6894_v7, %v1125_v47  ;;  %v1133_v57 = vsub.f32 %v6900_v58, %v1125_v47 }
 0x711   :  { %v1134_v35 = vmul.f32 %v1126_v16, %v1126_v16  ;;  %v1135_v17 = vmul.f32 %v1127_v30, %v1127_v30  ;;  %v1136_v37 = vmul.f32 %v1128_v2, %v1128_v2  ;;  %v1137_v60 = vmul.f32 %v1129_v41, %v1129_v41 }
 0x712   :  { %v1138_v42 = vmul.f32 %v1130_v48, %v1130_v48  ;;  %v1139_v0 = vmul.f32 %v1131_v34, %v1131_v34  ;;  %v1140_v5 = vmul.f32 %v1132_v23, %v1132_v23  ;;  %v1141_v10 = vmul.f32 %v1133_v57, %v1133_v57 }
 0x713   :  { %v1142_v22 = vsel %vm157_vm0, %v1134_v35, 0.0  ;;  %v1143_v61 = vsel %vm157_vm0, %v1135_v17, 0.0  ;;  %v1145_v26 = vsel %vm157_vm0, %v1136_v37, 0.0  ;;  %v1147_v53 = vsel %vm157_vm0, %v1137_v60, 0.0 }
 0x714   :  { %v1144_v51 = vadd.f32 %v1143_v61, %v1142_v22  ;;  %v1149_v49 = vsel %vm157_vm0, %v1138_v42, 0.0  ;;  %v1151_v31 = vsel %vm157_vm0, %v1139_v0, 0.0  ;;  %v1153_v44 = vsel %vm157_vm0, %v1140_v5, 0.0 }
 0x715   :  { %v1155_v45 = vsel %vm157_vm0, %v1141_v10, 0.0 }
 0x716   :  { %v1146_v59 = vadd.f32 %v1145_v26, %v1144_v51 }
 0x718   :  { %v1148_v54 = vadd.f32 %v1147_v53, %v1146_v59 }
 0x71a   :  { %v1150_v36 = vadd.f32 %v1149_v49, %v1148_v54 }
 0x71c   :  { %v1152_v40 = vadd.f32 %v1151_v31, %v1150_v36 }
 0x71e   :  { %v1154_v52 = vadd.f32 %v1153_v44, %v1152_v40 }
 0x720   :  { %v1156_v4 = vadd.f32 %v1155_v45, %v1154_v52 }
 0x722   :  { %v1157_v46 = vrot.slane %v1156_v4, 4 }
 0x724   :  { %v1158_v9 = vadd.f32 %v1157_v46, %v1156_v4 }
 0x726   :  { %v1159_v63 = vrot.slane %v1158_v9, 2 }
 0x728   :  { %v1160_v1 = vadd.f32 %v1159_v63, %v1158_v9 }
 0x72a   :  { %v1161_v11 = vrot.slane %v1160_v1, 1 }
 0x72c   :  { %v1162_v27 = vadd.f32 %v1161_v11, %v1160_v1 }
 0x72e   :  { %v1163_v39 = vmul.f32 0.015625, %v1162_v27 }
 0x730   :  { %v1165_v13 = vadd.f32 1e-05, %v1163_v39 }
 0x732   :  { %5681 = vrsqrt.f32 %v1165_v13 }
 0x73c   :  { %v5682_v43 = vpop.eup %5681 }
 0x73d   :  { %v1167_v21 = vmul.f32 %v5682_v43, %v1164_v55 }
 0x73f   :  { %v1169_v62 = vmul.f32 %v1167_v21, %v1125_v47  ;;  %v1175_v16 = vrot.slane %v1167_v21, %v6929_v8 }
 0x741   :  { %v1170_v30 = vsub.f32 %v1168_v12, %v1169_v62  ;;  %v1182_v2 = vmul.f32 %v1175_v16, %v6902_v6  ;;  %v1178_v41 = vmul.f32 %v1175_v16, %v6884_v3  ;;  %v1177_v48 = vmul.f32 %v1175_v16, %v6880_v33 }
 0x742   :  { %v1181_v34 = vmul.f32 %v1175_v16, %v6896_v50  ;;  %v1179_v23 = vmul.f32 %v6878_v32, %v1175_v16  ;;  %v1183_v57 = vmul.f32 %v6894_v7, %v1175_v16  ;;  %v1180_v35 = vmul.f32 %v6882_v38, %v1175_v16 }
 0x743   :  { %v1189_v17 = vrot.slane %v1170_v30, %v6929_v8  ;;  %v1184_v47 = vmul.f32 %v6900_v58, %v1175_v16 }
 0x745   :  { %v1192_v37 = vadd.f32 %v1189_v17, %v1178_v41  ;;  %v1191_v60 = vadd.f32 %v1189_v17, %v1177_v48  ;;  %v1195_v22 = vadd.f32 %v1189_v17, %v1181_v34  ;;  %v1193_v6 = vadd.f32 %v1189_v17, %v1179_v23 }
 0x746   :  { %v1197_v61 = vadd.f32 %v1189_v17, %v1183_v57  ;;  %v1194_v3 = vadd.f32 %v1189_v17, %v1180_v35  ;;  %v1196_v51 = vadd.f32 %v1189_v17, %v1182_v2  ;;  %v1198_v33 = vadd.f32 %v1189_v17, %v1184_v47 }
 0x747   :  { %v1202_v50 = vsel %vm157_vm0, %v1192_v37, -inf  ;;  %v1199_v32 = vsel %vm157_vm0, %v1191_v60, -inf  ;;  %v1211_v38 = vsel %vm157_vm0, %v1195_v22, -inf  ;;  %v1205_v7 = vsel %vm157_vm0, %v1193_v6, -inf }
 0x748   :  { %1203 = vmax.xlane.f32.xlu1 %v1202_v50  ;;  %1200 = vmax.xlane.f32.xlu0 %v1199_v32  ;;  %v1217_v58 = vsel %vm157_vm0, %v1197_v61, -inf  ;;  %v1208_v42 = vsel %vm157_vm0, %v1194_v3, -inf  ;;  %v1214_v26 = vsel %vm157_vm0, %v1196_v51, -inf  ;;  %v1220_v59 = vsel %vm157_vm0, %v1198_v33, -inf }
 0x74c   :  { %1212 = vmax.xlane.f32.xlu1 %v1211_v38  ;;  %1206 = vmax.xlane.f32.xlu0 %v1205_v7 }
 0x750   :  { %1218 = vmax.xlane.f32.xlu1 %v1217_v58  ;;  %1209 = vmax.xlane.f32.xlu0 %v1208_v42 }
 0x754   :  { %1215 = vmax.xlane.f32.xlu0 %v1214_v26 }
 0x758   :  { %1221 = vmax.xlane.f32.xlu0 %v1220_v59 }
 0x7d5   :  { %v1204_v0 = vpop.xlane.xlu1 %1203  ;;  %v1201_v53 = vpop.xlane.xlu0 %1200 }
 0x7d6   :  { %v1224_v54 = vsub.f32 %v1192_v37, %v1204_v0  ;;  %v1223_v5 = vsub.f32 %v1191_v60, %v1201_v53 }
 0x7d8   :  { %v1233_v49 = vmul.f32 1.442695, %v1224_v54  ;;  %v1231_v36 = vmul.f32 1.442695, %v1223_v5 }
 0x7d9   :  { %v1213_v10 = vpop.xlane.xlu1 %1212  ;;  %v1207_v31 = vpop.xlane.xlu0 %1206 }
 0x7da   :  { %5683 = vpow2.f32 %v1233_v49  ;;  %v1227_v40 = vsub.f32 %v1195_v22, %v1213_v10  ;;  %v1225_v44 = vsub.f32 %v1193_v6, %v1207_v31 }
 0x7db   :  { %5685 = vpow2.f32 %v1231_v36 }
 0x7dc   :  { %v1235_v52 = vmul.f32 1.442695, %v1225_v44  ;;  %v1239_v45 = vmul.f32 1.442695, %v1227_v40 }
 0x7dd   :  { %v1219_v4 = vpop.xlane.xlu1 %1218  ;;  %v1210_v46 = vpop.xlane.xlu0 %1209 }
 0x7de   :  { %v1229_v9 = vsub.f32 %v1197_v61, %v1219_v4  ;;  %v1226_v63 = vsub.f32 %v1194_v3, %v1210_v46  ;;  %5687 = vpow2.f32 %v1235_v52 }
 0x7df   :  { %5689 = vpow2.f32 %v1239_v45 }
 0x7e0   :  { %v1237_v1 = vmul.f32 1.442695, %v1226_v63  ;;  %v1243_v11 = vmul.f32 1.442695, %v1229_v9 }
 0x7e1   :  { %v1216_v27 = vpop.xlane.xlu0 %1215 }
 0x7e2   :  { %v1228_v39 = vsub.f32 %v1196_v51, %v1216_v27  ;;  %5691 = vpow2.f32 %v1237_v1 }
 0x7e3   :  { %5693 = vpow2.f32 %v1243_v11 }
 0x7e4   :  { %v5684_v13 = vpop.eup %5683  ;;  %v1241_v56 = vmul.f32 1.442695, %v1228_v39 }
 0x7e5   :  { %v5686_v18 = vpop.eup %5685  ;;  %v1222_v55 = vpop.xlane.xlu0 %1221  ;;  %v1250_v43 = vsel %vm157_vm0, %v5684_v13, 0.0 }
 0x7e6   :  { %5695 = vpow2.f32 %v1241_v56  ;;  %v1230_v21 = vsub.f32 %v1198_v33, %v1222_v55  ;;  %1251 = vadd.xlane.f32.xlu0 %v1250_v43  ;;  %v1247_v12 = vsel %vm157_vm0, %v5686_v18, 0.0 }
 0x7e7   :  { %1248 = vadd.xlane.f32.xlu1 %v1247_v12 }
 0x7e8   :  { %v1245_v62 = vmul.f32 1.442695, %v1230_v21  ;;  %v5688_v16 = vpop.eup %5687 }
 0x7e9   :  { %v1253_v30 = vsel %vm157_vm0, %v5688_v16, 0.0  ;;  %v5690_v2 = vpop.eup %5689 }
 0x7ea   :  { %5697 = vpow2.f32 %v1245_v62  ;;  %v1259_v48 = vsel %vm157_vm0, %v5690_v2, 0.0 }
 0x7eb   :  { %1254 = vadd.xlane.f32.xlu1 %v1253_v30 }
 0x7ec   :  { %v5692_v41 = vpop.eup %5691 }
 0x7ed   :  { %v1256_v34 = vsel %vm157_vm0, %v5692_v41, 0.0  ;;  %v5694_v23 = vpop.eup %5693 }
 0x7ee   :  { %1257 = vadd.xlane.f32.xlu0 %v1256_v34  ;;  %v1265_v17 = vsel %vm157_vm0, %v5694_v23, 0.0 }
 0x7ef   :  { %1260 = vadd.xlane.f32.xlu1 %v1259_v48 }
 0x7f0   :  { %v5696_v57 = vpop.eup %5695 }
 0x7f1   :  { %v1262_v35 = vsel %vm157_vm0, %v5696_v57, 0.0 }
 0x7f2   :  { %1263 = vadd.xlane.f32.xlu0 %v1262_v35 }
 0x7f3   :  { %1266 = vadd.xlane.f32.xlu1 %v1265_v17 }
 0x7f4   :  { %v5698_v47 = vpop.eup %5697 }
 0x7f5   :  { %v1268_v37 = vsel %vm157_vm0, %v5698_v47, 0.0 }
 0x7f6   :  { %1269 = vadd.xlane.f32.xlu0 %v1268_v37 }
 0x873   :  { %v1252_v60 = vpop.xlane.xlu0 %1251 }
 0x874   :  { %v1249_v22 = vpop.xlane.xlu1 %1248  ;;  %5699 = vrcp.f32 %v1252_v60 }
 0x875   :  { %5701 = vrcp.f32 %v1249_v22 }
 0x878   :  { %v1255_v6 = vpop.xlane.xlu1 %1254 }
 0x879   :  { %5703 = vrcp.f32 %v1255_v6 }
 0x87b   :  { %v1258_v3 = vpop.xlane.xlu0 %1257 }
 0x87c   :  { %v1261_v61 = vpop.xlane.xlu1 %1260 }
 0x87d   :  { %5705 = vrcp.f32 %v1261_v61 }
 0x87e   :  { %v5700_v51 = vpop.eup %5699  ;;  %5707 = vrcp.f32 %v1258_v3 }
 0x87f   :  { %v5702_v33 = vpop.eup %5701  ;;  %v6960_v50 = vmul.f32 %v5700_v51, %v5684_v13  ;;  %v1264_v38 = vpop.xlane.xlu0 %1263 }
 0x880   :  { %v1267_v32 = vpop.xlane.xlu1 %1266  ;;  %v6962_v7 = vmul.f32 %v5702_v33, %v5686_v18 }
 0x881   :  { %5709 = vrcp.f32 %v1267_v32  ;;  %v1288_v58 = vmul.f32 %v6960_v50, %v6493_v15 }
 0x882   :  { %5711 = vrcp.f32 %v1264_v38  ;;  %v1287_v42 = vmul.f32 %v6962_v7, %v6491_v14 }
 0x883   :  { %v5704_v26 = vpop.eup %5703  ;;  %v1270_v59 = vpop.xlane.xlu0 %1269 }
 0x884   :  { %v1295_v0 = vpack.c.bf16 %v1288_v58, %v1287_v42  ;;  %5713 = vrcp.f32 %v1270_v59  ;;  %v6969_v54 = vmul.f32 %v5704_v26, %v5688_v16 }
 0x886   :  { %5122 = vmatprep.mubr.msk.bf16.mxu1 %vm157_vm0, %v1295_v0  ;;  %v1289_v10 = vmul.f32 %v6969_v54, %v6498_v19 }
 0x887   :  { %v5706_v53 = vpop.eup %5705 }
 0x888   :  { %v5708_v5 = vpop.eup %5707  ;;  %v6977_v40 = vmul.f32 %v5706_v53, %v5690_v2 }
 0x889   :  { %v6971_v49 = vmul.f32 %v5708_v5, %v5692_v41 }
 0x88a   :  { %v1291_v9 = vmul.f32 %v6977_v40, %v6504_v24 }
 0x88b   :  { %v5710_v36 = vpop.eup %5709  ;;  %v1290_v31 = vmul.f32 %v6971_v49, %v6500_v20 }
 0x88c   :  { %v5712_v44 = vpop.eup %5711  ;;  %v6981_v4 = vmul.f32 %v5710_v36, %v5694_v23 }
 0x88d   :  { %v1296_v52 = vpack.c.bf16 %v1290_v31, %v1289_v10  ;;  %v6979_v45 = vmul.f32 %v5712_v44, %v5696_v57 }
 0x88e   :  { %v5714_v46 = vpop.eup %5713  ;;  %v1293_v27 = vmul.f32 %v6981_v4, %v6514_v28 }
 0x88f   :  { %5123 = vmatmul.mubr.msk.bf16.vlgmr.msra.gmra.mrb[16].mxu1 %vm157_vm0, %v1296_v52  ;;  %v1292_v63 = vmul.f32 %v6979_v45, %v6506_v25  ;;  %v6988_v1 = vmul.f32 %v5714_v46, %v5698_v47 }
 0x891   :  { %v1297_v11 = vpack.c.bf16 %v1292_v63, %v1291_v9  ;;  %v1294_v39 = vmul.f32 %v6988_v1, %v6516_v29 }
 0x893   :  { %5126 = vmatprep.mubr.msk.bf16.mxu1 %vm157_vm0, %v1297_v11  ;;  %v1298_v13 = vpack.c.bf16 %v1294_v39, %v1293_v27 }
 0x897   :  { %5127 = vmatmul.mubr.msk.bf16.gmra.mrb[20].mxu1 %vm157_vm0, %v1298_v13 }
 0x962   :  { %v6996_v56 = vpop.f32.mrb[16].mxu1 }
 0x963   :  { %v1345_v18 = vpop.f32.mrb[17].mxu1 }
 0x964   :  { %1376 = vrot.lane.b32.xlu1 %v1345_v18, %s6329_s22  ;;  %v6999_v55 = vpop.f32.mrb[18].mxu1 }
 0x965   :  { %v1348_v43 = vpop.f32.mrb[19].mxu1 }
 0x966   :  { %1378 = vrot.lane.b32.xlu0 %v1348_v43, %s6329_s22 }
 0x968   :  { %1380 = vrot.lane.b32.xlu1 %v6996_v56, %s6329_s22 }
 0x96a   :  { %v7004_v21 = vpop.f32.mrb[20].mxu1 }
 0x96b   :  { %v7006_v12 = vpop.f32.mrb[21].mxu1 }
 0x96c   :  { %1382 = vrot.lane.b32.xlu1 %v6999_v55, %s6329_s22  ;;  %1384 = vrot.lane.b32.xlu0 %v7006_v12, %s6329_s22  ;;  %v7012_v62 = vpop.f32.mrb[22].mxu1 }
 0x96d   :  { %v7014_v16 = vpop.f32.mrb[23].mxu1 }
 0x970   :  { %1388 = vrot.lane.b32.xlu0 %v7004_v21, %s6329_s22  ;;  %1386 = vrot.lane.b32.xlu1 %v7014_v16, %s6329_s22 }
 0x974   :  { %1390 = vrot.lane.b32.xlu1 %v7012_v62, %s6329_s22 }
 0x9d6   :  { %v1377_v30 = vpop.permute.xlu1 %1376 }
 0x9d7   :  { %v4541_v2 = vmul.f32 -1.442695, %v1377_v30 }
 0x9d8   :  { %v1379_v41 = vpop.permute.xlu0 %1378 }
 0x9d9   :  { %5715 = vpow2.f32 %v4541_v2  ;;  %v4542_v48 = vmul.f32 -1.442695, %v1379_v41 }
 0x9da   :  { %v1381_v34 = vpop.permute.xlu1 %1380 }
 0x9db   :  { %5717 = vpow2.f32 %v4542_v48  ;;  %v4543_v23 = vmul.f32 -1.442695, %v1381_v34 }
 0x9dd   :  { %5719 = vpow2.f32 %v4543_v23 }
 0x9de   :  { %v1383_v57 = vpop.permute.xlu1 %1382  ;;  %v1385_v35 = vpop.permute.xlu0 %1384 }
 0x9df   :  { %v4544_v17 = vmul.f32 -1.442695, %v1383_v57  ;;  %v4545_v47 = vmul.f32 -1.442695, %v1385_v35 }
 0x9e1   :  { %5721 = vpow2.f32 %v4544_v17 }
 0x9e2   :  { %5723 = vpow2.f32 %v4545_v47  ;;  %v1387_v37 = vpop.permute.xlu1 %1386  ;;  %v1389_v60 = vpop.permute.xlu0 %1388 }
 0x9e3   :  { %v5716_v22 = vpop.eup %5715  ;;  %v4546_v6 = vmul.f32 -1.442695, %v1387_v37  ;;  %v4547_v61 = vmul.f32 -1.442695, %v1389_v60  ;;  %v5483_v60 = vld [vmem:[%s8227_s5 + $0x50] sm:$0xff]  }
 0x9e4   :  { %v1416_v3 = vadd.f32 1.0, %v5716_v22  ;;  %v5484_v22 = vld [vmem:[%s8227_s5 + $0x58] sm:$0xff]  }
 0x9e5   :  { %v5718_v51 = vpop.eup %5717  ;;  %5725 = vpow2.f32 %v4546_v6 }
 0x9e6   :  { %5727 = vrcp.f32 %v1416_v3  ;;  %v1417_v33 = vadd.f32 1.0, %v5718_v51  ;;  %v1391_v32 = vpop.permute.xlu1 %1390 }
 0x9e7   :  { %v5720_v38 = vpop.eup %5719  ;;  %5729 = vpow2.f32 %v4547_v61  ;;  %v4548_v58 = vmul.f32 -1.442695, %v1391_v32  ;;  %v5486_v32 = vld [vmem:[%s8227_s5 + $0x68] sm:$0xff]  }
 0x9e8   :  { %5731 = vrcp.f32 %v1417_v33  ;;  %v1418_v42 = vadd.f32 1.0, %v5720_v38  ;;  %v5485_v33 = vld [vmem:[%s8227_s5 + $0x60] sm:$0xff]   ;;  %v5487_v38 = vld [vmem:[%s8227_s5 + $0x70] sm:$0xff]  }
 0x9e9   :  { %5733 = vpow2.f32 %v4548_v58  ;;  %v5488_v58 = vld [vmem:[%s8227_s5 + $0x78] sm:$0xff]  }
 0x9ea   :  { %5735 = vrcp.f32 %v1418_v42 }
 0x9eb   :  { %v5722_v26 = vpop.eup %5721 }
 0x9ec   :  { %v5724_v59 = vpop.eup %5723  ;;  %v1419_v0 = vadd.f32 1.0, %v5722_v26 }
 0x9ed   :  { %v1420_v53 = vadd.f32 1.0, %v5724_v59 }
 0x9ee   :  { %5737 = vrcp.f32 %v1419_v0 }
 0x9ef   :  { %v5726_v5 = vpop.eup %5725  ;;  %5739 = vrcp.f32 %v1420_v53 }
 0x9f0   :  { %v5728_v36 = vpop.eup %5727  ;;  %v1421_v10 = vadd.f32 1.0, %v5726_v5 }
 0x9f1   :  { %v5730_v31 = vpop.eup %5729  ;;  %v7022_v9 = vmul.f32 %v5728_v36, %v1345_v18 }
 0x9f2   :  { %v5732_v44 = vpop.eup %5731  ;;  %5741 = vrcp.f32 %v1421_v10  ;;  %v1422_v52 = vadd.f32 1.0, %v5730_v31 }
 0x9f3   :  { %v5734_v46 = vpop.eup %5733  ;;  %v7024_v63 = vmul.f32 %v5732_v44, %v1348_v43 }
 0x9f4   :  { %5743 = vrcp.f32 %v1422_v52  ;;  %v1423_v11 = vadd.f32 1.0, %v5734_v46  ;;  %v5736_v39 = vpop.eup %5735 }
 0x9f5   :  { %v1456_v27 = vpack.c.bf16 %v7024_v63, %v7022_v9  ;;  %v7029_v30 = vmul.f32 %v5736_v39, %v6996_v56 }
 0x9f6   :  { %5745 = vrcp.f32 %v1423_v11 }
 0x9f7   :  { %5146 = vmatprep.mubr.bf16.mxu0 %v1456_v27 }
 0x9f8   :  { %v5738_v13 = vpop.eup %5737 }
 0x9f9   :  { %v7032_v2 = vmul.f32 %v5738_v13, %v6999_v55  ;;  %v5740_v41 = vpop.eup %5739 }
 0x9fa   :  { %v7037_v48 = vmul.f32 %v5740_v41, %v7006_v12  ;;  %v5481_v12 = vld [vmem:[%s8227_s5 + $0x40] sm:$0xff]  }
 0x9fb   :  { %v1457_v18 = vpack.c.bf16 %v7032_v2, %v7029_v30  ;;  %5154 = vmatprep.subr.bf16.mxu1 %v5481_v12 }
 0x9fc   :  { %v5742_v43 = vpop.eup %5741  ;;  %5155 = vmatpush3.bf16.msra.mxu1 %v5481_v12 }
 0x9fd   :  { %5147 = vmatmul.mubr.bf16.vlgmr.msra.gmra.mrb[24].mxu0 %v1457_v18  ;;  %v7040_v34 = vmul.f32 %v5742_v43, %v7014_v16  ;;  %v5482_v16 = vld [vmem:[%s8227_s5 + $0x48] sm:$0xff]  }
 0x9fe   :  { %v5744_v23 = vpop.eup %5743  ;;  %5156 = vmatprep.subr.bf16.mxu1 %v5482_v16 }
 0x9ff   :  { %v1458_v56 = vpack.c.bf16 %v7040_v34, %v7037_v48  ;;  %v7045_v55 = vmul.f32 %v5744_v23, %v7004_v21 }
 0xa00   :  { %v5746_v57 = vpop.eup %5745  ;;  %5157 = vmatpush3.bf16.msra.mxu1 %v5482_v16 }
 0xa01   :  { %5150 = vmatprep.mubr.bf16.mxu0 %v1458_v56  ;;  %v7048_v35 = vmul.f32 %v5746_v57, %v7012_v62  ;;  %5158 = vmatprep.subr.bf16.mxu1 %v5483_v60 }
 0xa03   :  { %v1459_v17 = vpack.c.bf16 %v7048_v35, %v7045_v55 }
 0xa04   :  { %5159 = vmatpush3.bf16.msra.mxu1 %v5483_v60 }
 0xa05   :  { %5151 = vmatmul.mubr.bf16.gmra.mrb[28].mxu0 %v1459_v17  ;;  %5160 = vmatprep.subr.bf16.mxu1 %v5484_v22 }
 0xa08   :  { %5161 = vmatpush3.bf16.msra.mxu1 %v5484_v22 }
 0xa09   :  { %5162 = vmatprep.subr.bf16.mxu1 %v5485_v33 }
 0xa0c   :  { %5163 = vmatpush3.bf16.msra.mxu1 %v5485_v33 }
 0xa0d   :  { %5164 = vmatprep.subr.bf16.mxu1 %v5486_v32 }
 0xa10   :  { %5165 = vmatpush3.bf16.msra.mxu1 %v5486_v32 }
 0xa11   :  { %5166 = vmatprep.subr.bf16.mxu1 %v5487_v38 }
 0xa14   :  { %5167 = vmatpush3.bf16.msra.mxu1 %v5487_v38 }
 0xa15   :  { %5168 = vmatprep.subr.bf16.mxu1 %v5488_v58 }
 0xa18   :  { %5169 = vmatpush3.bf16.msra.mxu1 %v5488_v58 }
 0xad0   :  { %v7058_v47 = vpop.f32.mrb[24].mxu0 }
 0xad1   :  { %v7060_v21 = vpop.f32.mrb[25].mxu0 }
 0xad2   :  { %1525 = vrot.lane.b32.xlu0 %v7060_v21, %s6329_s22  ;;  %v7064_v62 = vpop.f32.mrb[26].mxu0 }
 0xad3   :  { %v7066_v37 = vpop.f32.mrb[27].mxu0 }
 0xad4   :  { %1527 = vrot.lane.b32.xlu1 %v7066_v37, %s6329_s22 }
 0xad6   :  { %1529 = vrot.lane.b32.xlu0 %v7058_v47, %s6329_s22 }
 0xad8   :  { %1531 = vrot.lane.b32.xlu1 %v7064_v62, %s6329_s22  ;;  %v7080_v6 = vpop.f32.mrb[28].mxu0 }
 0xad9   :  { %v7082_v61 = vpop.f32.mrb[29].mxu0 }
 0xada   :  { %1533 = vrot.lane.b32.xlu0 %v7082_v61, %s6329_s22  ;;  %v7086_v3 = vpop.f32.mrb[30].mxu0 }
 0xadb   :  { %v7088_v51 = vpop.f32.mrb[31].mxu0 }
 0xadc   :  { %1535 = vrot.lane.b32.xlu1 %v7088_v51, %s6329_s22 }
 0xade   :  { %1537 = vrot.lane.b32.xlu0 %v7080_v6, %s6329_s22 }
 0xae0   :  { %1539 = vrot.lane.b32.xlu1 %v7086_v3, %s6329_s22 }
 0xb44   :  { %v1526_v42 = vpop.permute.xlu0 %1525 }
 0xb45   :  { %v4549_v26 = vmul.f32 -1.442695, %v1526_v42 }
 0xb46   :  { %v1528_v59 = vpop.permute.xlu1 %1527 }
 0xb47   :  { %5747 = vpow2.f32 %v4549_v26  ;;  %v4550_v0 = vmul.f32 -1.442695, %v1528_v59  ;;  %v1448_v26 = vmul.f32 0.70710677, %v7022_v9 }
 0xb48   :  { %v1530_v53 = vpop.permute.xlu0 %1529 }
 0xb49   :  { %5749 = vpow2.f32 %v4550_v0  ;;  %v4551_v5 = vmul.f32 -1.442695, %v1530_v53 }
 0xb4a   :  { %v1532_v36 = vpop.permute.xlu1 %1531 }
 0xb4b   :  { %5751 = vpow2.f32 %v4551_v5  ;;  %v4552_v10 = vmul.f32 -1.442695, %v1532_v36  ;;  %v1449_v5 = vmul.f32 0.70710677, %v7024_v63 }
 0xb4c   :  { %v1534_v31 = vpop.permute.xlu0 %1533 }
 0xb4d   :  { %5753 = vpow2.f32 %v4552_v10  ;;  %v4553_v44 = vmul.f32 -1.442695, %v1534_v31 }
 0xb4e   :  { %v1536_v52 = vpop.permute.xlu1 %1535 }
 0xb4f   :  { %5755 = vpow2.f32 %v4553_v44  ;;  %v4554_v46 = vmul.f32 -1.442695, %v1536_v52  ;;  %v1450_v52 = vmul.f32 0.70710677, %v7029_v30 }
 0xb50   :  { %v1538_v11 = vpop.permute.xlu0 %1537 }
 0xb51   :  { %v5748_v27 = vpop.eup %5747  ;;  %5757 = vpow2.f32 %v4554_v46  ;;  %v4555_v39 = vmul.f32 -1.442695, %v1538_v11  ;;  %v1451_v11 = vmul.f32 0.70710677, %v7032_v2 }
 0xb52   :  { %v1565_v13 = vadd.f32 1.0, %v5748_v27  ;;  %v1540_v41 = vpop.permute.xlu1 %1539 }
 0xb53   :  { %v5750_v18 = vpop.eup %5749  ;;  %5759 = vpow2.f32 %v4555_v39  ;;  %v4556_v43 = vmul.f32 -1.442695, %v1540_v41 }
 0xb54   :  { %5761 = vrcp.f32 %v1565_v13  ;;  %v1566_v23 = vadd.f32 1.0, %v5750_v18  ;;  %v1452_v13 = vmul.f32 0.70710677, %v7037_v48  ;;  %v1453_v18 = vmul.f32 0.70710677, %v7040_v34 }
 0xb55   :  { %v5752_v56 = vpop.eup %5751  ;;  %5763 = vpow2.f32 %v4556_v43 }
 0xb56   :  { %5765 = vrcp.f32 %v1566_v23  ;;  %v1567_v57 = vadd.f32 1.0, %v5752_v56  ;;  %v1454_v56 = vmul.f32 0.70710677, %v7045_v55  ;;  %v5489_v55 = vld [vmem:[#allocation10 + $0x40] sm:$0xff]  }
 0xb57   :  { %v5754_v17 = vpop.eup %5753  ;;  %5178 = vmatprep.subr.bf16.mxu0 %v5489_v55 }
 0xb58   :  { %5767 = vrcp.f32 %v1567_v57  ;;  %v1568_v12 = vadd.f32 1.0, %v5754_v17  ;;  %v1455_v17 = vmul.f32 0.70710677, %v7048_v35  ;;  %5179 = vmatpush3.bf16.msra.mxu0 %v5489_v55 }
 0xb59   :  { %v5756_v16 = vpop.eup %5755 }
 0xb5a   :  { %5769 = vrcp.f32 %v1568_v12  ;;  %v1569_v60 = vadd.f32 1.0, %v5756_v16 }
 0xb5b   :  { %v5758_v22 = vpop.eup %5757 }
 0xb5c   :  { %5771 = vrcp.f32 %v1569_v60  ;;  %v1570_v33 = vadd.f32 1.0, %v5758_v22 }
 0xb5d   :  { %v5760_v32 = vpop.eup %5759 }
 0xb5e   :  { %v5762_v38 = vpop.eup %5761  ;;  %5773 = vrcp.f32 %v1570_v33  ;;  %v1571_v58 = vadd.f32 1.0, %v5760_v32  ;;  %v5491_v33 = vld [vmem:[#allocation10 + $0x50] sm:$0xff]   ;;  %v5492_v32 = vld [vmem:[#allocation10 + $0x58] sm:$0xff]  }
 0xb5f   :  { %v5764_v42 = vpop.eup %5763  ;;  %v1589_v59 = vmul.f32 %v5762_v38, %v7060_v21 }
 0xb60   :  { %v5766_v0 = vpop.eup %5765  ;;  %5775 = vrcp.f32 %v1571_v58  ;;  %v1572_v53 = vadd.f32 1.0, %v5764_v42 }
 0xb61   :  { %v1590_v36 = vmul.f32 %v5766_v0, %v7066_v37  ;;  %v7112_v10 = vadd.f32 %v1589_v59, %v1448_v26  ;;  %v5493_v59 = vld [vmem:[#allocation10 + $0x60] sm:$0xff]   ;;  %v5494_v0 = vld [vmem:[#allocation10 + $0x68] sm:$0xff]  }
 0xb62   :  { %v5768_v31 = vpop.eup %5767  ;;  %5777 = vrcp.f32 %v1572_v53  ;;  %v5495_v53 = vld [vmem:[#allocation10 + $0x70] sm:$0xff]  }
 0xb63   :  { %v7114_v44 = vadd.f32 %v1590_v36, %v1449_v5  ;;  %v1591_v46 = vmul.f32 %v5768_v31, %v7058_v47  ;;  %v5496_v5 = vld [vmem:[#allocation10 + $0x78] sm:$0xff]  }
 0xb64   :  { %v5770_v9 = vpop.eup %5769  ;;  %v7180_v36 = vld [vmem:[#allocation7] sm:$0xff]  }
 0xb65   :  { %v1630_v21 = vpack.c.bf16 %v7114_v44, %v7112_v10  ;;  %v1592_v63 = vmul.f32 %v5770_v9, %v7064_v62  ;;  %v7122_v27 = vadd.f32 %v1591_v46, %v1450_v52 }
 0xb66   :  { %v5772_v37 = vpop.eup %5771 }
 0xb67   :  { %5170 = vmatprep.mubr.bf16.mxu1 %v1630_v21  ;;  %v7124_v39 = vadd.f32 %v1592_v63, %v1451_v11  ;;  %v1593_v30 = vmul.f32 %v5772_v37, %v7082_v61 }
 0xb68   :  { %v5774_v41 = vpop.eup %5773 }
 0xb69   :  { %v1631_v47 = vpack.c.bf16 %v7124_v39, %v7122_v27  ;;  %v1594_v2 = vmul.f32 %v5774_v41, %v7088_v51  ;;  %v7132_v43 = vadd.f32 %v1593_v30, %v1452_v13 }
 0xb6a   :  { %v5776_v62 = vpop.eup %5775 }
 0xb6b   :  { %5171 = vmatmul.mubr.bf16.vlgmr.msra.gmra.mrb[24].mxu1 %v1631_v47  ;;  %v7134_v23 = vadd.f32 %v1594_v2, %v1453_v18  ;;  %v1595_v48 = vmul.f32 %v5776_v62, %v7080_v6  ;;  %v5490_v6 = vld [vmem:[#allocation10 + $0x48] sm:$0xff]  }
 0xb6c   :  { %v5778_v57 = vpop.eup %5777  ;;  %5180 = vmatprep.subr.bf16.mxu0 %v5490_v6 }
 0xb6d   :  { %v1632_v61 = vpack.c.bf16 %v7134_v23, %v7132_v43  ;;  %v1596_v34 = vmul.f32 %v5778_v57, %v7086_v3  ;;  %v7142_v12 = vadd.f32 %v1595_v48, %v1454_v56  ;;  %5181 = vmatpush3.bf16.msra.mxu0 %v5490_v6 }
 0xb6e   :  { %5182 = vmatprep.subr.bf16.mxu0 %v5491_v33 }
 0xb6f   :  { %5174 = vmatprep.mubr.bf16.mxu1 %v1632_v61  ;;  %v7144_v51 = vadd.f32 %v1596_v34, %v1455_v17 }
 0xb71   :  { %v1633_v16 = vpack.c.bf16 %v7144_v51, %v7142_v12  ;;  %5183 = vmatpush3.bf16.msra.mxu0 %v5491_v33 }
 0xb72   :  { %5184 = vmatprep.subr.bf16.mxu0 %v5492_v32 }
 0xb73   :  { %5175 = vmatmul.mubr.bf16.gmra.mrb[28].mxu1 %v1633_v16 }
 0xb75   :  { %5185 = vmatpush3.bf16.msra.mxu0 %v5492_v32 }
 0xb76   :  { %5186 = vmatprep.subr.bf16.mxu0 %v5493_v59 }
 0xb79   :  { %5187 = vmatpush3.bf16.msra.mxu0 %v5493_v59 }
 0xb7a   :  { %5188 = vmatprep.subr.bf16.mxu0 %v5494_v0 }
 0xb7d   :  { %5189 = vmatpush3.bf16.msra.mxu0 %v5494_v0 }
 0xb7e   :  { %5190 = vmatprep.subr.bf16.mxu0 %v5495_v53 }
 0xb81   :  { %5191 = vmatpush3.bf16.msra.mxu0 %v5495_v53 }
 0xb82   :  { %5192 = vmatprep.subr.bf16.mxu0 %v5496_v5 }
 0xb85   :  { %5193 = vmatpush3.bf16.msra.mxu0 %v5496_v5 }
 0xb86   :  { %5226 = vmatprep.subr.bf16.mxu0 %v7180_v36 }
 0xc3e   :  { %v7148_v60 = vpop.f32.mrb[24].mxu1 }
 0xc3f   :  { %v7150_v22 = vpop.f32.mrb[25].mxu1 }
 0xc40   :  { %1747 = vrot.lane.b32.xlu0 %v7150_v22, %s6329_s22  ;;  %v7154_v35 = vpop.f32.mrb[26].mxu1 }
 0xc41   :  { %v7156_v3 = vpop.f32.mrb[27].mxu1 }
 0xc42   :  { %1749 = vrot.lane.b32.xlu1 %v7156_v3, %s6329_s22 }
 0xc44   :  { %1751 = vrot.lane.b32.xlu0 %v7148_v60, %s6329_s22 }
 0xc46   :  { %1753 = vrot.lane.b32.xlu1 %v7154_v35, %s6329_s22  ;;  %v7164_v38 = vpop.f32.mrb[28].mxu1 }
 0xc47   :  { %v7166_v58 = vpop.f32.mrb[29].mxu1 }
 0xc48   :  { %1755 = vrot.lane.b32.xlu0 %v7166_v58, %s6329_s22  ;;  %v7170_v42 = vpop.f32.mrb[30].mxu1 }
 0xc49   :  { %v7172_v26 = vpop.f32.mrb[31].mxu1 }
 0xc4a   :  { %1757 = vrot.lane.b32.xlu1 %v7172_v26, %s6329_s22 }
 0xc4c   :  { %1759 = vrot.lane.b32.xlu0 %v7164_v38, %s6329_s22 }
 0xc4e   :  { %1761 = vrot.lane.b32.xlu1 %v7170_v42, %s6329_s22 }
 0xcb2   :  { %v1748_v31 = vpop.permute.xlu0 %1747 }
 0xcb3   :  { %v4581_v52 = vmul.f32 -1.442695, %v1748_v31 }
 0xcb4   :  { %v1750_v46 = vpop.permute.xlu1 %1749 }
 0xcb5   :  { %5779 = vpow2.f32 %v4581_v52  ;;  %v4582_v9 = vmul.f32 -1.442695, %v1750_v46  ;;  %v1605_v46 = vmul.f32 0.70710677, %v7112_v10 }
 0xcb6   :  { %v1752_v21 = vpop.permute.xlu0 %1751 }
 0xcb7   :  { %5781 = vpow2.f32 %v4582_v9  ;;  %v4583_v11 = vmul.f32 -1.442695, %v1752_v21 }
 0xcb8   :  { %v1754_v63 = vpop.permute.xlu1 %1753 }
 0xcb9   :  { %5783 = vpow2.f32 %v4583_v11  ;;  %v4584_v37 = vmul.f32 -1.442695, %v1754_v63  ;;  %v1606_v63 = vmul.f32 0.70710677, %v7114_v44 }
 0xcba   :  { %v1756_v13 = vpop.permute.xlu0 %1755 }
 0xcbb   :  { %5785 = vpow2.f32 %v4584_v37  ;;  %v4585_v30 = vmul.f32 -1.442695, %v1756_v13 }
 0xcbc   :  { %v1758_v41 = vpop.permute.xlu1 %1757 }
 0xcbd   :  { %5787 = vpow2.f32 %v4585_v30  ;;  %v4586_v47 = vmul.f32 -1.442695, %v1758_v41 }
 0xcbe   :  { %v1760_v18 = vpop.permute.xlu0 %1759 }
 0xcbf   :  { %v5780_v2 = vpop.eup %5779  ;;  %5789 = vpow2.f32 %v4586_v47  ;;  %v4587_v62 = vmul.f32 -1.442695, %v1760_v18  ;;  %v1607_v47 = vmul.f32 0.70710677, %v7122_v27 }
 0xcc0   :  { %v1787_v56 = vadd.f32 1.0, %v5780_v2  ;;  %v1762_v48 = vpop.permute.xlu1 %1761  ;;  %v1608_v2 = vmul.f32 0.70710677, %v7124_v39 }
 0xcc1   :  { %v5782_v57 = vpop.eup %5781  ;;  %5791 = vpow2.f32 %v4587_v62  ;;  %v4588_v61 = vmul.f32 -1.442695, %v1762_v48  ;;  %v1609_v48 = vmul.f32 0.70710677, %v7132_v43 }
 0xcc2   :  { %5793 = vrcp.f32 %v1787_v56  ;;  %v1788_v17 = vadd.f32 1.0, %v5782_v57 }
 0xcc3   :  { %v5784_v34 = vpop.eup %5783  ;;  %5795 = vpow2.f32 %v4588_v61  ;;  %v1610_v61 = vmul.f32 0.70710677, %v7134_v23  ;;  %v1612_v23 = vmul.f32 0.70710677, %v7144_v51  ;;  %v5498_v51 = vld [vmem:[%s8229_s7 + $0x48] sm:$0xff]  }
 0xcc4   :  { %5797 = vrcp.f32 %v1788_v17  ;;  %v1789_v16 = vadd.f32 1.0, %v5784_v34 }
 0xcc5   :  { %v5786_v55 = vpop.eup %5785 }
 0xcc6   :  { %5799 = vrcp.f32 %v1789_v16  ;;  %v1790_v6 = vadd.f32 1.0, %v5786_v55  ;;  %v1611_v16 = vmul.f32 0.70710677, %v7142_v12 }
 0xcc7   :  { %v5788_v33 = vpop.eup %5787 }
 0xcc8   :  { %5801 = vrcp.f32 %v1790_v6  ;;  %v1791_v32 = vadd.f32 1.0, %v5788_v33 }
 0xcc9   :  { %v5790_v59 = vpop.eup %5789 }
 0xcca   :  { %5803 = vrcp.f32 %v1791_v32  ;;  %v1792_v0 = vadd.f32 1.0, %v5790_v59 }
 0xccb   :  { %v5792_v53 = vpop.eup %5791 }
 0xccc   :  { %v5794_v5 = vpop.eup %5793  ;;  %5805 = vrcp.f32 %v1792_v0  ;;  %v1793_v31 = vadd.f32 1.0, %v5792_v53  ;;  %v5499_v0 = vld [vmem:[%s8229_s7 + $0x50] sm:$0xff]   ;;  %v5500_v53 = vld [vmem:[%s8229_s7 + $0x58] sm:$0xff]  }
 0xccd   :  { %v5796_v52 = vpop.eup %5795  ;;  %v1811_v9 = vmul.f32 %v5794_v5, %v7150_v22 }
 0xcce   :  { %v5798_v21 = vpop.eup %5797  ;;  %5807 = vrcp.f32 %v1793_v31  ;;  %v1794_v11 = vadd.f32 1.0, %v5796_v52 }
 0xccf   :  { %v1812_v37 = vmul.f32 %v5798_v21, %v7156_v3  ;;  %v7187_v13 = vadd.f32 %v1811_v9, %v1605_v46  ;;  %v5501_v9 = vld [vmem:[%s8229_s7 + $0x60] sm:$0xff]   ;;  %v5502_v21 = vld [vmem:[%s8229_s7 + $0x68] sm:$0xff]  }
 0xcd0   :  { %v5800_v30 = vpop.eup %5799  ;;  %5809 = vrcp.f32 %v1794_v11  ;;  %v5503_v11 = vld [vmem:[%s8229_s7 + $0x70] sm:$0xff]  }
 0xcd1   :  { %v7189_v41 = vadd.f32 %v1812_v37, %v1606_v63  ;;  %v1813_v18 = vmul.f32 %v5800_v30, %v7148_v60  ;;  %v5504_v63 = vld [vmem:[%s8229_s7 + $0x78] sm:$0xff]   ;;  %v7280_v37 = vld [vmem:[#allocation8] sm:$0xff]  }
 0xcd2   :  { %v5802_v10 = vpop.eup %5801 }
 0xcd3   :  { %v1852_v22 = vpack.c.bf16 %v7189_v41, %v7187_v13  ;;  %v1814_v44 = vmul.f32 %v5802_v10, %v7154_v35  ;;  %v7197_v62 = vadd.f32 %v1813_v18, %v1607_v47 }
 0xcd4   :  { %v5804_v3 = vpop.eup %5803 }
 0xcd5   :  { %5194 = vmatprep.mubr.bf16.mxu0 %v1852_v22  ;;  %v7199_v56 = vadd.f32 %v1814_v44, %v1608_v2  ;;  %v1815_v27 = vmul.f32 %v5804_v3, %v7166_v58 }
 0xcd6   :  { %v5806_v57 = vpop.eup %5805 }
 0xcd7   :  { %v1853_v60 = vpack.c.bf16 %v7199_v56, %v7197_v62  ;;  %v1816_v39 = vmul.f32 %v5806_v57, %v7172_v26  ;;  %v7207_v17 = vadd.f32 %v1815_v27, %v1609_v48 }
 0xcd8   :  { %v5808_v35 = vpop.eup %5807 }
 0xcd9   :  { %5195 = vmatmul.mubr.bf16.vlgmr.msra.gmra.mrb[32].mxu0 %v1853_v60  ;;  %v7209_v34 = vadd.f32 %v1816_v39, %v1610_v61  ;;  %v1817_v43 = vmul.f32 %v5808_v35, %v7164_v38  ;;  %v5497_v38 = vld [vmem:[%s8229_s7 + $0x40] sm:$0xff]  }
 0xcda   :  { %v5810_v55 = vpop.eup %5809  ;;  %5227 = vmatpush3.bf16.msra.mxu0 %v7180_v36  ;;  %5202 = vmatprep.subr.bf16.mxu1 %v5497_v38 }
 0xcdb   :  { %v1854_v58 = vpack.c.bf16 %v7209_v34, %v7207_v17  ;;  %v1818_v26 = vmul.f32 %v5810_v55, %v7170_v42  ;;  %v7218_v6 = vadd.f32 %v1817_v43, %v1611_v16  ;;  %5203 = vmatpush3.bf16.msra.mxu1 %v5497_v38 }
 0xcdc   :  { %5204 = vmatprep.subr.bf16.mxu1 %v5498_v51 }
 0xcdd   :  { %5198 = vmatprep.mubr.bf16.mxu0 %v1854_v58  ;;  %v7220_v33 = vadd.f32 %v1818_v26, %v1612_v23 }
 0xcdf   :  { %v1855_v12 = vpack.c.bf16 %v7220_v33, %v7218_v6  ;;  %5205 = vmatpush3.bf16.msra.mxu1 %v5498_v51 }
 0xce0   :  { %5206 = vmatprep.subr.bf16.mxu1 %v5499_v0 }
 0xce1   :  { %5199 = vmatmul.mubr.bf16.gmra.mrb[36].mxu0 %v1855_v12 }
 0xce3   :  { %5207 = vmatpush3.bf16.msra.mxu1 %v5499_v0 }
 0xce4   :  { %5208 = vmatprep.subr.bf16.mxu1 %v5500_v53 }
 0xce7   :  { %5209 = vmatpush3.bf16.msra.mxu1 %v5500_v53 }
 0xce8   :  { %5210 = vmatprep.subr.bf16.mxu1 %v5501_v9 }
 0xceb   :  { %5211 = vmatpush3.bf16.msra.mxu1 %v5501_v9 }
 0xcec   :  { %5212 = vmatprep.subr.bf16.mxu1 %v5502_v21 }
 0xcef   :  { %5213 = vmatpush3.bf16.msra.mxu1 %v5502_v21 }
 0xcf0   :  { %5214 = vmatprep.subr.bf16.mxu1 %v5503_v11 }
 0xcf3   :  { %5215 = vmatpush3.bf16.msra.mxu1 %v5503_v11 }
 0xcf4   :  { %5216 = vmatprep.subr.bf16.mxu1 %v5504_v63 }
 0xcf7   :  { %5217 = vmatpush3.bf16.msra.mxu1 %v5504_v63 }
 0xcf8   :  { %5236 = vmatprep.subr.bf16.mxu1 %v7280_v37 }
 0xdac   :  { %v7230_v42 = vpop.f32.mrb[32].mxu0 }
 0xdad   :  { %v7232_v36 = vpop.f32.mrb[33].mxu0 }
 0xdae   :  { %1969 = vrot.lane.b32.xlu0 %v7232_v36, %s6329_s22  ;;  %v7236_v32 = vpop.f32.mrb[34].mxu0 }
 0xdaf   :  { %v7238_v59 = vpop.f32.mrb[35].mxu0 }
 0xdb0   :  { %1971 = vrot.lane.b32.xlu1 %v7238_v59, %s6329_s22 }
 0xdb2   :  { %1973 = vrot.lane.b32.xlu0 %v7230_v42, %s6329_s22 }
 0xdb4   :  { %1975 = vrot.lane.b32.xlu1 %v7236_v32, %s6329_s22  ;;  %v7252_v5 = vpop.f32.mrb[36].mxu0 }
 0xdb5   :  { %v7254_v31 = vpop.f32.mrb[37].mxu0 }
 0xdb6   :  { %1977 = vrot.lane.b32.xlu0 %v7254_v31, %s6329_s22  ;;  %v7258_v52 = vpop.f32.mrb[38].mxu0 }
 0xdb7   :  { %v7260_v46 = vpop.f32.mrb[39].mxu0 }
 0xdb8   :  { %1979 = vrot.lane.b32.xlu1 %v7260_v46, %s6329_s22 }
 0xdba   :  { %1981 = vrot.lane.b32.xlu0 %v7252_v5, %s6329_s22 }
 0xdbc   :  { %1983 = vrot.lane.b32.xlu1 %v7258_v52, %s6329_s22 }
 0xe20   :  { %v1970_v30 = vpop.permute.xlu0 %1969 }
 0xe21   :  { %v4597_v47 = vmul.f32 -1.442695, %v1970_v30 }
 0xe22   :  { %v1972_v18 = vpop.permute.xlu1 %1971 }
 0xe23   :  { %5811 = vpow2.f32 %v4597_v47  ;;  %v4598_v10 = vmul.f32 -1.442695, %v1972_v18  ;;  %v1827_v18 = vmul.f32 0.70710677, %v7187_v13 }
 0xe24   :  { %v1974_v22 = vpop.permute.xlu0 %1973 }
 0xe25   :  { %5813 = vpow2.f32 %v4598_v10  ;;  %v4599_v2 = vmul.f32 -1.442695, %v1974_v22 }
 0xe26   :  { %v1976_v44 = vpop.permute.xlu1 %1975 }
 0xe27   :  { %5815 = vpow2.f32 %v4599_v2  ;;  %v4600_v3 = vmul.f32 -1.442695, %v1976_v44  ;;  %v1828_v44 = vmul.f32 0.70710677, %v7189_v41 }
 0xe28   :  { %v1978_v48 = vpop.permute.xlu0 %1977 }
 0xe29   :  { %5817 = vpow2.f32 %v4600_v3  ;;  %v4601_v27 = vmul.f32 -1.442695, %v1978_v48 }
 0xe2a   :  { %v1980_v57 = vpop.permute.xlu1 %1979 }
 0xe2b   :  { %5819 = vpow2.f32 %v4601_v27  ;;  %v4602_v60 = vmul.f32 -1.442695, %v1980_v57 }
 0xe2c   :  { %v1982_v61 = vpop.permute.xlu0 %1981 }
 0xe2d   :  { %v5812_v39 = vpop.eup %5811  ;;  %5821 = vpow2.f32 %v4602_v60  ;;  %v4603_v35 = vmul.f32 -1.442695, %v1982_v61  ;;  %v1829_v60 = vmul.f32 0.70710677, %v7197_v62 }
 0xe2e   :  { %v2009_v16 = vadd.f32 1.0, %v5812_v39  ;;  %v1984_v43 = vpop.permute.xlu1 %1983  ;;  %v1830_v39 = vmul.f32 0.70710677, %v7199_v56 }
 0xe2f   :  { %v5814_v55 = vpop.eup %5813  ;;  %5823 = vpow2.f32 %v4603_v35  ;;  %v4604_v58 = vmul.f32 -1.442695, %v1984_v43  ;;  %v1831_v43 = vmul.f32 0.70710677, %v7207_v17 }
 0xe30   :  { %5825 = vrcp.f32 %v2009_v16  ;;  %v2010_v23 = vadd.f32 1.0, %v5814_v55 }
 0xe31   :  { %v5816_v26 = vpop.eup %5815  ;;  %5827 = vpow2.f32 %v4604_v58  ;;  %v1832_v58 = vmul.f32 0.70710677, %v7209_v34  ;;  %v1834_v34 = vmul.f32 0.70710677, %v7220_v33  ;;  %v6173_v33 = vld [vmem:[#allocation8 + $0x20] sm:$0xff]  }
 0xe32   :  { %5829 = vrcp.f32 %v2010_v23  ;;  %v2011_v12 = vadd.f32 1.0, %v5816_v26 }
 0xe33   :  { %v5818_v38 = vpop.eup %5817 }
 0xe34   :  { %5831 = vrcp.f32 %v2011_v12  ;;  %v2012_v51 = vadd.f32 1.0, %v5818_v38  ;;  %v1833_v12 = vmul.f32 0.70710677, %v7218_v6 }
 0xe35   :  { %v5820_v0 = vpop.eup %5819 }
 0xe36   :  { %5833 = vrcp.f32 %v2012_v51  ;;  %v2013_v53 = vadd.f32 1.0, %v5820_v0  ;;  %v6170_v0 = vld [vmem:[#allocation8 + $0x8] sm:$0xff]  }
 0xe37   :  { %v5822_v9 = vpop.eup %5821 }
 0xe38   :  { %5835 = vrcp.f32 %v2013_v53  ;;  %v2014_v21 = vadd.f32 1.0, %v5822_v9  ;;  %v6175_v9 = vld [vmem:[#allocation8 + $0x30] sm:$0xff]  }
 0xe39   :  { %v5824_v11 = vpop.eup %5823 }
 0xe3a   :  { %v5826_v63 = vpop.eup %5825  ;;  %5837 = vrcp.f32 %v2014_v21  ;;  %v2015_v30 = vadd.f32 1.0, %v5824_v11  ;;  %v6176_v21 = vld [vmem:[#allocation8 + $0x38] sm:$0xff]  }
 0xe3b   :  { %v5828_v47 = vpop.eup %5827  ;;  %v2033_v10 = vmul.f32 %v5826_v63, %v7232_v36 }
 0xe3c   :  { %v5830_v22 = vpop.eup %5829  ;;  %5839 = vrcp.f32 %v2015_v30  ;;  %v2016_v2 = vadd.f32 1.0, %v5828_v47 }
 0xe3d   :  { %v2034_v3 = vmul.f32 %v5830_v22, %v7238_v59  ;;  %v7287_v48 = vadd.f32 %v2033_v10, %v1827_v18 }
 0xe3e   :  { %v5832_v27 = vpop.eup %5831  ;;  %5841 = vrcp.f32 %v2016_v2 }
 0xe3f   :  { %v7289_v57 = vadd.f32 %v2034_v3, %v1828_v44  ;;  %v2035_v61 = vmul.f32 %v5832_v27, %v7230_v42 }
 0xe40   :  { %v5834_v13 = vpop.eup %5833 }
 0xe41   :  { %v2090_v36 = vpack.c.bf16 %v7289_v57, %v7287_v48  ;;  %v2036_v41 = vmul.f32 %v5834_v13, %v7236_v32  ;;  %v7297_v35 = vadd.f32 %v2035_v61, %v1829_v60 }
 0xe42   :  { %v5836_v59 = vpop.eup %5835 }
 0xe43   :  { %5218 = vmatprep.mubr.bf16.mxu1 %v2090_v36  ;;  %v7299_v16 = vadd.f32 %v2036_v41, %v1830_v39  ;;  %v2037_v62 = vmul.f32 %v5836_v59, %v7254_v31 }
 0xe44   :  { %v5838_v55 = vpop.eup %5837 }
 0xe45   :  { %v2091_v42 = vpack.c.bf16 %v7299_v16, %v7297_v35  ;;  %v2038_v56 = vmul.f32 %v5838_v55, %v7260_v46  ;;  %v7307_v23 = vadd.f32 %v2037_v62, %v1831_v43 }
 0xe46   :  { %v5840_v32 = vpop.eup %5839 }
 0xe47   :  { %5219 = vmatmul.mubr.bf16.vlgmr.msra.gmra.mrb[32].mxu1 %v2091_v42  ;;  %v7309_v26 = vadd.f32 %v2038_v56, %v1832_v58  ;;  %v2039_v17 = vmul.f32 %v5840_v32, %v7252_v5  ;;  %v6171_v5 = vld [vmem:[#allocation8 + $0x10] sm:$0xff]  }
 0xe48   :  { %v5842_v38 = vpop.eup %5841  ;;  %5237 = vmatpush3.bf16.msra.mxu1 %v7280_v37  ;;  %v6172_v37 = vld [vmem:[#allocation8 + $0x18] sm:$0xff]  }
 0xe49   :  { %v2092_v31 = vpack.c.bf16 %v7309_v26, %v7307_v23  ;;  %v2040_v46 = vmul.f32 %v5842_v38, %v7258_v52  ;;  %v7318_v51 = vadd.f32 %v2039_v17, %v1833_v12  ;;  %5238 = vmatprep.subr.bf16.mxu1 %v6170_v0  ;;  %v6174_v52 = vld [vmem:[#allocation8 + $0x28] sm:$0xff]  }
 0xe4b   :  { %5222 = vmatprep.mubr.bf16.mxu1 %v2092_v31  ;;  %v7320_v53 = vadd.f32 %v2040_v46, %v1834_v34 }
 0xe4c   :  { %5239 = vmatpush3.bf16.msra.mxu1 %v6170_v0 }
 0xe4d   :  { %v2093_v6 = vpack.c.bf16 %v7320_v53, %v7318_v51  ;;  %5240 = vmatprep.subr.bf16.mxu1 %v6171_v5 }
 0xe4f   :  { %5223 = vmatmul.mubr.bf16.gmra.mrb[36].mxu1 %v2093_v6 }
 0xe50   :  { %5241 = vmatpush3.bf16.msra.mxu1 %v6171_v5 }
 0xe51   :  { %5242 = vmatprep.subr.bf16.mxu1 %v6172_v37 }
 0xe54   :  { %5243 = vmatpush3.bf16.msra.mxu1 %v6172_v37 }
 0xe55   :  { %5244 = vmatprep.subr.bf16.mxu1 %v6173_v33 }
 0xe58   :  { %5245 = vmatpush3.bf16.msra.mxu1 %v6173_v33 }
 0xe59   :  { %5246 = vmatprep.subr.bf16.mxu1 %v6174_v52 }
 0xe5c   :  { %5247 = vmatpush3.bf16.msra.mxu1 %v6174_v52 }
 0xe5d   :  { %5248 = vmatprep.subr.bf16.mxu1 %v6175_v9 }
 0xe60   :  { %5249 = vmatpush3.bf16.msra.mxu1 %v6175_v9 }
 0xe61   :  { %5250 = vmatprep.subr.bf16.mxu1 %v6176_v21 }
 0xe64   :  { %5251 = vmatpush3.bf16.msra.mxu1 %v6176_v21 }
 0xf1a   :  { %v7324_v11 = vpop.f32.mrb[32].mxu1 }
 0xf1b   :  { %v7326_v63 = vpop.f32.mrb[33].mxu1  ;;  %v2210_v2 = vsel %vm157_vm0, %v7324_v11, 0.0 }
 0xf1c   :  { %v7328_v30 = vpop.f32.mrb[34].mxu1  ;;  %v2207_v18 = vsel %vm157_vm0, %v7326_v63, 0.0 }
 0xf1d   :  { %v7330_v47 = vpop.f32.mrb[35].mxu1  ;;  %v2212_v3 = vsel %vm157_vm0, %v7328_v30, 0.0 }
 0xf1e   :  { %v2208_v10 = vsel %vm157_vm0, %v7330_v47, 0.0 }
 0xf1f   :  { %v2209_v22 = vadd.f32 %v2208_v10, %v2207_v18 }
 0xf21   :  { %v2211_v44 = vadd.f32 %v2210_v2, %v2209_v22 }
 0xf22   :  { %v7340_v27 = vpop.f32.mrb[36].mxu1 }
 0xf23   :  { %v7342_v60 = vpop.f32.mrb[37].mxu1  ;;  %v2213_v61 = vadd.f32 %v2212_v3, %v2211_v44  ;;  %v2218_v62 = vsel %vm157_vm0, %v7340_v27, 0.0 }
 0xf24   :  { %v2214_v13 = vsel %vm157_vm0, %v7342_v60, 0.0  ;;  %v7346_v36 = vpop.f32.mrb[38].mxu1 }
 0xf25   :  { %v2215_v39 = vadd.f32 %v2214_v13, %v2213_v61  ;;  %v2195_v41 = vpop.f32.mrb[39].mxu1  ;;  %v2220_v42 = vsel %vm157_vm0, %v7346_v36, 0.0 }
 0xf26   :  { %v2216_v59 = vsel %vm157_vm0, %v2195_v41, 0.0 }
 0xf27   :  { %v2217_v43 = vadd.f32 %v2216_v59, %v2215_v39 }
 0xf29   :  { %v2219_v55 = vadd.f32 %v2218_v62, %v2217_v43 }
 0xf2b   :  { %v2221_v58 = vadd.f32 %v2220_v42, %v2219_v55 }
 0xf2d   :  { %v2222_v56 = vrot.slane %v2221_v58, 4 }
 0xf2f   :  { %v2223_v32 = vadd.f32 %v2222_v56, %v2221_v58 }
 0xf31   :  { %v2224_v12 = vrot.slane %v2223_v32, 2 }
 0xf33   :  { %v2225_v17 = vadd.f32 %v2224_v12, %v2223_v32 }
 0xf35   :  { %v2226_v38 = vrot.slane %v2225_v17, 1 }
 0xf37   :  { %v2227_v31 = vadd.f32 %v2226_v38, %v2225_v17 }
 0xf39   :  { %v2228_v34 = vmul.f32 0.015625, %v2227_v31 }
 0xf3b   :  { %v2229_v46 = vsub.f32 %v7326_v63, %v2228_v34  ;;  %v2230_v0 = vsub.f32 %v7330_v47, %v2228_v34  ;;  %v2231_v6 = vsub.f32 %v7324_v11, %v2228_v34  ;;  %v2232_v5 = vsub.f32 %v7328_v30, %v2228_v34 }
 0xf3c   :  { %v2233_v37 = vsub.f32 %v7342_v60, %v2228_v34  ;;  %v2234_v33 = vsub.f32 %v2195_v41, %v2228_v34  ;;  %v2235_v52 = vsub.f32 %v7340_v27, %v2228_v34  ;;  %v2236_v9 = vsub.f32 %v7346_v36, %v2228_v34 }
 0xf3d   :  { %v2237_v21 = vmul.f32 %v2229_v46, %v2229_v46  ;;  %v2238_v18 = vmul.f32 %v2230_v0, %v2230_v0  ;;  %v2239_v10 = vmul.f32 %v2231_v6, %v2231_v6  ;;  %v2240_v22 = vmul.f32 %v2232_v5, %v2232_v5 }
 0xf3e   :  { %v2241_v61 = vmul.f32 %v2233_v37, %v2233_v37  ;;  %v2242_v59 = vmul.f32 %v2234_v33, %v2234_v33  ;;  %v2243_v55 = vmul.f32 %v2235_v52, %v2235_v52  ;;  %v2244_v56 = vmul.f32 %v2236_v9, %v2236_v9  ;;  %v4629_v9 = vld [vmem:[%s8230_s8 + $0x1] sm:$0x1] }
 0xf3f   :  { %v2245_v2 = vsel %vm157_vm0, %v2237_v21, 0.0  ;;  %v2246_v44 = vsel %vm157_vm0, %v2238_v18, 0.0  ;;  %v2248_v13 = vsel %vm157_vm0, %v2239_v10, 0.0  ;;  %v2250_v43 = vsel %vm157_vm0, %v2240_v22, 0.0 }
 0xf40   :  { %v2247_v3 = vadd.f32 %v2246_v44, %v2245_v2  ;;  %v2252_v42 = vsel %vm157_vm0, %v2241_v61, 0.0  ;;  %v2254_v32 = vsel %vm157_vm0, %v2242_v59, 0.0  ;;  %v2256_v17 = vsel %vm157_vm0, %v2243_v55, 0.0  ;;  %v4630_v2 = vld [vmem:[%s8231_s9 + $0x1] sm:$0x1] }
 0xf41   :  { %v2258_v31 = vsel %vm157_vm0, %v2244_v56, 0.0  ;;  %v8242_v56 = vsub.f32 1.3, %v6960_v50 }
 0xf42   :  { %v2249_v39 = vadd.f32 %v2248_v13, %v2247_v3 }
 0xf44   :  { %v2251_v62 = vadd.f32 %v2250_v43, %v2249_v39 }
 0xf46   :  { %v2253_v58 = vadd.f32 %v2252_v42, %v2251_v62 }
 0xf48   :  { %v2255_v12 = vadd.f32 %v2254_v32, %v2253_v58 }
 0xf4a   :  { %v2257_v38 = vadd.f32 %v2256_v17, %v2255_v12 }
 0xf4c   :  { %v2259_v46 = vadd.f32 %v2258_v31, %v2257_v38  ;;  %v8239_v31 = vsub.f32 1.3, %v6969_v54 }
 0xf4e   :  { %v2260_v0 = vrot.slane %v2259_v46, 4 }
 0xf50   :  { %v2261_v6 = vadd.f32 %v2260_v0, %v2259_v46 }
 0xf52   :  { %v2262_v5 = vrot.slane %v2261_v6, 2 }
 0xf54   :  { %v2263_v37 = vadd.f32 %v2262_v5, %v2261_v6 }
 0xf56   :  { %v2264_v33 = vrot.slane %v2263_v37, 1 }
 0xf58   :  { %v2265_v21 = vadd.f32 %v2264_v33, %v2263_v37  ;;  %v8238_v37 = vsub.f32 1.3, %v6981_v4  ;;  %v8237_v33 = vsub.f32 1.3, %v6971_v49 }
 0xf5a   :  { %v2266_v52 = vmul.f32 0.015625, %v2265_v21 }
 0xf5c   :  { %v2269_v18 = vadd.f32 1e-05, %v2266_v52 }
 0xf5e   :  { %5843 = vrsqrt.f32 %v2269_v18 }
 0xf68   :  { %v5844_v10 = vpop.eup %5843 }
 0xf69   :  { %v2271_v22 = vmul.f32 %v5844_v10, %v4629_v9  ;;  %v8236_v10 = vsub.f32 1.3, %v6979_v45 }
 0xf6b   :  { %v2274_v44 = vmul.f32 %v2271_v22, %v2228_v34  ;;  %v2280_v3 = vrot.slane %v2271_v22, %v6929_v8 }
 0xf6d   :  { %v2275_v61 = vsub.f32 %v4630_v2, %v2274_v44  ;;  %v2287_v13 = vmul.f32 %v2280_v3, %v2195_v41  ;;  %v2283_v39 = vmul.f32 %v2280_v3, %v7330_v47  ;;  %v2282_v59 = vmul.f32 %v2280_v3, %v7326_v63 }
 0xf6e   :  { %v2286_v43 = vmul.f32 %v2280_v3, %v7342_v60  ;;  %v2284_v62 = vmul.f32 %v7324_v11, %v2280_v3  ;;  %v2288_v55 = vmul.f32 %v7340_v27, %v2280_v3  ;;  %v2285_v42 = vmul.f32 %v7328_v30, %v2280_v3 }
 0xf6f   :  { %v2294_v58 = vrot.slane %v2275_v61, %v6929_v8  ;;  %v2289_v34 = vmul.f32 %v7346_v36, %v2280_v3  ;;  %v8241_v41 = vsub.f32 1.3, %v6962_v7  ;;  %v8240_v36 = vsub.f32 1.3, %v6977_v40 }
 0xf70   :  { %v8235_v3 = vsub.f32 1.3, %v6988_v1 }
 0xf71   :  { %v2297_v32 = vadd.f32 %v2294_v58, %v2283_v39  ;;  %v2296_v47 = vadd.f32 %v2294_v58, %v2282_v59  ;;  %v2300_v12 = vadd.f32 %v2294_v58, %v2286_v43  ;;  %v2298_v63 = vadd.f32 %v2294_v58, %v2284_v62 }
 0xf72   :  { %v2302_v17 = vadd.f32 %v2294_v58, %v2288_v55  ;;  %v2299_v60 = vadd.f32 %v2294_v58, %v2285_v42  ;;  %v2301_v38 = vadd.f32 %v2294_v58, %v2287_v13  ;;  %v2303_v11 = vadd.f32 %v2294_v58, %v2289_v34 }
 0xf73   :  { %v2305_v27 = vmul.f32 %v2297_v32, %v8242_v56  ;;  %v2304_v30 = vmul.f32 %v2296_v47, %v8241_v41  ;;  %v2308_v6 = vmul.f32 %v2300_v12, %v8240_v36  ;;  %v2306_v5 = vmul.f32 %v2298_v63, %v8239_v31 }
 0xf74   :  { %v2310_v18 = vmul.f32 %v2302_v17, %v8238_v37  ;;  %v2307_v9 = vmul.f32 %v2299_v60, %v8237_v33  ;;  %v2309_v44 = vmul.f32 %v2301_v38, %v8236_v10  ;;  %v2311_v13 = vmul.f32 %v2303_v11, %v8235_v3 }
 0xf75   :  { %v2315_v46 = vsel %vm157_vm0, %v2305_v27, -inf  ;;  %v2312_v0 = vsel %vm157_vm0, %v2304_v30, -inf  ;;  %v2324_v21 = vsel %vm157_vm0, %v2308_v6, -inf  ;;  %v2318_v52 = vsel %vm157_vm0, %v2306_v5, -inf }
 0xf76   :  { %2316 = vmax.xlane.f32.xlu1 %v2315_v46  ;;  %2313 = vmax.xlane.f32.xlu0 %v2312_v0  ;;  %v2330_v22 = vsel %vm157_vm0, %v2310_v18, -inf  ;;  %v2321_v2 = vsel %vm157_vm0, %v2307_v9, -inf  ;;  %v2327_v61 = vsel %vm157_vm0, %v2309_v44, -inf  ;;  %v2333_v39 = vsel %vm157_vm0, %v2311_v13, -inf }
 0xf7a   :  { %2325 = vmax.xlane.f32.xlu1 %v2324_v21  ;;  %2319 = vmax.xlane.f32.xlu0 %v2318_v52 }
 0xf7e   :  { %2331 = vmax.xlane.f32.xlu1 %v2330_v22  ;;  %2322 = vmax.xlane.f32.xlu0 %v2321_v2 }
 0xf82   :  { %2328 = vmax.xlane.f32.xlu0 %v2327_v61 }
 0xf86   :  { %2334 = vmax.xlane.f32.xlu0 %v2333_v39 }
0x1003   :  { %v2317_v59 = vpop.xlane.xlu1 %2316  ;;  %v2314_v43 = vpop.xlane.xlu0 %2313 }
0x1004   :  { %v2337_v62 = vsub.f32 %v2305_v27, %v2317_v59  ;;  %v2336_v55 = vsub.f32 %v2304_v30, %v2314_v43 }
0x1006   :  { %v2346_v42 = vmul.f32 1.442695, %v2337_v62  ;;  %v2344_v58 = vmul.f32 1.442695, %v2336_v55 }
0x1007   :  { %v2326_v34 = vpop.xlane.xlu1 %2325  ;;  %v2320_v32 = vpop.xlane.xlu0 %2319 }
0x1008   :  { %5845 = vpow2.f32 %v2346_v42  ;;  %v2340_v47 = vsub.f32 %v2308_v6, %v2326_v34  ;;  %v2338_v12 = vsub.f32 %v2306_v5, %v2320_v32 }
0x1009   :  { %5847 = vpow2.f32 %v2344_v58 }
0x100a   :  { %v2348_v63 = vmul.f32 1.442695, %v2338_v12  ;;  %v2352_v17 = vmul.f32 1.442695, %v2340_v47 }
0x100b   :  { %v2332_v60 = vpop.xlane.xlu1 %2331  ;;  %v2323_v38 = vpop.xlane.xlu0 %2322 }
0x100c   :  { %v2342_v11 = vsub.f32 %v2310_v18, %v2332_v60  ;;  %v2339_v46 = vsub.f32 %v2307_v9, %v2323_v38  ;;  %5849 = vpow2.f32 %v2348_v63 }
0x100d   :  { %5851 = vpow2.f32 %v2352_v17 }
0x100e   :  { %v2350_v0 = vmul.f32 1.442695, %v2339_v46  ;;  %v2356_v21 = vmul.f32 1.442695, %v2342_v11 }
0x100f   :  { %v2329_v27 = vpop.xlane.xlu0 %2328 }
0x1010   :  { %v2341_v30 = vsub.f32 %v2309_v44, %v2329_v27  ;;  %5853 = vpow2.f32 %v2350_v0 }
0x1011   :  { %5855 = vpow2.f32 %v2356_v21 }
0x1012   :  { %v5846_v52 = vpop.eup %5845  ;;  %v2354_v22 = vmul.f32 1.442695, %v2341_v30 }
0x1013   :  { %v5848_v2 = vpop.eup %5847  ;;  %v2335_v6 = vpop.xlane.xlu0 %2334  ;;  %v2363_v5 = vsel %vm157_vm0, %v5846_v52, 0.0 }
0x1014   :  { %5857 = vpow2.f32 %v2354_v22  ;;  %v2343_v61 = vsub.f32 %v2311_v13, %v2335_v6  ;;  %2364 = vadd.xlane.f32.xlu0 %v2363_v5  ;;  %v2360_v18 = vsel %vm157_vm0, %v5848_v2, 0.0 }
0x1015   :  { %2361 = vadd.xlane.f32.xlu1 %v2360_v18 }
0x1016   :  { %v2358_v9 = vmul.f32 1.442695, %v2343_v61  ;;  %v5850_v39 = vpop.eup %5849 }
0x1017   :  { %v2366_v59 = vsel %vm157_vm0, %v5850_v39, 0.0  ;;  %v5852_v44 = vpop.eup %5851 }
0x1018   :  { %5859 = vpow2.f32 %v2358_v9  ;;  %v2372_v62 = vsel %vm157_vm0, %v5852_v44, 0.0 }
0x1019   :  { %2367 = vadd.xlane.f32.xlu1 %v2366_v59 }
0x101a   :  { %v5854_v43 = vpop.eup %5853 }
0x101b   :  { %v2369_v55 = vsel %vm157_vm0, %v5854_v43, 0.0  ;;  %v5856_v42 = vpop.eup %5855 }
0x101c   :  { %2370 = vadd.xlane.f32.xlu0 %v2369_v55  ;;  %v2378_v34 = vsel %vm157_vm0, %v5856_v42, 0.0 }
0x101d   :  { %2373 = vadd.xlane.f32.xlu1 %v2372_v62 }
0x101e   :  { %v5858_v13 = vpop.eup %5857 }
0x101f   :  { %v2375_v58 = vsel %vm157_vm0, %v5858_v13, 0.0 }
0x1020   :  { %2376 = vadd.xlane.f32.xlu0 %v2375_v58 }
0x1021   :  { %2379 = vadd.xlane.f32.xlu1 %v2378_v34 }
0x1022   :  { %v5860_v32 = vpop.eup %5859 }
0x1023   :  { %v2381_v47 = vsel %vm157_vm0, %v5860_v32, 0.0 }
0x1024   :  { %2382 = vadd.xlane.f32.xlu0 %v2381_v47 }
0x10a1   :  { %v2365_v12 = vpop.xlane.xlu0 %2364 }
0x10a2   :  { %v2362_v63 = vpop.xlane.xlu1 %2361  ;;  %5861 = vrcp.f32 %v2365_v12 }
0x10a3   :  { %5863 = vrcp.f32 %v2362_v63 }
0x10a6   :  { %v2368_v17 = vpop.xlane.xlu1 %2367 }
0x10a7   :  { %5865 = vrcp.f32 %v2368_v17 }
0x10a9   :  { %v2371_v38 = vpop.xlane.xlu0 %2370 }
0x10aa   :  { %v2374_v60 = vpop.xlane.xlu1 %2373 }
0x10ab   :  { %5867 = vrcp.f32 %v2374_v60 }
0x10ac   :  { %v5862_v11 = vpop.eup %5861  ;;  %5869 = vrcp.f32 %v2371_v38 }
0x10ad   :  { %v5864_v46 = vpop.eup %5863  ;;  %v7423_v0 = vmul.f32 %v5862_v11, %v5846_v52  ;;  %v2377_v27 = vpop.xlane.xlu0 %2376 }
0x10ae   :  { %v2380_v21 = vpop.xlane.xlu1 %2379  ;;  %v7425_v30 = vmul.f32 %v5864_v46, %v5848_v2 }
0x10af   :  { %5871 = vrcp.f32 %v2380_v21  ;;  %v2401_v22 = vmul.f32 %v7423_v0, %v6493_v15 }
0x10b0   :  { %5873 = vrcp.f32 %v2377_v27  ;;  %v2400_v6 = vmul.f32 %v7425_v30, %v6491_v14 }
0x10b1   :  { %v5866_v5 = vpop.eup %5865  ;;  %v2383_v61 = vpop.xlane.xlu0 %2382 }
0x10b2   :  { %v2408_v18 = vpack.c.bf16 %v2401_v22, %v2400_v6  ;;  %5875 = vrcp.f32 %v2383_v61  ;;  %v7432_v9 = vmul.f32 %v5866_v5, %v5850_v39 }
0x10b4   :  { %5228 = vmatprep.mubr.msk.bf16.mxu0 %vm157_vm0, %v2408_v18  ;;  %v2402_v55 = vmul.f32 %v7432_v9, %v6498_v19 }
0x10b5   :  { %v5868_v52 = vpop.eup %5867 }
0x10b6   :  { %v5870_v59 = vpop.eup %5869  ;;  %v7440_v34 = vmul.f32 %v5868_v52, %v5852_v44 }
0x10b7   :  { %v7434_v2 = vmul.f32 %v5870_v59, %v5854_v43 }
0x10b8   :  { %v2404_v43 = vmul.f32 %v7440_v34, %v6504_v24 }
0x10b9   :  { %v5872_v62 = vpop.eup %5871  ;;  %v2403_v58 = vmul.f32 %v7434_v2, %v6500_v20 }
0x10ba   :  { %v5874_v47 = vpop.eup %5873  ;;  %v7444_v17 = vmul.f32 %v5872_v62, %v5856_v42 }
0x10bb   :  { %v2409_v12 = vpack.c.bf16 %v2403_v58, %v2402_v55  ;;  %v7442_v63 = vmul.f32 %v5874_v47, %v5858_v13 }
0x10bc   :  { %v5876_v39 = vpop.eup %5875  ;;  %v2406_v44 = vmul.f32 %v7444_v17, %v6514_v28 }
0x10bd   :  { %5229 = vmatmul.mubr.msk.bf16.vlgmr.msra.gmra.mrb[40].mxu0 %vm157_vm0, %v2409_v12  ;;  %v2405_v60 = vmul.f32 %v7442_v63, %v6506_v25  ;;  %v7451_v38 = vmul.f32 %v5876_v39, %v5860_v32 }
0x10bf   :  { %v2410_v11 = vpack.c.bf16 %v2405_v60, %v2404_v43  ;;  %v2407_v13 = vmul.f32 %v7451_v38, %v6516_v29 }
0x10c1   :  { %5232 = vmatprep.mubr.msk.bf16.mxu0 %vm157_vm0, %v2410_v11  ;;  %v2411_v42 = vpack.c.bf16 %v2407_v13, %v2406_v44 }
0x10c5   :  { %5233 = vmatmul.mubr.msk.bf16.gmra.mrb[44].mxu0 %vm157_vm0, %v2411_v42 }
0x1190   :  { %v7459_v46 = vpop.f32.mrb[40].mxu0 }
0x1191   :  { %v2458_v21 = vpop.f32.mrb[41].mxu0 }
0x1192   :  { %2489 = vrot.lane.b32.xlu1 %v2458_v21, %s6329_s22  ;;  %v7462_v27 = vpop.f32.mrb[42].mxu0 }
0x1193   :  { %v2461_v32 = vpop.f32.mrb[43].mxu0 }
0x1194   :  { %2491 = vrot.lane.b32.xlu0 %v2461_v32, %s6329_s22 }
0x1196   :  { %2493 = vrot.lane.b32.xlu1 %v7459_v46, %s6329_s22 }
0x1198   :  { %v7467_v22 = vpop.f32.mrb[44].mxu0 }
0x1199   :  { %v7469_v6 = vpop.f32.mrb[45].mxu0 }
0x119a   :  { %2495 = vrot.lane.b32.xlu1 %v7462_v27, %s6329_s22  ;;  %2497 = vrot.lane.b32.xlu0 %v7469_v6, %s6329_s22  ;;  %v7475_v5 = vpop.f32.mrb[46].mxu0 }
0x119b   :  { %v7477_v61 = vpop.f32.mrb[47].mxu0 }
0x119e   :  { %2501 = vrot.lane.b32.xlu0 %v7467_v22, %s6329_s22  ;;  %2499 = vrot.lane.b32.xlu1 %v7477_v61, %s6329_s22 }
0x11a2   :  { %2503 = vrot.lane.b32.xlu1 %v7475_v5, %s6329_s22 }
0x1204   :  { %v2490_v18 = vpop.permute.xlu1 %2489 }
0x1205   :  { %v4635_v52 = vmul.f32 -1.442695, %v2490_v18 }
0x1206   :  { %v2492_v59 = vpop.permute.xlu0 %2491 }
0x1207   :  { %5877 = vpow2.f32 %v4635_v52  ;;  %v4636_v62 = vmul.f32 -1.442695, %v2492_v59 }
0x1208   :  { %v2494_v55 = vpop.permute.xlu1 %2493 }
0x1209   :  { %5879 = vpow2.f32 %v4636_v62  ;;  %v4637_v58 = vmul.f32 -1.442695, %v2494_v55 }
0x120b   :  { %5881 = vpow2.f32 %v4637_v58 }
0x120c   :  { %v2496_v47 = vpop.permute.xlu1 %2495  ;;  %v2498_v12 = vpop.permute.xlu0 %2497 }
0x120d   :  { %v4638_v39 = vmul.f32 -1.442695, %v2496_v47  ;;  %v4639_v43 = vmul.f32 -1.442695, %v2498_v12 }
0x120f   :  { %5883 = vpow2.f32 %v4638_v39 }
0x1210   :  { %5885 = vpow2.f32 %v4639_v43  ;;  %v2500_v60 = vpop.permute.xlu1 %2499  ;;  %v2502_v11 = vpop.permute.xlu0 %2501 }
0x1211   :  { %v5878_v44 = vpop.eup %5877  ;;  %v4640_v13 = vmul.f32 -1.442695, %v2500_v60  ;;  %v4641_v42 = vmul.f32 -1.442695, %v2502_v11 }
0x1212   :  { %v2529_v3 = vadd.f32 1.0, %v5878_v44 }
0x1213   :  { %v5880_v18 = vpop.eup %5879  ;;  %5887 = vpow2.f32 %v4640_v13 }
0x1214   :  { %5889 = vrcp.f32 %v2529_v3  ;;  %v2530_v52 = vadd.f32 1.0, %v5880_v18  ;;  %v2504_v59 = vpop.permute.xlu1 %2503 }
0x1215   :  { %v5882_v62 = vpop.eup %5881  ;;  %5891 = vpow2.f32 %v4641_v42  ;;  %v4642_v55 = vmul.f32 -1.442695, %v2504_v59 }
0x1216   :  { %5893 = vrcp.f32 %v2530_v52  ;;  %v2531_v58 = vadd.f32 1.0, %v5882_v62 }
0x1217   :  { %5895 = vpow2.f32 %v4642_v55 }
0x1218   :  { %5897 = vrcp.f32 %v2531_v58 }
0x1219   :  { %v5884_v47 = vpop.eup %5883 }
0x121a   :  { %v5886_v12 = vpop.eup %5885  ;;  %v2532_v39 = vadd.f32 1.0, %v5884_v47 }
0x121b   :  { %v2533_v43 = vadd.f32 1.0, %v5886_v12 }
0x121c   :  { %5899 = vrcp.f32 %v2532_v39 }
0x121d   :  { %v5888_v60 = vpop.eup %5887  ;;  %5901 = vrcp.f32 %v2533_v43 }
0x121e   :  { %v5890_v11 = vpop.eup %5889  ;;  %v2534_v44 = vadd.f32 1.0, %v5888_v60 }
0x121f   :  { %v5892_v13 = vpop.eup %5891  ;;  %v7485_v42 = vmul.f32 %v5890_v11, %v2458_v21 }
0x1220   :  { %v5894_v3 = vpop.eup %5893  ;;  %5903 = vrcp.f32 %v2534_v44  ;;  %v2535_v18 = vadd.f32 1.0, %v5892_v13 }
0x1221   :  { %v5896_v10 = vpop.eup %5895  ;;  %v7487_v52 = vmul.f32 %v5894_v3, %v2461_v32 }
0x1222   :  { %5905 = vrcp.f32 %v2535_v18  ;;  %v2536_v59 = vadd.f32 1.0, %v5896_v10  ;;  %v5898_v55 = vpop.eup %5897 }
0x1223   :  { %v2569_v62 = vpack.c.bf16 %v7487_v52, %v7485_v42  ;;  %v7492_v47 = vmul.f32 %v5898_v55, %v7459_v46 }
0x1224   :  { %5907 = vrcp.f32 %v2536_v59  ;;  %v5507_v59 = vld [vmem:[%s8227_s5 + $0x90] sm:$0xff]  }
0x1225   :  { %5252 = vmatprep.mubr.bf16.mxu1 %v2569_v62  ;;  %v5508_v62 = vld [vmem:[%s8227_s5 + $0x98] sm:$0xff]  }
0x1226   :  { %v5900_v58 = vpop.eup %5899 }
0x1227   :  { %v7495_v12 = vmul.f32 %v5900_v58, %v7462_v27  ;;  %v5902_v39 = vpop.eup %5901 }
0x1228   :  { %v7500_v10 = vmul.f32 %v5902_v39, %v7469_v6  ;;  %v5505_v6 = vld [vmem:[%s8227_s5 + $0x80] sm:$0xff]  }
0x1229   :  { %v2570_v21 = vpack.c.bf16 %v7495_v12, %v7492_v47  ;;  %5260 = vmatprep.subr.bf16.mxu0 %v5505_v6 }
0x122a   :  { %v5904_v32 = vpop.eup %5903  ;;  %5261 = vmatpush3.bf16.msra.mxu0 %v5505_v6 }
0x122b   :  { %5253 = vmatmul.mubr.bf16.vlgmr.msra.gmra.mrb[40].mxu1 %v2570_v21  ;;  %v7503_v43 = vmul.f32 %v5904_v32, %v7477_v61  ;;  %v5506_v61 = vld [vmem:[%s8227_s5 + $0x88] sm:$0xff]   ;;  %v5509_v32 = vld [vmem:[%s8227_s5 + $0xa0] sm:$0xff]  }
0x122c   :  { %v5906_v60 = vpop.eup %5905  ;;  %5262 = vmatprep.subr.bf16.mxu0 %v5506_v61 }
0x122d   :  { %v2571_v46 = vpack.c.bf16 %v7503_v43, %v7500_v10  ;;  %v7508_v27 = vmul.f32 %v5906_v60, %v7467_v22  ;;  %v5510_v60 = vld [vmem:[%s8227_s5 + $0xa8] sm:$0xff]  }
0x122e   :  { %v5908_v11 = vpop.eup %5907  ;;  %5263 = vmatpush3.bf16.msra.mxu0 %v5506_v61 }
0x122f   :  { %5256 = vmatprep.mubr.bf16.mxu1 %v2571_v46  ;;  %v7511_v44 = vmul.f32 %v5908_v11, %v7475_v5  ;;  %5264 = vmatprep.subr.bf16.mxu0 %v5507_v59  ;;  %v5511_v46 = vld [vmem:[%s8227_s5 + $0xb0] sm:$0xff]   ;;  %v5512_v11 = vld [vmem:[%s8227_s5 + $0xb8] sm:$0xff]  }
0x1231   :  { %v2572_v13 = vpack.c.bf16 %v7511_v44, %v7508_v27 }
0x1232   :  { %5265 = vmatpush3.bf16.msra.mxu0 %v5507_v59 }
0x1233   :  { %5257 = vmatmul.mubr.bf16.gmra.mrb[44].mxu1 %v2572_v13  ;;  %5266 = vmatprep.subr.bf16.mxu0 %v5508_v62 }
0x1236   :  { %5267 = vmatpush3.bf16.msra.mxu0 %v5508_v62 }
0x1237   :  { %5268 = vmatprep.subr.bf16.mxu0 %v5509_v32 }
0x123a   :  { %5269 = vmatpush3.bf16.msra.mxu0 %v5509_v32 }
0x123b   :  { %5270 = vmatprep.subr.bf16.mxu0 %v5510_v60 }
0x123e   :  { %5271 = vmatpush3.bf16.msra.mxu0 %v5510_v60 }
0x123f   :  { %5272 = vmatprep.subr.bf16.mxu0 %v5511_v46 }
0x1242   :  { %5273 = vmatpush3.bf16.msra.mxu0 %v5511_v46 }
0x1243   :  { %5274 = vmatprep.subr.bf16.mxu0 %v5512_v11 }
0x1246   :  { %5275 = vmatpush3.bf16.msra.mxu0 %v5512_v11 }
0x12fe   :  { %v7521_v3 = vpop.f32.mrb[40].mxu1 }
0x12ff   :  { %v7523_v22 = vpop.f32.mrb[41].mxu1 }
0x1300   :  { %2638 = vrot.lane.b32.xlu0 %v7523_v22, %s6329_s22  ;;  %v7527_v5 = vpop.f32.mrb[42].mxu1 }
0x1301   :  { %v7529_v18 = vpop.f32.mrb[43].mxu1 }
0x1302   :  { %2640 = vrot.lane.b32.xlu1 %v7529_v18, %s6329_s22 }
0x1304   :  { %2642 = vrot.lane.b32.xlu0 %v7521_v3, %s6329_s22 }
0x1306   :  { %2644 = vrot.lane.b32.xlu1 %v7527_v5, %s6329_s22  ;;  %v7543_v55 = vpop.f32.mrb[44].mxu1 }
0x1307   :  { %v7545_v58 = vpop.f32.mrb[45].mxu1 }
0x1308   :  { %2646 = vrot.lane.b32.xlu0 %v7545_v58, %s6329_s22  ;;  %v7549_v39 = vpop.f32.mrb[46].mxu1 }
0x1309   :  { %v7551_v21 = vpop.f32.mrb[47].mxu1 }
0x130a   :  { %2648 = vrot.lane.b32.xlu1 %v7551_v21, %s6329_s22 }
0x130c   :  { %2650 = vrot.lane.b32.xlu0 %v7543_v55, %s6329_s22 }
0x130e   :  { %2652 = vrot.lane.b32.xlu1 %v7549_v39, %s6329_s22 }
0x1372   :  { %v2639_v13 = vpop.permute.xlu0 %2638 }
0x1373   :  { %v4643_v6 = vmul.f32 -1.442695, %v2639_v13 }
0x1374   :  { %v2641_v61 = vpop.permute.xlu1 %2640 }
0x1375   :  { %5909 = vpow2.f32 %v4643_v6  ;;  %v4644_v59 = vmul.f32 -1.442695, %v2641_v61 }
0x1376   :  { %v2643_v62 = vpop.permute.xlu0 %2642 }
0x1377   :  { %5911 = vpow2.f32 %v4644_v59  ;;  %v4645_v32 = vmul.f32 -1.442695, %v2643_v62 }
0x1378   :  { %v2645_v60 = vpop.permute.xlu1 %2644 }
0x1379   :  { %5913 = vpow2.f32 %v4645_v32  ;;  %v4646_v33 = vmul.f32 -1.442695, %v2645_v60 }
0x137a   :  { %v2647_v37 = vpop.permute.xlu0 %2646 }
0x137b   :  { %5915 = vpow2.f32 %v4646_v33  ;;  %v4647_v31 = vmul.f32 -1.442695, %v2647_v37 }
0x137c   :  { %v2649_v36 = vpop.permute.xlu1 %2648 }
0x137d   :  { %5917 = vpow2.f32 %v4647_v31  ;;  %v4648_v41 = vmul.f32 -1.442695, %v2649_v36 }
0x137e   :  { %v2651_v46 = vpop.permute.xlu0 %2650 }
0x137f   :  { %v5910_v56 = vpop.eup %5909  ;;  %5919 = vpow2.f32 %v4648_v41  ;;  %v4649_v11 = vmul.f32 -1.442695, %v2651_v46 }
0x1380   :  { %v2678_v13 = vadd.f32 1.0, %v5910_v56  ;;  %v2653_v29 = vpop.permute.xlu1 %2652 }
0x1381   :  { %v5912_v6 = vpop.eup %5911  ;;  %5921 = vpow2.f32 %v4649_v11  ;;  %v4650_v61 = vmul.f32 -1.442695, %v2653_v29 }
0x1382   :  { %5923 = vrcp.f32 %v2678_v13  ;;  %v2679_v59 = vadd.f32 1.0, %v5912_v6  ;;  %v2561_v13 = vmul.f32 0.70710677, %v7485_v42 }
0x1383   :  { %v5914_v62 = vpop.eup %5913  ;;  %5925 = vpow2.f32 %v4650_v61 }
0x1384   :  { %5927 = vrcp.f32 %v2679_v59  ;;  %v2680_v32 = vadd.f32 1.0, %v5914_v62  ;;  %v2562_v62 = vmul.f32 0.70710677, %v7487_v52  ;;  %v2564_v52 = vmul.f32 0.70710677, %v7495_v12 }
0x1385   :  { %v5916_v33 = vpop.eup %5915 }
0x1386   :  { %5929 = vrcp.f32 %v2680_v32  ;;  %v2681_v37 = vadd.f32 1.0, %v5916_v33 }
0x1387   :  { %v5918_v31 = vpop.eup %5917 }
0x1388   :  { %5931 = vrcp.f32 %v2681_v37  ;;  %v2682_v36 = vadd.f32 1.0, %v5918_v31 }
0x1389   :  { %v5920_v60 = vpop.eup %5919 }
0x138a   :  { %5933 = vrcp.f32 %v2682_v36  ;;  %v2683_v41 = vadd.f32 1.0, %v5920_v60  ;;  %v2563_v60 = vmul.f32 0.70710677, %v7492_v47 }
0x138b   :  { %v5922_v56 = vpop.eup %5921 }
0x138c   :  { %v5924_v46 = vpop.eup %5923  ;;  %5935 = vrcp.f32 %v2683_v41  ;;  %v2684_v11 = vadd.f32 1.0, %v5922_v56 }
0x138d   :  { %v5926_v29 = vpop.eup %5925  ;;  %v2702_v6 = vmul.f32 %v5924_v46, %v7523_v22 }
0x138e   :  { %v5928_v61 = vpop.eup %5927  ;;  %5937 = vrcp.f32 %v2684_v11  ;;  %v2685_v59 = vadd.f32 1.0, %v5926_v29 }
0x138f   :  { %v2703_v32 = vmul.f32 %v5928_v61, %v7529_v18  ;;  %v7575_v33 = vadd.f32 %v2702_v6, %v2561_v13 }
0x1390   :  { %v5930_v37 = vpop.eup %5929  ;;  %5939 = vrcp.f32 %v2685_v59  ;;  %v2567_v59 = vmul.f32 0.70710677, %v7508_v27  ;;  %v5513_v27 = vld [vmem:[#allocation10 + $0x80] sm:$0xff]  }
0x1391   :  { %v2704_v31 = vmul.f32 %v5930_v37, %v7521_v3  ;;  %v7578_v36 = vadd.f32 %v2703_v32, %v2562_v62  ;;  %v2565_v3 = vmul.f32 0.70710677, %v7500_v10  ;;  %v2568_v32 = vmul.f32 0.70710677, %v7511_v44  ;;  %5284 = vmatprep.subr.bf16.mxu1 %v5513_v27 }
0x1392   :  { %v5932_v42 = vpop.eup %5931  ;;  %5285 = vmatpush3.bf16.msra.mxu1 %v5513_v27 }
0x1393   :  { %v2705_v22 = vmul.f32 %v5932_v42, %v7527_v5  ;;  %v2743_v41 = vpack.c.bf16 %v7578_v36, %v7575_v33  ;;  %v7585_v56 = vadd.f32 %v2704_v31, %v2563_v60  ;;  %v2566_v5 = vmul.f32 0.70710677, %v7503_v43 }
0x1394   :  { %v5934_v18 = vpop.eup %5933 }
0x1395   :  { %5276 = vmatprep.mubr.bf16.mxu0 %v2743_v41  ;;  %v7587_v46 = vadd.f32 %v2705_v22, %v2564_v52  ;;  %v2706_v11 = vmul.f32 %v5934_v18, %v7545_v58  ;;  %v5515_v22 = vld [vmem:[#allocation10 + $0x90] sm:$0xff]   ;;  %v5516_v41 = vld [vmem:[#allocation10 + $0x98] sm:$0xff]  }
0x1396   :  { %v5936_v29 = vpop.eup %5935 }
0x1397   :  { %v2744_v47 = vpack.c.bf16 %v7587_v46, %v7585_v56  ;;  %v2707_v13 = vmul.f32 %v5936_v29, %v7551_v21  ;;  %v7595_v6 = vadd.f32 %v2706_v11, %v2565_v3  ;;  %v5517_v29 = vld [vmem:[#allocation10 + $0xa0] sm:$0xff]  }
0x1398   :  { %v5938_v12 = vpop.eup %5937 }
0x1399   :  { %5277 = vmatmul.mubr.bf16.vlgmr.msra.gmra.mrb[48].mxu0 %v2744_v47  ;;  %v7597_v61 = vadd.f32 %v2707_v13, %v2566_v5  ;;  %v2708_v10 = vmul.f32 %v5938_v12, %v7543_v55  ;;  %v5514_v55 = vld [vmem:[#allocation10 + $0x88] sm:$0xff]   ;;  %v5519_v5 = vld [vmem:[#allocation10 + $0xb0] sm:$0xff]   ;;  %v5520_v13 = vld [vmem:[#allocation10 + $0xb8] sm:$0xff]  }
0x139a   :  { %v5940_v62 = vpop.eup %5939  ;;  %5286 = vmatprep.subr.bf16.mxu1 %v5514_v55  ;;  %v5518_v47 = vld [vmem:[#allocation10 + $0xa8] sm:$0xff]   ;;  %v7643_v12 = vld [vmem:[#allocation7] sm:$0xff]  }
0x139b   :  { %v2745_v58 = vpack.c.bf16 %v7597_v61, %v7595_v6  ;;  %v2709_v43 = vmul.f32 %v5940_v62, %v7549_v39  ;;  %v7605_v37 = vadd.f32 %v2708_v10, %v2567_v59  ;;  %5287 = vmatpush3.bf16.msra.mxu1 %v5514_v55 }
0x139c   :  { %5288 = vmatprep.subr.bf16.mxu1 %v5515_v22 }
0x139d   :  { %5280 = vmatprep.mubr.bf16.mxu0 %v2745_v58  ;;  %v7607_v21 = vadd.f32 %v2709_v43, %v2568_v32 }
0x139f   :  { %v2746_v31 = vpack.c.bf16 %v7607_v21, %v7605_v37  ;;  %5289 = vmatpush3.bf16.msra.mxu1 %v5515_v22 }
0x13a0   :  { %5290 = vmatprep.subr.bf16.mxu1 %v5516_v41 }
0x13a1   :  { %5281 = vmatmul.mubr.bf16.gmra.mrb[52].mxu0 %v2746_v31 }
0x13a3   :  { %5291 = vmatpush3.bf16.msra.mxu1 %v5516_v41 }
0x13a4   :  { %5292 = vmatprep.subr.bf16.mxu1 %v5517_v29 }
0x13a7   :  { %5293 = vmatpush3.bf16.msra.mxu1 %v5517_v29 }
0x13a8   :  { %5294 = vmatprep.subr.bf16.mxu1 %v5518_v47 }
0x13ab   :  { %5295 = vmatpush3.bf16.msra.mxu1 %v5518_v47 }
0x13ac   :  { %5296 = vmatprep.subr.bf16.mxu1 %v5519_v5 }
0x13af   :  { %5297 = vmatpush3.bf16.msra.mxu1 %v5519_v5 }
0x13b0   :  { %5298 = vmatprep.subr.bf16.mxu1 %v5520_v13 }
0x13b3   :  { %5299 = vmatpush3.bf16.msra.mxu1 %v5520_v13 }
0x13b4   :  { %5332 = vmatprep.subr.bf16.mxu1 %v7643_v12 }
0x146c   :  { %v7611_v60 = vpop.f32.mrb[48].mxu0 }
0x146d   :  { %v7613_v42 = vpop.f32.mrb[49].mxu0 }
0x146e   :  { %2860 = vrot.lane.b32.xlu0 %v7613_v42, %s6329_s22  ;;  %v7617_v44 = vpop.f32.mrb[50].mxu0 }
0x146f   :  { %v7619_v39 = vpop.f32.mrb[51].mxu0 }
0x1470   :  { %2862 = vrot.lane.b32.xlu1 %v7619_v39, %s6329_s22 }
0x1472   :  { %2864 = vrot.lane.b32.xlu0 %v7611_v60, %s6329_s22 }
0x1474   :  { %2866 = vrot.lane.b32.xlu1 %v7617_v44, %s6329_s22  ;;  %v7627_v52 = vpop.f32.mrb[52].mxu0 }
0x1475   :  { %v7629_v18 = vpop.f32.mrb[53].mxu0 }
0x1476   :  { %2868 = vrot.lane.b32.xlu0 %v7629_v18, %s6329_s22  ;;  %v7633_v3 = vpop.f32.mrb[54].mxu0 }
0x1477   :  { %v7635_v11 = vpop.f32.mrb[55].mxu0 }
0x1478   :  { %2870 = vrot.lane.b32.xlu1 %v7635_v11, %s6329_s22 }
0x147a   :  { %2872 = vrot.lane.b32.xlu0 %v7627_v52, %s6329_s22 }
0x147c   :  { %2874 = vrot.lane.b32.xlu1 %v7633_v3, %s6329_s22 }
0x14e0   :  { %v2861_v59 = vpop.permute.xlu0 %2860 }
0x14e1   :  { %v4675_v10 = vmul.f32 -1.442695, %v2861_v59 }
0x14e2   :  { %v2863_v62 = vpop.permute.xlu1 %2862 }
0x14e3   :  { %5941 = vpow2.f32 %v4675_v10  ;;  %v4676_v58 = vmul.f32 -1.442695, %v2863_v62 }
0x14e4   :  { %v2865_v32 = vpop.permute.xlu0 %2864 }
0x14e5   :  { %5943 = vpow2.f32 %v4676_v58  ;;  %v4677_v43 = vmul.f32 -1.442695, %v2865_v32 }
0x14e6   :  { %v2867_v31 = vpop.permute.xlu1 %2866 }
0x14e7   :  { %5945 = vpow2.f32 %v4677_v43  ;;  %v4678_v27 = vmul.f32 -1.442695, %v2867_v31 }
0x14e8   :  { %v2869_v55 = vpop.permute.xlu0 %2868 }
0x14e9   :  { %5947 = vpow2.f32 %v4678_v27  ;;  %v4679_v22 = vmul.f32 -1.442695, %v2869_v55 }
0x14ea   :  { %v2871_v41 = vpop.permute.xlu1 %2870 }
0x14eb   :  { %5949 = vpow2.f32 %v4679_v22  ;;  %v4680_v29 = vmul.f32 -1.442695, %v2871_v41 }
0x14ec   :  { %v2873_v47 = vpop.permute.xlu0 %2872 }
0x14ed   :  { %v5942_v5 = vpop.eup %5941  ;;  %5951 = vpow2.f32 %v4680_v29  ;;  %v4681_v13 = vmul.f32 -1.442695, %v2873_v47 }
0x14ee   :  { %v2900_v59 = vadd.f32 1.0, %v5942_v5  ;;  %v2875_v28 = vpop.permute.xlu1 %2874 }
0x14ef   :  { %v5944_v10 = vpop.eup %5943  ;;  %5953 = vpow2.f32 %v4681_v13  ;;  %v4682_v62 = vmul.f32 -1.442695, %v2875_v28 }
0x14f0   :  { %5955 = vrcp.f32 %v2900_v59  ;;  %v2901_v58 = vadd.f32 1.0, %v5944_v10  ;;  %v2718_v59 = vmul.f32 0.70710677, %v7575_v33 }
0x14f1   :  { %v5946_v32 = vpop.eup %5945  ;;  %5957 = vpow2.f32 %v4682_v62 }
0x14f2   :  { %5959 = vrcp.f32 %v2901_v58  ;;  %v2902_v43 = vadd.f32 1.0, %v5946_v32  ;;  %v2719_v32 = vmul.f32 0.70710677, %v7578_v36  ;;  %v2721_v36 = vmul.f32 0.70710677, %v7587_v46 }
0x14f3   :  { %v5948_v31 = vpop.eup %5947 }
0x14f4   :  { %5961 = vrcp.f32 %v2902_v43  ;;  %v2903_v27 = vadd.f32 1.0, %v5948_v31 }
0x14f5   :  { %v5950_v55 = vpop.eup %5949 }
0x14f6   :  { %5963 = vrcp.f32 %v2903_v27  ;;  %v2904_v22 = vadd.f32 1.0, %v5950_v55 }
0x14f7   :  { %v5952_v41 = vpop.eup %5951 }
0x14f8   :  { %5965 = vrcp.f32 %v2904_v22  ;;  %v2905_v29 = vadd.f32 1.0, %v5952_v41  ;;  %v2720_v41 = vmul.f32 0.70710677, %v7585_v56 }
0x14f9   :  { %v5954_v47 = vpop.eup %5953 }
0x14fa   :  { %v5956_v5 = vpop.eup %5955  ;;  %5967 = vrcp.f32 %v2905_v29  ;;  %v2906_v13 = vadd.f32 1.0, %v5954_v47 }
0x14fb   :  { %v5958_v28 = vpop.eup %5957  ;;  %v2924_v10 = vmul.f32 %v5956_v5, %v7613_v42 }
0x14fc   :  { %v5960_v62 = vpop.eup %5959  ;;  %5969 = vrcp.f32 %v2906_v13  ;;  %v2907_v58 = vadd.f32 1.0, %v5958_v28 }
0x14fd   :  { %v2925_v43 = vmul.f32 %v5960_v62, %v7619_v39  ;;  %v7650_v31 = vadd.f32 %v2924_v10, %v2718_v59 }
0x14fe   :  { %v5962_v27 = vpop.eup %5961  ;;  %5971 = vrcp.f32 %v2907_v58  ;;  %v2724_v58 = vmul.f32 0.70710677, %v7605_v37 }
0x14ff   :  { %v2926_v55 = vmul.f32 %v5962_v27, %v7611_v60  ;;  %v7653_v22 = vadd.f32 %v2925_v43, %v2719_v32  ;;  %v2722_v60 = vmul.f32 0.70710677, %v7595_v6 }
0x1500   :  { %v5964_v33 = vpop.eup %5963 }
0x1501   :  { %v2927_v42 = vmul.f32 %v5964_v33, %v7617_v44  ;;  %v2965_v29 = vpack.c.bf16 %v7653_v22, %v7650_v31  ;;  %v7660_v47 = vadd.f32 %v2926_v55, %v2720_v41  ;;  %v2723_v44 = vmul.f32 0.70710677, %v7597_v61  ;;  %v5523_v33 = vld [vmem:[%s8229_s7 + $0x90] sm:$0xff]  }
0x1502   :  { %v5966_v39 = vpop.eup %5965  ;;  %v2725_v61 = vmul.f32 0.70710677, %v7607_v21  ;;  %v5522_v21 = vld [vmem:[%s8229_s7 + $0x88] sm:$0xff]  }
0x1503   :  { %5300 = vmatprep.mubr.bf16.mxu1 %v2965_v29  ;;  %v7662_v5 = vadd.f32 %v2927_v42, %v2721_v36  ;;  %v2928_v13 = vmul.f32 %v5966_v39, %v7629_v18  ;;  %v5524_v42 = vld [vmem:[%s8229_s7 + $0x98] sm:$0xff]  }
0x1504   :  { %v5968_v28 = vpop.eup %5967 }
0x1505   :  { %v2966_v56 = vpack.c.bf16 %v7662_v5, %v7660_v47  ;;  %v2929_v59 = vmul.f32 %v5968_v28, %v7635_v11  ;;  %v7670_v10 = vadd.f32 %v2928_v13, %v2722_v60  ;;  %v5525_v13 = vld [vmem:[%s8229_s7 + $0xa0] sm:$0xff]   ;;  %v5526_v28 = vld [vmem:[%s8229_s7 + $0xa8] sm:$0xff]  }
0x1506   :  { %v5970_v46 = vpop.eup %5969 }
0x1507   :  { %5301 = vmatmul.mubr.bf16.vlgmr.msra.gmra.mrb[48].mxu1 %v2966_v56  ;;  %v7672_v62 = vadd.f32 %v2929_v59, %v2723_v44  ;;  %v2930_v6 = vmul.f32 %v5970_v46, %v7627_v52  ;;  %v5521_v52 = vld [vmem:[%s8229_s7 + $0x80] sm:$0xff]   ;;  %v5527_v56 = vld [vmem:[%s8229_s7 + $0xb0] sm:$0xff]   ;;  %v5528_v44 = vld [vmem:[%s8229_s7 + $0xb8] sm:$0xff]  }
0x1508   :  { %v5972_v32 = vpop.eup %5971  ;;  %5333 = vmatpush3.bf16.msra.mxu1 %v7643_v12  ;;  %5308 = vmatprep.subr.bf16.mxu0 %v5521_v52  ;;  %v7743_v59 = vld [vmem:[#allocation8] sm:$0xff]  }
0x1509   :  { %v2967_v18 = vpack.c.bf16 %v7672_v62, %v7670_v10  ;;  %v2931_v11 = vmul.f32 %v5972_v32, %v7633_v3  ;;  %v7681_v43 = vadd.f32 %v2930_v6, %v2724_v58  ;;  %5309 = vmatpush3.bf16.msra.mxu0 %v5521_v52 }
0x150a   :  { %5310 = vmatprep.subr.bf16.mxu0 %v5522_v21 }
0x150b   :  { %5304 = vmatprep.mubr.bf16.mxu1 %v2967_v18  ;;  %v7683_v27 = vadd.f32 %v2931_v11, %v2725_v61 }
0x150d   :  { %v2968_v37 = vpack.c.bf16 %v7683_v27, %v7681_v43  ;;  %5311 = vmatpush3.bf16.msra.mxu0 %v5522_v21 }
0x150e   :  { %5312 = vmatprep.subr.bf16.mxu0 %v5523_v33 }
0x150f   :  { %5305 = vmatmul.mubr.bf16.gmra.mrb[52].mxu1 %v2968_v37 }
0x1511   :  { %5313 = vmatpush3.bf16.msra.mxu0 %v5523_v33 }
0x1512   :  { %5314 = vmatprep.subr.bf16.mxu0 %v5524_v42 }
0x1515   :  { %5315 = vmatpush3.bf16.msra.mxu0 %v5524_v42 }
0x1516   :  { %5316 = vmatprep.subr.bf16.mxu0 %v5525_v13 }
0x1519   :  { %5317 = vmatpush3.bf16.msra.mxu0 %v5525_v13 }
0x151a   :  { %5318 = vmatprep.subr.bf16.mxu0 %v5526_v28 }
0x151d   :  { %5319 = vmatpush3.bf16.msra.mxu0 %v5526_v28 }
0x151e   :  { %5320 = vmatprep.subr.bf16.mxu0 %v5527_v56 }
0x1521   :  { %5321 = vmatpush3.bf16.msra.mxu0 %v5527_v56 }
0x1522   :  { %5322 = vmatprep.subr.bf16.mxu0 %v5528_v44 }
0x1525   :  { %5323 = vmatpush3.bf16.msra.mxu0 %v5528_v44 }
0x1526   :  { %5342 = vmatprep.subr.bf16.mxu0 %v7743_v59 }
0x15da   :  { %v7693_v3 = vpop.f32.mrb[48].mxu1 }
0x15db   :  { %v7695_v12 = vpop.f32.mrb[49].mxu1 }
0x15dc   :  { %3082 = vrot.lane.b32.xlu0 %v7695_v12, %s6329_s22  ;;  %v7699_v55 = vpop.f32.mrb[50].mxu1 }
0x15dd   :  { %v7701_v41 = vpop.f32.mrb[51].mxu1 }
0x15de   :  { %3084 = vrot.lane.b32.xlu1 %v7701_v41, %s6329_s22 }
0x15e0   :  { %3086 = vrot.lane.b32.xlu0 %v7693_v3, %s6329_s22 }
0x15e2   :  { %3088 = vrot.lane.b32.xlu1 %v7699_v55, %s6329_s22  ;;  %v7715_v29 = vpop.f32.mrb[52].mxu1 }
0x15e3   :  { %v7717_v36 = vpop.f32.mrb[53].mxu1 }
0x15e4   :  { %3090 = vrot.lane.b32.xlu0 %v7717_v36, %s6329_s22  ;;  %v7721_v39 = vpop.f32.mrb[54].mxu1 }
0x15e5   :  { %v7723_v60 = vpop.f32.mrb[55].mxu1 }
0x15e6   :  { %3092 = vrot.lane.b32.xlu1 %v7723_v60, %s6329_s22 }
0x15e8   :  { %3094 = vrot.lane.b32.xlu0 %v7715_v29, %s6329_s22 }
0x15ea   :  { %3096 = vrot.lane.b32.xlu1 %v7721_v39, %s6329_s22 }
0x164e   :  { %v3083_v46 = vpop.permute.xlu0 %3082 }
0x164f   :  { %v4691_v58 = vmul.f32 -1.442695, %v3083_v46 }
0x1650   :  { %v3085_v6 = vpop.permute.xlu1 %3084 }
0x1651   :  { %5973 = vpow2.f32 %v4691_v58  ;;  %v4692_v32 = vmul.f32 -1.442695, %v3085_v6 }
0x1652   :  { %v3087_v18 = vpop.permute.xlu0 %3086 }
0x1653   :  { %5975 = vpow2.f32 %v4692_v32  ;;  %v4693_v61 = vmul.f32 -1.442695, %v3087_v18 }
0x1654   :  { %v3089_v11 = vpop.permute.xlu1 %3088 }
0x1655   :  { %5977 = vpow2.f32 %v4693_v61  ;;  %v4694_v37 = vmul.f32 -1.442695, %v3089_v11 }
0x1656   :  { %v3091_v52 = vpop.permute.xlu0 %3090 }
0x1657   :  { %5979 = vpow2.f32 %v4694_v37  ;;  %v4695_v21 = vmul.f32 -1.442695, %v3091_v52 }
0x1658   :  { %v3093_v33 = vpop.permute.xlu1 %3092 }
0x1659   :  { %5981 = vpow2.f32 %v4695_v21  ;;  %v4696_v42 = vmul.f32 -1.442695, %v3093_v33 }
0x165a   :  { %v3095_v13 = vpop.permute.xlu0 %3094 }
0x165b   :  { %v5974_v28 = vpop.eup %5973  ;;  %5983 = vpow2.f32 %v4696_v42  ;;  %v4697_v56 = vmul.f32 -1.442695, %v3095_v13 }
0x165c   :  { %v3122_v44 = vadd.f32 1.0, %v5974_v28  ;;  %v3097_v46 = vpop.permute.xlu1 %3096 }
0x165d   :  { %v5976_v58 = vpop.eup %5975  ;;  %5985 = vpow2.f32 %v4697_v56  ;;  %v4698_v6 = vmul.f32 -1.442695, %v3097_v46 }
0x165e   :  { %5987 = vrcp.f32 %v3122_v44  ;;  %v3123_v32 = vadd.f32 1.0, %v5976_v58  ;;  %v2940_v44 = vmul.f32 0.70710677, %v7650_v31  ;;  %v2049_v31 = vmax.f32 %v7287_v48, 0.0 }
0x165f   :  { %v5978_v18 = vpop.eup %5977  ;;  %5989 = vpow2.f32 %v4698_v6 }
0x1660   :  { %5991 = vrcp.f32 %v3123_v32  ;;  %v3124_v61 = vadd.f32 1.0, %v5978_v18  ;;  %v2941_v18 = vmul.f32 0.70710677, %v7653_v22 }
0x1661   :  { %v5980_v11 = vpop.eup %5979 }
0x1662   :  { %5993 = vrcp.f32 %v3124_v61  ;;  %v3125_v37 = vadd.f32 1.0, %v5980_v11 }
0x1663   :  { %v5982_v52 = vpop.eup %5981 }
0x1664   :  { %5995 = vrcp.f32 %v3125_v37  ;;  %v3126_v21 = vadd.f32 1.0, %v5982_v52 }
0x1665   :  { %v5984_v33 = vpop.eup %5983 }
0x1666   :  { %5997 = vrcp.f32 %v3126_v21  ;;  %v3127_v42 = vadd.f32 1.0, %v5984_v33 }
0x1667   :  { %v5986_v13 = vpop.eup %5985 }
0x1668   :  { %v5988_v28 = vpop.eup %5987  ;;  %5999 = vrcp.f32 %v3127_v42  ;;  %v3128_v56 = vadd.f32 1.0, %v5986_v13  ;;  %v2942_v42 = vmul.f32 0.70710677, %v7660_v47 }
0x1669   :  { %v5990_v46 = vpop.eup %5989  ;;  %v3146_v58 = vmul.f32 %v5988_v28, %v7695_v12  ;;  %v2050_v12 = vmax.f32 %v7289_v57, 0.0  ;;  %v2943_v28 = vmul.f32 0.70710677, %v7662_v5  ;;  %v2051_v5 = vmax.f32 %v7297_v35, 0.0 }
0x166a   :  { %v5992_v6 = vpop.eup %5991  ;;  %6001 = vrcp.f32 %v3128_v56  ;;  %v3129_v32 = vadd.f32 1.0, %v5990_v46 }
0x166b   :  { %v3147_v61 = vmul.f32 %v5992_v6, %v7701_v41  ;;  %v3154_v11 = vadd.f32 %v3146_v58, %v2940_v44  ;;  %v2944_v58 = vmul.f32 0.70710677, %v7670_v10 }
0x166c   :  { %v5994_v37 = vpop.eup %5993  ;;  %6003 = vrcp.f32 %v3129_v32 }
0x166d   :  { %v3148_v52 = vmul.f32 %v5994_v37, %v7693_v3  ;;  %v3155_v21 = vadd.f32 %v3147_v61, %v2941_v18  ;;  %v3162_v33 = vmax.f32 %v3154_v11, 0.0  ;;  %v2945_v18 = vmul.f32 0.70710677, %v7672_v62 }
0x166e   :  { %v5996_v13 = vpop.eup %5995  ;;  %v2053_v62 = vmax.f32 %v7307_v23, 0.0 }
0x166f   :  { %v3149_v22 = vmul.f32 %v5996_v13, %v7699_v55  ;;  %v3163_v56 = vmax.f32 %v3155_v21, 0.0  ;;  %v3211_v41 = vpack.c.bf16 %v3155_v21, %v3154_v11  ;;  %v3156_v46 = vadd.f32 %v3148_v52, %v2942_v42 }
0x1670   :  { %v5998_v44 = vpop.eup %5997  ;;  %v7757_v3 = vadd.f32 %v3162_v33, %v2049_v31  ;;  %v2052_v55 = vmax.f32 %v7299_v16, 0.0  ;;  %v2946_v21 = vmul.f32 0.70710677, %v7681_v43  ;;  %v2054_v31 = vmax.f32 %v7309_v26, 0.0 }
0x1671   :  { %5324 = vmatprep.mubr.bf16.mxu0 %v3211_v41  ;;  %v3157_v6 = vadd.f32 %v3149_v22, %v2943_v28  ;;  %v3164_v47 = vmax.f32 %v3156_v46, 0.0  ;;  %v3150_v32 = vmul.f32 %v5998_v44, %v7717_v36  ;;  %v7760_v48 = vadd.f32 %v3163_v56, %v2050_v12  ;;  %v6179_v56 = vld [vmem:[#allocation8 + $0x8] sm:$0xff]  }
0x1672   :  { %v6000_v57 = vpop.eup %5999  ;;  %v2056_v26 = vmax.f32 %v7320_v53, 0.0  ;;  %v6184_v53 = vld [vmem:[#allocation8 + $0x30] sm:$0xff]  }
0x1673   :  { %v3165_v61 = vmax.f32 %v3157_v6, 0.0  ;;  %v3212_v11 = vpack.c.bf16 %v3157_v6, %v3156_v46  ;;  %v3151_v10 = vmul.f32 %v6000_v57, %v7723_v60  ;;  %v3158_v37 = vadd.f32 %v3150_v32, %v2944_v58  ;;  %v6180_v58 = vld [vmem:[#allocation8 + $0x10] sm:$0xff]   ;;  %v6183_v32 = vld [vmem:[#allocation8 + $0x28] sm:$0xff]   ;;  %v6185_v57 = vld [vmem:[#allocation8 + $0x38] sm:$0xff]  }
0x1674   :  { %v6002_v52 = vpop.eup %6001  ;;  %v7767_v33 = vadd.f32 %v3164_v47, %v2051_v5  ;;  %v2947_v60 = vmul.f32 0.70710677, %v7683_v27  ;;  %v6181_v47 = vld [vmem:[#allocation8 + $0x18] sm:$0xff]  }
0x1675   :  { %5325 = vmatmul.mubr.bf16.vlgmr.msra.gmra.mrb[56].mxu0 %v3212_v11  ;;  %v3159_v36 = vadd.f32 %v3151_v10, %v2945_v18  ;;  %v3166_v42 = vmax.f32 %v3158_v37, 0.0  ;;  %v3152_v13 = vmul.f32 %v6002_v52, %v7715_v29  ;;  %v7770_v35 = vadd.f32 %v3165_v61, %v2052_v55 }
0x1676   :  { %v6004_v16 = vpop.eup %6003  ;;  %5343 = vmatpush3.bf16.msra.mxu0 %v7743_v59  ;;  %v2055_v29 = vmax.f32 %v7318_v51, 0.0  ;;  %v6182_v51 = vld [vmem:[#allocation8 + $0x20] sm:$0xff]  }
0x1677   :  { %v3167_v12 = vmax.f32 %v3159_v36, 0.0  ;;  %v3213_v43 = vpack.c.bf16 %v3159_v36, %v3158_v37  ;;  %v3153_v28 = vmul.f32 %v6004_v16, %v7721_v39  ;;  %v3160_v22 = vadd.f32 %v3152_v13, %v2946_v21  ;;  %5344 = vmatprep.subr.bf16.mxu0 %v6179_v56 }
0x1678   :  { %v7777_v41 = vadd.f32 %v3166_v42, %v2053_v62 }
0x1679   :  { %5328 = vmatprep.mubr.bf16.mxu0 %v3213_v43  ;;  %v3161_v46 = vadd.f32 %v3153_v28, %v2947_v60  ;;  %v3168_v23 = vmax.f32 %v3160_v22, 0.0  ;;  %v7780_v44 = vadd.f32 %v3167_v12, %v2054_v31 }
0x167a   :  { %5345 = vmatpush3.bf16.msra.mxu0 %v6179_v56 }
0x167b   :  { %v3169_v27 = vmax.f32 %v3161_v46, 0.0  ;;  %v3214_v59 = vpack.c.bf16 %v3161_v46, %v3160_v22  ;;  %5346 = vmatprep.subr.bf16.mxu0 %v6180_v58  ;;  %v7783_v39 = vadd.f32 %v3168_v23, %v2055_v29 }
0x167d   :  { %5329 = vmatmul.mubr.bf16.gmra.mrb[60].mxu0 %v3214_v59  ;;  %v7785_v6 = vadd.f32 %v3169_v27, %v2056_v26 }
0x167e   :  { %5347 = vmatpush3.bf16.msra.mxu0 %v6180_v58 }
0x167f   :  { %5348 = vmatprep.subr.bf16.mxu0 %v6181_v47 }
0x1682   :  { %5349 = vmatpush3.bf16.msra.mxu0 %v6181_v47 }
0x1683   :  { %5350 = vmatprep.subr.bf16.mxu0 %v6182_v51 }
0x1686   :  { %5351 = vmatpush3.bf16.msra.mxu0 %v6182_v51 }
0x1687   :  { %5352 = vmatprep.subr.bf16.mxu0 %v6183_v32 }
0x168a   :  { %5353 = vmatpush3.bf16.msra.mxu0 %v6183_v32 }
0x168b   :  { %5354 = vmatprep.subr.bf16.mxu0 %v6184_v53 }
0x168e   :  { %5355 = vmatpush3.bf16.msra.mxu0 %v6184_v53 }
0x168f   :  { %5356 = vmatprep.subr.bf16.mxu0 %v6185_v57 }
0x1692   :  { %5357 = vmatpush3.bf16.msra.mxu0 %v6185_v57 }
0x1748   :  { %v7787_v5 = vpop.f32.mrb[56].mxu0 }
0x1749   :  { %v7789_v55 = vpop.f32.mrb[57].mxu0  ;;  %v3331_v52 = vsel %vm157_vm0, %v7787_v5, 0.0 }
0x174a   :  { %v7791_v18 = vpop.f32.mrb[58].mxu0  ;;  %v3328_v11 = vsel %vm157_vm0, %v7789_v55, 0.0 }
0x174b   :  { %v7793_v61 = vpop.f32.mrb[59].mxu0  ;;  %v3333_v36 = vsel %vm157_vm0, %v7791_v18, 0.0 }
0x174c   :  { %v3329_v10 = vsel %vm157_vm0, %v7793_v61, 0.0 }
0x174d   :  { %v3330_v37 = vadd.f32 %v3329_v10, %v3328_v11 }
0x174f   :  { %v3332_v21 = vadd.f32 %v3331_v52, %v3330_v37 }
0x1750   :  { %v7803_v42 = vpop.f32.mrb[60].mxu0 }
0x1751   :  { %v7805_v13 = vpop.f32.mrb[61].mxu0  ;;  %v3334_v16 = vadd.f32 %v3333_v36, %v3332_v21  ;;  %v3339_v22 = vsel %vm157_vm0, %v7803_v42, 0.0 }
0x1752   :  { %v3335_v62 = vsel %vm157_vm0, %v7805_v13, 0.0  ;;  %v7809_v31 = vpop.f32.mrb[62].mxu0 }
0x1753   :  { %v3336_v60 = vadd.f32 %v3335_v62, %v3334_v16  ;;  %v7811_v12 = vpop.f32.mrb[63].mxu0  ;;  %v3341_v29 = vsel %vm157_vm0, %v7809_v31, 0.0 }
0x1754   :  { %v3337_v43 = vsel %vm157_vm0, %v7811_v12, 0.0 }
0x1755   :  { %v3338_v28 = vadd.f32 %v3337_v43, %v3336_v60 }
0x1757   :  { %v3340_v56 = vadd.f32 %v3339_v22, %v3338_v28 }
0x1759   :  { %v3342_v46 = vadd.f32 %v3341_v29, %v3340_v56 }
0x175b   :  { %v3343_v23 = vrot.slane %v3342_v46, 4 }
0x175d   :  { %v3344_v26 = vadd.f32 %v3343_v23, %v3342_v46 }
0x175f   :  { %v3345_v27 = vrot.slane %v3344_v26, 2 }
0x1761   :  { %v3346_v59 = vadd.f32 %v3345_v27, %v3344_v26 }
0x1763   :  { %v3347_v58 = vrot.slane %v3346_v59, 1 }
0x1765   :  { %v3348_v47 = vadd.f32 %v3347_v58, %v3346_v59 }
0x1767   :  { %v3349_v51 = vmul.f32 0.015625, %v3348_v47 }
0x1769   :  { %v3350_v32 = vsub.f32 %v7789_v55, %v3349_v51  ;;  %v3351_v53 = vsub.f32 %v7793_v61, %v3349_v51  ;;  %v3352_v57 = vsub.f32 %v7787_v5, %v3349_v51  ;;  %v3353_v11 = vsub.f32 %v7791_v18, %v3349_v51 }
0x176a   :  { %v3354_v10 = vsub.f32 %v7805_v13, %v3349_v51  ;;  %v3355_v37 = vsub.f32 %v7811_v12, %v3349_v51  ;;  %v3356_v52 = vsub.f32 %v7803_v42, %v3349_v51  ;;  %v3357_v21 = vsub.f32 %v7809_v31, %v3349_v51 }
0x176b   :  { %v3358_v36 = vmul.f32 %v3350_v32, %v3350_v32  ;;  %v3359_v16 = vmul.f32 %v3351_v53, %v3351_v53  ;;  %v3360_v62 = vmul.f32 %v3352_v57, %v3352_v57  ;;  %v3361_v60 = vmul.f32 %v3353_v11, %v3353_v11 }
0x176c   :  { %v3362_v56 = vmul.f32 %v3354_v10, %v3354_v10  ;;  %v3363_v23 = vmul.f32 %v3355_v37, %v3355_v37  ;;  %v3364_v59 = vmul.f32 %v3356_v52, %v3356_v52  ;;  %v3365_v32 = vmul.f32 %v3357_v21, %v3357_v21  ;;  %v4723_v21 = vld [vmem:[%s8230_s8 + $0x2] sm:$0x1] }
0x176d   :  { %v3366_v43 = vsel %vm157_vm0, %v3358_v36, 0.0  ;;  %v3367_v28 = vsel %vm157_vm0, %v3359_v16, 0.0  ;;  %v3369_v29 = vsel %vm157_vm0, %v3360_v62, 0.0  ;;  %v3371_v26 = vsel %vm157_vm0, %v3361_v60, 0.0 }
0x176e   :  { %v3368_v22 = vadd.f32 %v3367_v28, %v3366_v43  ;;  %v3373_v58 = vsel %vm157_vm0, %v3362_v56, 0.0  ;;  %v3375_v53 = vsel %vm157_vm0, %v3363_v23, 0.0  ;;  %v3377_v11 = vsel %vm157_vm0, %v3364_v59, 0.0 }
0x176f   :  { %v3379_v10 = vsel %vm157_vm0, %v3365_v32, 0.0  ;;  %v3179_v56 = vsub.f32 1.3, %v7423_v0  ;;  %v3178_v23 = vsub.f32 1.3, %v7425_v30 }
0x1770   :  { %v3370_v46 = vadd.f32 %v3369_v29, %v3368_v22  ;;  %v8247_v59 = vsub.f32 1.3, %v6960_v50  ;;  %v3181_v0 = vsub.f32 1.3, %v7434_v2 }
0x1772   :  { %v3372_v27 = vadd.f32 %v3371_v26, %v3370_v46 }
0x1774   :  { %v3374_v47 = vadd.f32 %v3373_v58, %v3372_v27  ;;  %v4724_v27 = vld [vmem:[%s8231_s9 + $0x2] sm:$0x1]  ;;  %v3187_v58 = vmul.f32 %v3179_v56, %v8247_v59 }
0x1776   :  { %v3376_v57 = vadd.f32 %v3375_v53, %v3374_v47  ;;  %v3180_v47 = vsub.f32 1.3, %v7432_v9 }
0x1778   :  { %v3378_v36 = vadd.f32 %v3377_v11, %v3376_v57  ;;  %v3182_v57 = vsub.f32 1.3, %v7440_v34  ;;  %v8248_v11 = vsub.f32 1.3, %v6962_v7 }
0x177a   :  { %v3380_v16 = vadd.f32 %v3379_v10, %v3378_v36  ;;  %v3186_v30 = vmul.f32 %v3178_v23, %v8248_v11  ;;  %v3184_v36 = vsub.f32 1.3, %v7444_v17  ;;  %v3183_v10 = vsub.f32 1.3, %v7442_v63 }
0x177b   :  { %v8249_v63 = vsub.f32 1.3, %v6977_v40 }
0x177c   :  { %v3381_v62 = vrot.slane %v3380_v16, 4 }
0x177e   :  { %v3382_v43 = vadd.f32 %v3381_v62, %v3380_v16  ;;  %v3185_v16 = vsub.f32 1.3, %v7451_v38  ;;  %v3190_v38 = vmul.f32 %v3182_v57, %v8249_v63 }
0x1780   :  { %v3383_v37 = vrot.slane %v3382_v43, 2 }
0x1782   :  { %v3384_v28 = vadd.f32 %v3383_v37, %v3382_v43  ;;  %v8250_v37 = vsub.f32 1.3, %v6969_v54 }
0x1784   :  { %v3385_v60 = vrot.slane %v3384_v28, 1 }
0x1786   :  { %v3386_v22 = vadd.f32 %v3385_v60, %v3384_v28 }
0x1788   :  { %v3387_v52 = vmul.f32 0.015625, %v3386_v22 }
0x178a   :  { %v3390_v29 = vadd.f32 1e-05, %v3387_v52 }
0x178c   :  { %6005 = vrsqrt.f32 %v3390_v29 }
0x1796   :  { %v6006_v46 = vpop.eup %6005 }
0x1797   :  { %v3392_v26 = vmul.f32 %v6006_v46, %v4723_v21 }
0x1799   :  { %v3395_v32 = vmul.f32 %v3392_v26, %v3349_v51  ;;  %v3401_v53 = vrot.slane %v3392_v26, %v6929_v8 }
0x179b   :  { %v3396_v50 = vsub.f32 %v4724_v27, %v3395_v32  ;;  %v3408_v62 = vmul.f32 %v3401_v53, %v7811_v12  ;;  %v3404_v9 = vmul.f32 %v3401_v53, %v7793_v61  ;;  %v3403_v51 = vmul.f32 %v3401_v53, %v7789_v55 }
0x179c   :  { %v3407_v34 = vmul.f32 %v3401_v53, %v7805_v13  ;;  %v3405_v2 = vmul.f32 %v7787_v5, %v3401_v53  ;;  %v3409_v7 = vmul.f32 %v7803_v42, %v3401_v53  ;;  %v3406_v43 = vmul.f32 %v7791_v18, %v3401_v53 }
0x179d   :  { %v3415_v17 = vrot.slane %v3396_v50, %v6929_v8  ;;  %v3188_v12 = vmul.f32 %v3180_v47, %v8250_v37  ;;  %v3410_v61 = vmul.f32 %v7809_v31, %v3401_v53  ;;  %v8251_v55 = vsub.f32 1.3, %v6981_v4 }
0x179e   :  { %v8252_v13 = vsub.f32 1.3, %v6971_v49  ;;  %v8253_v42 = vsub.f32 1.3, %v6979_v45  ;;  %v8254_v18 = vsub.f32 1.3, %v6988_v1 }
0x179f   :  { %v3192_v28 = vmul.f32 %v3184_v36, %v8251_v55  ;;  %v3422_v22 = vadd.f32 %v3415_v17, %v3408_v62  ;;  %v3418_v40 = vadd.f32 %v3415_v17, %v3404_v9  ;;  %v3417_v52 = vadd.f32 %v3415_v17, %v3403_v51 }
0x17a0   :  { %v3189_v5 = vmul.f32 %v3181_v0, %v8252_v13  ;;  %v3191_v60 = vmul.f32 %v3183_v10, %v8253_v42  ;;  %v3193_v8 = vmul.f32 %v3185_v16, %v8254_v18  ;;  %v3421_v29 = vadd.f32 %v3415_v17, %v3407_v34 }
0x17a1   :  { %v3419_v54 = vadd.f32 %v3415_v17, %v3405_v2  ;;  %v3423_v21 = vadd.f32 %v3415_v17, %v3409_v7  ;;  %v3420_v56 = vadd.f32 %v3415_v17, %v3406_v43  ;;  %v3424_v31 = vadd.f32 %v3415_v17, %v3410_v61 }
0x17a2   :  { %v3426_v46 = vmul.f32 %v3418_v40, %v3187_v58  ;;  %v3425_v4 = vmul.f32 %v3417_v52, %v3186_v30  ;;  %v3429_v23 = vmul.f32 %v3421_v29, %v3190_v38  ;;  %v3430_v26 = vmul.f32 %v3422_v22, %v3191_v60 }
0x17a3   :  { %v3427_v49 = vmul.f32 %v3419_v54, %v3188_v12  ;;  %v3431_v27 = vmul.f32 %v3423_v21, %v3192_v28  ;;  %v3428_v59 = vmul.f32 %v3420_v56, %v3189_v5  ;;  %v3432_v45 = vmul.f32 %v3424_v31, %v3193_v8 }
0x17a4   :  { %v3436_v47 = vsel %vm157_vm0, %v3426_v46, -inf  ;;  %v3433_v1 = vsel %vm157_vm0, %v3425_v4, -inf  ;;  %v3445_v32 = vsel %vm157_vm0, %v3429_v23, -inf  ;;  %v3448_v0 = vsel %vm157_vm0, %v3430_v26, -inf }
0x17a5   :  { %3437 = vmax.xlane.f32.xlu1 %v3436_v47  ;;  %3434 = vmax.xlane.f32.xlu0 %v3433_v1  ;;  %v3439_v53 = vsel %vm157_vm0, %v3427_v49, -inf  ;;  %v3451_v58 = vsel %vm157_vm0, %v3431_v27, -inf  ;;  %v3442_v57 = vsel %vm157_vm0, %v3428_v59, -inf  ;;  %v3454_v11 = vsel %vm157_vm0, %v3432_v45, -inf }
0x17a9   :  { %3446 = vmax.xlane.f32.xlu1 %v3445_v32  ;;  %3440 = vmax.xlane.f32.xlu0 %v3439_v53 }
0x17ad   :  { %3452 = vmax.xlane.f32.xlu1 %v3451_v58  ;;  %3443 = vmax.xlane.f32.xlu0 %v3442_v57 }
0x17b1   :  { %3449 = vmax.xlane.f32.xlu0 %v3448_v0 }
0x17b5   :  { %3455 = vmax.xlane.f32.xlu0 %v3454_v11 }
0x1832   :  { %v3438_v30 = vpop.xlane.xlu1 %3437  ;;  %v3435_v36 = vpop.xlane.xlu0 %3434 }
0x1833   :  { %v3458_v10 = vsub.f32 %v3426_v46, %v3438_v30  ;;  %v3457_v16 = vsub.f32 %v3425_v4, %v3435_v36 }
0x1835   :  { %v3467_v50 = vmul.f32 1.442695, %v3458_v10  ;;  %v3465_v62 = vmul.f32 1.442695, %v3457_v16 }
0x1836   :  { %v3447_v9 = vpop.xlane.xlu1 %3446  ;;  %v3441_v51 = vpop.xlane.xlu0 %3440 }
0x1837   :  { %6007 = vpow2.f32 %v3467_v50  ;;  %v3461_v34 = vsub.f32 %v3429_v23, %v3447_v9  ;;  %v3459_v2 = vsub.f32 %v3427_v49, %v3441_v51 }
0x1838   :  { %6009 = vpow2.f32 %v3465_v62 }
0x1839   :  { %v3469_v7 = vmul.f32 1.442695, %v3459_v2  ;;  %v3473_v43 = vmul.f32 1.442695, %v3461_v34 }
0x183a   :  { %v3453_v17 = vpop.xlane.xlu1 %3452  ;;  %v3444_v63 = vpop.xlane.xlu0 %3443 }
0x183b   :  { %v3463_v38 = vsub.f32 %v3431_v27, %v3453_v17  ;;  %v3460_v37 = vsub.f32 %v3428_v59, %v3444_v63  ;;  %6011 = vpow2.f32 %v3469_v7 }
0x183c   :  { %6013 = vpow2.f32 %v3473_v43 }
0x183d   :  { %v3471_v12 = vmul.f32 1.442695, %v3460_v37  ;;  %v3477_v61 = vmul.f32 1.442695, %v3463_v38 }
0x183e   :  { %v3450_v55 = vpop.xlane.xlu0 %3449 }
0x183f   :  { %v3462_v28 = vsub.f32 %v3430_v26, %v3450_v55  ;;  %6015 = vpow2.f32 %v3471_v12 }
0x1840   :  { %6017 = vpow2.f32 %v3477_v61 }
0x1841   :  { %v6008_v13 = vpop.eup %6007  ;;  %v3475_v5 = vmul.f32 1.442695, %v3462_v28 }
0x1842   :  { %v6010_v42 = vpop.eup %6009  ;;  %v3456_v60 = vpop.xlane.xlu0 %3455  ;;  %v3484_v18 = vsel %vm157_vm0, %v6008_v13, 0.0 }
0x1843   :  { %6019 = vpow2.f32 %v3475_v5  ;;  %v3464_v8 = vsub.f32 %v3432_v45, %v3456_v60  ;;  %3485 = vadd.xlane.f32.xlu0 %v3484_v18  ;;  %v3481_v22 = vsel %vm157_vm0, %v6010_v42, 0.0  ;;  %v8255_v5 = vld [vmem:[#allocation16_spill] sm:$0xff]  ;;  %v8256_v60 = vld [vmem:[#allocation17_spill] sm:$0xff] }
0x1844   :  { %3482 = vadd.xlane.f32.xlu1 %v3481_v22 }
0x1845   :  { %v3479_v40 = vmul.f32 1.442695, %v3464_v8  ;;  %v6012_v52 = vpop.eup %6011 }
0x1846   :  { %v3487_v29 = vsel %vm157_vm0, %v6012_v52, 0.0  ;;  %v6014_v54 = vpop.eup %6013 }
0x1847   :  { %6021 = vpow2.f32 %v3479_v40  ;;  %v3493_v56 = vsel %vm157_vm0, %v6014_v54, 0.0 }
0x1848   :  { %3488 = vadd.xlane.f32.xlu1 %v3487_v29 }
0x1849   :  { %v6016_v21 = vpop.eup %6015 }
0x184a   :  { %v3490_v31 = vsel %vm157_vm0, %v6016_v21, 0.0  ;;  %v6018_v46 = vpop.eup %6017 }
0x184b   :  { %3491 = vadd.xlane.f32.xlu0 %v3490_v31  ;;  %v3499_v26 = vsel %vm157_vm0, %v6018_v46, 0.0 }
0x184c   :  { %3494 = vadd.xlane.f32.xlu1 %v3493_v56 }
0x184d   :  { %v6020_v4 = vpop.eup %6019 }
0x184e   :  { %v3496_v23 = vsel %vm157_vm0, %v6020_v4, 0.0 }
0x184f   :  { %3497 = vadd.xlane.f32.xlu0 %v3496_v23 }
0x1850   :  { %3500 = vadd.xlane.f32.xlu1 %v3499_v26 }
0x1851   :  { %v6022_v49 = vpop.eup %6021 }
0x1852   :  { %v3502_v27 = vsel %vm157_vm0, %v6022_v49, 0.0 }
0x1853   :  { %3503 = vadd.xlane.f32.xlu0 %v3502_v27 }
0x18d0   :  { %v3486_v59 = vpop.xlane.xlu0 %3485 }
0x18d1   :  { %v3483_v45 = vpop.xlane.xlu1 %3482  ;;  %6023 = vrcp.f32 %v3486_v59 }
0x18d2   :  { %6025 = vrcp.f32 %v3483_v45 }
0x18d5   :  { %v3489_v47 = vpop.xlane.xlu1 %3488 }
0x18d6   :  { %6027 = vrcp.f32 %v3489_v47 }
0x18d8   :  { %v3492_v32 = vpop.xlane.xlu0 %3491 }
0x18d9   :  { %v3495_v1 = vpop.xlane.xlu1 %3494 }
0x18da   :  { %6029 = vrcp.f32 %v3495_v1 }
0x18db   :  { %v6024_v53 = vpop.eup %6023  ;;  %6031 = vrcp.f32 %v3492_v32 }
0x18dc   :  { %v6026_v58 = vpop.eup %6025  ;;  %v3514_v57 = vmul.f32 %v6024_v53, %v6008_v13  ;;  %v3498_v11 = vpop.xlane.xlu0 %3497 }
0x18dd   :  { %v3501_v0 = vpop.xlane.xlu1 %3500  ;;  %v3513_v30 = vmul.f32 %v6026_v58, %v6010_v42 }
0x18de   :  { %6033 = vrcp.f32 %v3501_v0  ;;  %v3522_v36 = vmul.f32 %v3514_v57, %v6493_v15 }
0x18df   :  { %6035 = vrcp.f32 %v3498_v11  ;;  %v3521_v10 = vmul.f32 %v3513_v30, %v6491_v14 }
0x18e0   :  { %v6028_v16 = vpop.eup %6027  ;;  %v3504_v50 = vpop.xlane.xlu0 %3503 }
0x18e1   :  { %v3529_v62 = vpack.c.bf16 %v3522_v36, %v3521_v10  ;;  %6037 = vrcp.f32 %v3504_v50  ;;  %v3515_v51 = vmul.f32 %v6028_v16, %v6012_v52 }
0x18e3   :  { %5334 = vmatprep.mubr.msk.bf16.mxu1 %vm157_vm0, %v3529_v62  ;;  %v3523_v43 = vmul.f32 %v3515_v51, %v6498_v19 }
0x18e4   :  { %v6030_v9 = vpop.eup %6029 }
0x18e5   :  { %v6032_v34 = vpop.eup %6031  ;;  %v3517_v63 = vmul.f32 %v6030_v9, %v6014_v54 }
0x18e6   :  { %v3516_v2 = vmul.f32 %v6032_v34, %v6016_v21 }
0x18e7   :  { %v3525_v61 = vmul.f32 %v3517_v63, %v6504_v24 }
0x18e8   :  { %v6034_v7 = vpop.eup %6033  ;;  %v3524_v17 = vmul.f32 %v3516_v2, %v6500_v20 }
0x18e9   :  { %v6036_v15 = vpop.eup %6035  ;;  %v3519_v14 = vmul.f32 %v6034_v7, %v6018_v46 }
0x18ea   :  { %v3530_v38 = vpack.c.bf16 %v3524_v17, %v3523_v43  ;;  %v3518_v37 = vmul.f32 %v6036_v15, %v6020_v4 }
0x18eb   :  { %v6038_v12 = vpop.eup %6037  ;;  %v3527_v42 = vmul.f32 %v3519_v14, %v8255_v5 }
0x18ec   :  { %5335 = vmatmul.mubr.msk.bf16.vlgmr.msra.gmra.mrb[56].mxu1 %vm157_vm0, %v3530_v38  ;;  %v3526_v55 = vmul.f32 %v3518_v37, %v6506_v25  ;;  %v3520_v28 = vmul.f32 %v6038_v12, %v6022_v49 }
0x18ee   :  { %v3531_v13 = vpack.c.bf16 %v3526_v55, %v3525_v61  ;;  %v3528_v19 = vmul.f32 %v3520_v28, %v8256_v60 }
0x18f0   :  { %5338 = vmatprep.mubr.msk.bf16.mxu1 %vm157_vm0, %v3531_v13  ;;  %v3532_v20 = vpack.c.bf16 %v3528_v19, %v3527_v42 }
0x18f4   :  { %5339 = vmatmul.mubr.msk.bf16.gmra.mrb[60].mxu1 %vm157_vm0, %v3532_v20 }
0x19bf   :  { %v7903_v18 = vpop.f32.mrb[56].mxu1 }
0x19c0   :  { %v3579_v8 = vpop.f32.mrb[57].mxu1 }
0x19c1   :  { %3610 = vrot.lane.b32.xlu1 %v3579_v8, %s6329_s22  ;;  %v7906_v22 = vpop.f32.mrb[58].mxu1 }
0x19c2   :  { %v3582_v24 = vpop.f32.mrb[59].mxu1 }
0x19c3   :  { %3612 = vrot.lane.b32.xlu0 %v3582_v24, %s6329_s22 }
0x19c5   :  { %3614 = vrot.lane.b32.xlu1 %v7903_v18, %s6329_s22 }
0x19c7   :  { %v7911_v25 = vpop.f32.mrb[60].mxu1 }
0x19c8   :  { %v7913_v40 = vpop.f32.mrb[61].mxu1 }
0x19c9   :  { %3616 = vrot.lane.b32.xlu1 %v7906_v22, %s6329_s22  ;;  %3618 = vrot.lane.b32.xlu0 %v7913_v40, %s6329_s22  ;;  %v7919_v52 = vpop.f32.mrb[62].mxu1 }
0x19ca   :  { %v7921_v29 = vpop.f32.mrb[63].mxu1 }
0x19cd   :  { %3622 = vrot.lane.b32.xlu0 %v7911_v25, %s6329_s22  ;;  %3620 = vrot.lane.b32.xlu1 %v7921_v29, %s6329_s22 }
0x19d1   :  { %3624 = vrot.lane.b32.xlu1 %v7919_v52, %s6329_s22 }
0x1a33   :  { %v3611_v54 = vpop.permute.xlu1 %3610 }
0x1a34   :  { %v4729_v21 = vmul.f32 -1.442695, %v3611_v54 }
0x1a35   :  { %v3613_v56 = vpop.permute.xlu0 %3612 }
0x1a36   :  { %6039 = vpow2.f32 %v4729_v21  ;;  %v4730_v31 = vmul.f32 -1.442695, %v3613_v56  ;;  %v5531_v56 = vld [vmem:[%s8227_s5 + $0xd0] sm:$0xff]  }
0x1a37   :  { %v3615_v46 = vpop.permute.xlu1 %3614 }
0x1a38   :  { %6041 = vpow2.f32 %v4730_v31  ;;  %v4731_v4 = vmul.f32 -1.442695, %v3615_v46  ;;  %v5532_v31 = vld [vmem:[%s8227_s5 + $0xd8] sm:$0xff]  }
0x1a3a   :  { %6043 = vpow2.f32 %v4731_v4 }
0x1a3b   :  { %v3617_v23 = vpop.permute.xlu1 %3616  ;;  %v3619_v26 = vpop.permute.xlu0 %3618 }
0x1a3c   :  { %v4732_v49 = vmul.f32 -1.442695, %v3617_v23  ;;  %v4733_v27 = vmul.f32 -1.442695, %v3619_v26 }
0x1a3e   :  { %6045 = vpow2.f32 %v4732_v49  ;;  %v5533_v49 = vld [vmem:[%s8227_s5 + $0xe0] sm:$0xff]  }
0x1a3f   :  { %6047 = vpow2.f32 %v4733_v27  ;;  %v3621_v59 = vpop.permute.xlu1 %3620  ;;  %v3623_v45 = vpop.permute.xlu0 %3622  ;;  %v5534_v27 = vld [vmem:[%s8227_s5 + $0xe8] sm:$0xff]  }
0x1a40   :  { %v6040_v47 = vpop.eup %6039  ;;  %v4734_v1 = vmul.f32 -1.442695, %v3621_v59  ;;  %v4735_v32 = vmul.f32 -1.442695, %v3623_v45  ;;  %v5535_v59 = vld [vmem:[%s8227_s5 + $0xf0] sm:$0xff]   ;;  %v5536_v45 = vld [vmem:[%s8227_s5 + $0xf8] sm:$0xff]  }
0x1a41   :  { %v3650_v53 = vadd.f32 1.0, %v6040_v47 }
0x1a42   :  { %v6042_v58 = vpop.eup %6041  ;;  %6049 = vpow2.f32 %v4734_v1 }
0x1a43   :  { %6051 = vrcp.f32 %v3650_v53  ;;  %v3651_v57 = vadd.f32 1.0, %v6042_v58  ;;  %v3625_v0 = vpop.permute.xlu1 %3624 }
0x1a44   :  { %v6044_v11 = vpop.eup %6043  ;;  %6053 = vpow2.f32 %v4735_v32  ;;  %v4736_v30 = vmul.f32 -1.442695, %v3625_v0 }
0x1a45   :  { %6055 = vrcp.f32 %v3651_v57  ;;  %v3652_v36 = vadd.f32 1.0, %v6044_v11 }
0x1a46   :  { %6057 = vpow2.f32 %v4736_v30 }
0x1a47   :  { %6059 = vrcp.f32 %v3652_v36 }
0x1a48   :  { %v6046_v10 = vpop.eup %6045 }
0x1a49   :  { %v6048_v16 = vpop.eup %6047  ;;  %v3653_v50 = vadd.f32 1.0, %v6046_v10 }
0x1a4a   :  { %v3654_v62 = vadd.f32 1.0, %v6048_v16 }
0x1a4b   :  { %6061 = vrcp.f32 %v3653_v50 }
0x1a4c   :  { %v6050_v9 = vpop.eup %6049  ;;  %6063 = vrcp.f32 %v3654_v62 }
0x1a4d   :  { %v6052_v51 = vpop.eup %6051  ;;  %v3655_v34 = vadd.f32 1.0, %v6050_v9 }
0x1a4e   :  { %v6054_v2 = vpop.eup %6053  ;;  %v7929_v63 = vmul.f32 %v6052_v51, %v3579_v8 }
0x1a4f   :  { %v6056_v7 = vpop.eup %6055  ;;  %6065 = vrcp.f32 %v3655_v34  ;;  %v3656_v43 = vadd.f32 1.0, %v6054_v2 }
0x1a50   :  { %v6058_v17 = vpop.eup %6057  ;;  %v7931_v15 = vmul.f32 %v6056_v7, %v3582_v24 }
0x1a51   :  { %6067 = vrcp.f32 %v3656_v43  ;;  %v3657_v38 = vadd.f32 1.0, %v6058_v17  ;;  %v6060_v14 = vpop.eup %6059 }
0x1a52   :  { %v3690_v37 = vpack.c.bf16 %v7931_v15, %v7929_v63  ;;  %v7936_v61 = vmul.f32 %v6060_v14, %v7903_v18 }
0x1a53   :  { %6069 = vrcp.f32 %v3657_v38 }
0x1a54   :  { %5358 = vmatprep.mubr.bf16.mxu0 %v3690_v37 }
0x1a55   :  { %v6062_v12 = vpop.eup %6061 }
0x1a56   :  { %v7939_v55 = vmul.f32 %v6062_v12, %v7906_v22  ;;  %v6064_v28 = vpop.eup %6063 }
0x1a57   :  { %v7944_v42 = vmul.f32 %v6064_v28, %v7913_v40  ;;  %v5529_v40 = vld [vmem:[%s8227_s5 + $0xc0] sm:$0xff]  }
0x1a58   :  { %v3691_v13 = vpack.c.bf16 %v7939_v55, %v7936_v61  ;;  %5366 = vmatprep.subr.bf16.mxu1 %v5529_v40 }
0x1a59   :  { %v6066_v5 = vpop.eup %6065  ;;  %5367 = vmatpush3.bf16.msra.mxu1 %v5529_v40  ;;  %v3682_v40 = vmul.f32 0.70710677, %v7929_v63 }
0x1a5a   :  { %5359 = vmatmul.mubr.bf16.vlgmr.msra.gmra.mrb[64].mxu0 %v3691_v13  ;;  %v7947_v60 = vmul.f32 %v6066_v5, %v7921_v29  ;;  %v5530_v29 = vld [vmem:[%s8227_s5 + $0xc8] sm:$0xff]  }
0x1a5b   :  { %v6068_v19 = vpop.eup %6067  ;;  %5368 = vmatprep.subr.bf16.mxu1 %v5530_v29 }
0x1a5c   :  { %v3692_v20 = vpack.c.bf16 %v7947_v60, %v7944_v42  ;;  %v7952_v8 = vmul.f32 %v6068_v19, %v7911_v25 }
0x1a5d   :  { %v6070_v18 = vpop.eup %6069  ;;  %5369 = vmatpush3.bf16.msra.mxu1 %v5530_v29 }
0x1a5e   :  { %5362 = vmatprep.mubr.bf16.mxu0 %v3692_v20  ;;  %v7955_v22 = vmul.f32 %v6070_v18, %v7919_v52  ;;  %5370 = vmatprep.subr.bf16.mxu1 %v5531_v56 }
0x1a60   :  { %v3693_v24 = vpack.c.bf16 %v7955_v22, %v7952_v8 }
0x1a61   :  { %5371 = vmatpush3.bf16.msra.mxu1 %v5531_v56 }
0x1a62   :  { %5363 = vmatmul.mubr.bf16.gmra.mrb[68].mxu0 %v3693_v24  ;;  %5372 = vmatprep.subr.bf16.mxu1 %v5532_v31 }
0x1a65   :  { %5373 = vmatpush3.bf16.msra.mxu1 %v5532_v31 }
0x1a66   :  { %5374 = vmatprep.subr.bf16.mxu1 %v5533_v49 }
0x1a69   :  { %5375 = vmatpush3.bf16.msra.mxu1 %v5533_v49  ;;  %v3683_v49 = vmul.f32 0.70710677, %v7931_v15  ;;  %v3685_v15 = vmul.f32 0.70710677, %v7939_v55 }
0x1a6a   :  { %5376 = vmatprep.subr.bf16.mxu1 %v5534_v27 }
0x1a6d   :  { %5377 = vmatpush3.bf16.msra.mxu1 %v5534_v27 }
0x1a6e   :  { %5378 = vmatprep.subr.bf16.mxu1 %v5535_v59 }
0x1a71   :  { %5379 = vmatpush3.bf16.msra.mxu1 %v5535_v59 }
0x1a72   :  { %5380 = vmatprep.subr.bf16.mxu1 %v5536_v45 }
0x1a75   :  { %5381 = vmatpush3.bf16.msra.mxu1 %v5536_v45 }
0x1b2d   :  { %v7965_v54 = vpop.f32.mrb[64].mxu0 }
0x1b2e   :  { %v7967_v25 = vpop.f32.mrb[65].mxu0 }
0x1b2f   :  { %3759 = vrot.lane.b32.xlu0 %v7967_v25, %s6329_s22  ;;  %v7971_v52 = vpop.f32.mrb[66].mxu0 }
0x1b30   :  { %v7973_v21 = vpop.f32.mrb[67].mxu0 }
0x1b31   :  { %3761 = vrot.lane.b32.xlu1 %v7973_v21, %s6329_s22 }
0x1b33   :  { %3763 = vrot.lane.b32.xlu0 %v7965_v54, %s6329_s22 }
0x1b35   :  { %3765 = vrot.lane.b32.xlu1 %v7971_v52, %s6329_s22  ;;  %v7987_v46 = vpop.f32.mrb[68].mxu0 }
0x1b36   :  { %v7989_v4 = vpop.f32.mrb[69].mxu0 }
0x1b37   :  { %3767 = vrot.lane.b32.xlu0 %v7989_v4, %s6329_s22  ;;  %v7993_v23 = vpop.f32.mrb[70].mxu0 }
0x1b38   :  { %v7995_v26 = vpop.f32.mrb[71].mxu0 }
0x1b39   :  { %3769 = vrot.lane.b32.xlu1 %v7995_v26, %s6329_s22 }
0x1b3b   :  { %3771 = vrot.lane.b32.xlu0 %v7987_v46, %s6329_s22 }
0x1b3d   :  { %3773 = vrot.lane.b32.xlu1 %v7993_v23, %s6329_s22 }
0x1ba1   :  { %v3760_v47 = vpop.permute.xlu0 %3759 }
0x1ba2   :  { %v4737_v1 = vmul.f32 -1.442695, %v3760_v47 }
0x1ba3   :  { %v3762_v32 = vpop.permute.xlu1 %3761 }
0x1ba4   :  { %6071 = vpow2.f32 %v4737_v1  ;;  %v4738_v53 = vmul.f32 -1.442695, %v3762_v32  ;;  %v3684_v32 = vmul.f32 0.70710677, %v7936_v61 }
0x1ba5   :  { %v3764_v58 = vpop.permute.xlu0 %3763 }
0x1ba6   :  { %6073 = vpow2.f32 %v4738_v53  ;;  %v4739_v57 = vmul.f32 -1.442695, %v3764_v58 }
0x1ba7   :  { %v3766_v0 = vpop.permute.xlu1 %3765 }
0x1ba8   :  { %6075 = vpow2.f32 %v4739_v57  ;;  %v4740_v11 = vmul.f32 -1.442695, %v3766_v0 }
0x1ba9   :  { %v3768_v30 = vpop.permute.xlu0 %3767 }
0x1baa   :  { %6077 = vpow2.f32 %v4740_v11  ;;  %v4741_v36 = vmul.f32 -1.442695, %v3768_v30 }
0x1bab   :  { %v3770_v10 = vpop.permute.xlu1 %3769 }
0x1bac   :  { %6079 = vpow2.f32 %v4741_v36  ;;  %v4742_v16 = vmul.f32 -1.442695, %v3770_v10 }
0x1bad   :  { %v3772_v50 = vpop.permute.xlu0 %3771 }
0x1bae   :  { %v6072_v62 = vpop.eup %6071  ;;  %6081 = vpow2.f32 %v4742_v16  ;;  %v4743_v9 = vmul.f32 -1.442695, %v3772_v50  ;;  %v3688_v16 = vmul.f32 0.70710677, %v7952_v8  ;;  %v5537_v8 = vld [vmem:[#allocation10 + $0xc0] sm:$0xff]  }
0x1baf   :  { %v3799_v51 = vadd.f32 1.0, %v6072_v62  ;;  %v3774_v34 = vpop.permute.xlu1 %3773  ;;  %v3689_v62 = vmul.f32 0.70710677, %v7955_v22  ;;  %5390 = vmatprep.subr.bf16.mxu0 %v5537_v8 }
0x1bb0   :  { %v6074_v2 = vpop.eup %6073  ;;  %6083 = vpow2.f32 %v4743_v9  ;;  %v4744_v7 = vmul.f32 -1.442695, %v3774_v34  ;;  %5391 = vmatpush3.bf16.msra.mxu0 %v5537_v8 }
0x1bb1   :  { %6085 = vrcp.f32 %v3799_v51  ;;  %v3800_v43 = vadd.f32 1.0, %v6074_v2 }
0x1bb2   :  { %v6076_v17 = vpop.eup %6075  ;;  %6087 = vpow2.f32 %v4744_v7  ;;  %v5539_v7 = vld [vmem:[#allocation10 + $0xd0] sm:$0xff]  }
0x1bb3   :  { %6089 = vrcp.f32 %v3800_v43  ;;  %v3801_v38 = vadd.f32 1.0, %v6076_v17  ;;  %v5540_v43 = vld [vmem:[#allocation10 + $0xd8] sm:$0xff]  }
0x1bb4   :  { %v6078_v37 = vpop.eup %6077 }
0x1bb5   :  { %6091 = vrcp.f32 %v3801_v38  ;;  %v3802_v14 = vadd.f32 1.0, %v6078_v37 }
0x1bb6   :  { %v6080_v12 = vpop.eup %6079 }
0x1bb7   :  { %6093 = vrcp.f32 %v3802_v14  ;;  %v3803_v28 = vadd.f32 1.0, %v6080_v12  ;;  %v5541_v12 = vld [vmem:[#allocation10 + $0xe0] sm:$0xff]  }
0x1bb8   :  { %v6082_v13 = vpop.eup %6081 }
0x1bb9   :  { %6095 = vrcp.f32 %v3803_v28  ;;  %v3804_v5 = vadd.f32 1.0, %v6082_v13  ;;  %v5542_v28 = vld [vmem:[#allocation10 + $0xe8] sm:$0xff]   ;;  %v5543_v13 = vld [vmem:[#allocation10 + $0xf0] sm:$0xff]  }
0x1bba   :  { %v6084_v19 = vpop.eup %6083 }
0x1bbb   :  { %v6086_v20 = vpop.eup %6085  ;;  %6097 = vrcp.f32 %v3804_v5  ;;  %v3805_v18 = vadd.f32 1.0, %v6084_v19  ;;  %v5544_v5 = vld [vmem:[#allocation10 + $0xf8] sm:$0xff]  }
0x1bbc   :  { %v6088_v24 = vpop.eup %6087  ;;  %v3823_v29 = vmul.f32 %v6086_v20, %v7967_v25 }
0x1bbd   :  { %v6090_v56 = vpop.eup %6089  ;;  %6099 = vrcp.f32 %v3805_v18  ;;  %v3806_v31 = vadd.f32 1.0, %v6088_v24 }
0x1bbe   :  { %v3824_v27 = vmul.f32 %v6090_v56, %v7973_v21  ;;  %v8019_v59 = vadd.f32 %v3823_v29, %v3682_v40 }
0x1bbf   :  { %v6092_v45 = vpop.eup %6091  ;;  %6101 = vrcp.f32 %v3806_v31 }
0x1bc0   :  { %v3825_v47 = vmul.f32 %v6092_v45, %v7965_v54  ;;  %v8022_v1 = vadd.f32 %v3824_v27, %v3683_v49  ;;  %v3686_v54 = vmul.f32 0.70710677, %v7944_v42  ;;  %v3839_v8 = vmul.f32 0.70710677, %v8019_v59 }
0x1bc1   :  { %v6094_v63 = vpop.eup %6093 }
0x1bc2   :  { %v3826_v25 = vmul.f32 %v6094_v63, %v7971_v52  ;;  %v3864_v53 = vpack.c.bf16 %v8022_v1, %v8019_v59  ;;  %v8029_v58 = vadd.f32 %v3825_v47, %v3684_v32  ;;  %v3687_v52 = vmul.f32 0.70710677, %v7947_v60 }
0x1bc3   :  { %v6096_v21 = vpop.eup %6095 }
0x1bc4   :  { %5382 = vmatprep.mubr.bf16.mxu1 %v3864_v53  ;;  %v8031_v57 = vadd.f32 %v3826_v25, %v3685_v15  ;;  %v3827_v0 = vmul.f32 %v6096_v21, %v7989_v4 }
0x1bc5   :  { %v6098_v11 = vpop.eup %6097 }
0x1bc6   :  { %v3865_v61 = vpack.c.bf16 %v8031_v57, %v8029_v58  ;;  %v3828_v30 = vmul.f32 %v6098_v11, %v7995_v26  ;;  %v8039_v36 = vadd.f32 %v3827_v0, %v3686_v54 }
0x1bc7   :  { %v6100_v55 = vpop.eup %6099 }
0x1bc8   :  { %5383 = vmatmul.mubr.bf16.vlgmr.msra.gmra.mrb[64].mxu1 %v3865_v61  ;;  %v8041_v10 = vadd.f32 %v3828_v30, %v3687_v52  ;;  %v3829_v42 = vmul.f32 %v6100_v55, %v7987_v46  ;;  %v5538_v46 = vld [vmem:[#allocation10 + $0xc8] sm:$0xff]  }
0x1bc9   :  { %v6102_v50 = vpop.eup %6101  ;;  %5392 = vmatprep.subr.bf16.mxu0 %v5538_v46 }
0x1bca   :  { %v3866_v4 = vpack.c.bf16 %v8041_v10, %v8039_v36  ;;  %v3830_v60 = vmul.f32 %v6102_v50, %v7993_v23  ;;  %v8049_v9 = vadd.f32 %v3829_v42, %v3688_v16  ;;  %5393 = vmatpush3.bf16.msra.mxu0 %v5538_v46 }
0x1bcb   :  { %5394 = vmatprep.subr.bf16.mxu0 %v5539_v7 }
0x1bcc   :  { %5386 = vmatprep.mubr.bf16.mxu1 %v3866_v4  ;;  %v8051_v26 = vadd.f32 %v3830_v60, %v3689_v62 }
0x1bce   :  { %v3867_v51 = vpack.c.bf16 %v8051_v26, %v8049_v9  ;;  %5395 = vmatpush3.bf16.msra.mxu0 %v5539_v7 }
0x1bcf   :  { %5396 = vmatprep.subr.bf16.mxu0 %v5540_v43 }
0x1bd0   :  { %5387 = vmatmul.mubr.bf16.gmra.mrb[68].mxu1 %v3867_v51 }
0x1bd2   :  { %5397 = vmatpush3.bf16.msra.mxu0 %v5540_v43 }
0x1bd3   :  { %5398 = vmatprep.subr.bf16.mxu0 %v5541_v12 }
0x1bd6   :  { %5399 = vmatpush3.bf16.msra.mxu0 %v5541_v12  ;;  %v3840_v12 = vmul.f32 0.70710677, %v8022_v1  ;;  %v3842_v1 = vmul.f32 0.70710677, %v8031_v57 }
0x1bd7   :  { %5400 = vmatprep.subr.bf16.mxu0 %v5542_v28 }
0x1bda   :  { %5401 = vmatpush3.bf16.msra.mxu0 %v5542_v28 }
0x1bdb   :  { %5402 = vmatprep.subr.bf16.mxu0 %v5543_v13 }
0x1bde   :  { %5403 = vmatpush3.bf16.msra.mxu0 %v5543_v13 }
0x1bdf   :  { %5404 = vmatprep.subr.bf16.mxu0 %v5544_v5 }
0x1be2   :  { %5405 = vmatpush3.bf16.msra.mxu0 %v5544_v5 }
0x1c9b   :  { %v8055_v34 = vpop.f32.mrb[64].mxu1 }
0x1c9c   :  { %v8057_v2 = vpop.f32.mrb[65].mxu1 }
0x1c9d   :  { %3981 = vrot.lane.b32.xlu0 %v8057_v2, %s6329_s22  ;;  %v8061_v22 = vpop.f32.mrb[66].mxu1 }
0x1c9e   :  { %v8063_v23 = vpop.f32.mrb[67].mxu1 }
0x1c9f   :  { %3983 = vrot.lane.b32.xlu1 %v8063_v23, %s6329_s22 }
0x1ca1   :  { %3985 = vrot.lane.b32.xlu0 %v8055_v34, %s6329_s22 }
0x1ca3   :  { %3987 = vrot.lane.b32.xlu1 %v8061_v22, %s6329_s22  ;;  %v8071_v17 = vpop.f32.mrb[68].mxu1 }
0x1ca4   :  { %v8073_v38 = vpop.f32.mrb[69].mxu1 }
0x1ca5   :  { %3989 = vrot.lane.b32.xlu0 %v8073_v38, %s6329_s22  ;;  %v8077_v37 = vpop.f32.mrb[70].mxu1 }
0x1ca6   :  { %v8079_v14 = vpop.f32.mrb[71].mxu1 }
0x1ca7   :  { %3991 = vrot.lane.b32.xlu1 %v8079_v14, %s6329_s22 }
0x1ca9   :  { %3993 = vrot.lane.b32.xlu0 %v8071_v17, %s6329_s22 }
0x1cab   :  { %3995 = vrot.lane.b32.xlu1 %v8077_v37, %s6329_s22 }
0x1d0f   :  { %v3982_v19 = vpop.permute.xlu0 %3981 }
0x1d10   :  { %v4769_v20 = vmul.f32 -1.442695, %v3982_v19 }
0x1d11   :  { %v3984_v18 = vpop.permute.xlu1 %3983 }
0x1d12   :  { %6103 = vpow2.f32 %v4769_v20  ;;  %v4770_v24 = vmul.f32 -1.442695, %v3984_v18  ;;  %v3841_v18 = vmul.f32 0.70710677, %v8029_v58 }
0x1d13   :  { %v3986_v40 = vpop.permute.xlu0 %3985 }
0x1d14   :  { %6105 = vpow2.f32 %v4770_v24  ;;  %v4771_v29 = vmul.f32 -1.442695, %v3986_v40 }
0x1d15   :  { %v3988_v56 = vpop.permute.xlu1 %3987 }
0x1d16   :  { %6107 = vpow2.f32 %v4771_v29  ;;  %v4772_v31 = vmul.f32 -1.442695, %v3988_v56 }
0x1d17   :  { %v3990_v49 = vpop.permute.xlu0 %3989 }
0x1d18   :  { %6109 = vpow2.f32 %v4772_v31  ;;  %v4773_v27 = vmul.f32 -1.442695, %v3990_v49 }
0x1d19   :  { %v3992_v45 = vpop.permute.xlu1 %3991 }
0x1d1a   :  { %6111 = vpow2.f32 %v4773_v27  ;;  %v4774_v47 = vmul.f32 -1.442695, %v3992_v45 }
0x1d1b   :  { %v3994_v32 = vpop.permute.xlu0 %3993 }
0x1d1c   :  { %v6104_v63 = vpop.eup %6103  ;;  %6113 = vpow2.f32 %v4774_v47  ;;  %v4775_v25 = vmul.f32 -1.442695, %v3994_v32  ;;  %v3845_v47 = vmul.f32 0.70710677, %v8049_v9  ;;  %v5545_v9 = vld [vmem:[%s8232_s10] sm:$0xff]  }
0x1d1d   :  { %v4021_v53 = vadd.f32 1.0, %v6104_v63  ;;  %v3996_v15 = vpop.permute.xlu1 %3995  ;;  %v3846_v63 = vmul.f32 0.70710677, %v8051_v26  ;;  %5414 = vmatprep.subr.bf16.mxu1 %v5545_v9 }
0x1d1e   :  { %v6106_v21 = vpop.eup %6105  ;;  %6115 = vpow2.f32 %v4775_v25  ;;  %v4776_v54 = vmul.f32 -1.442695, %v3996_v15  ;;  %5415 = vmatpush3.bf16.msra.mxu1 %v5545_v9 }
0x1d1f   :  { %6117 = vrcp.f32 %v4021_v53  ;;  %v4022_v0 = vadd.f32 1.0, %v6106_v21  ;;  %v5546_v21 = vld [vmem:[%s8232_s10 + $0x8] sm:$0xff]  }
0x1d20   :  { %v6108_v11 = vpop.eup %6107  ;;  %6119 = vpow2.f32 %v4776_v54  ;;  %5416 = vmatprep.subr.bf16.mxu1 %v5546_v21  ;;  %v5547_v54 = vld [vmem:[%s8232_s10 + $0x10] sm:$0xff]  }
0x1d21   :  { %6121 = vrcp.f32 %v4022_v0  ;;  %v4023_v61 = vadd.f32 1.0, %v6108_v11 }
0x1d22   :  { %v6110_v52 = vpop.eup %6109  ;;  %5417 = vmatpush3.bf16.msra.mxu1 %v5546_v21 }
0x1d23   :  { %6123 = vrcp.f32 %v4023_v61  ;;  %v4024_v30 = vadd.f32 1.0, %v6110_v52  ;;  %5418 = vmatprep.subr.bf16.mxu1 %v5547_v54 }
0x1d24   :  { %v6112_v55 = vpop.eup %6111 }
0x1d25   :  { %6125 = vrcp.f32 %v4024_v30  ;;  %v4025_v16 = vadd.f32 1.0, %v6112_v55  ;;  %v5548_v30 = vld [vmem:[%s8232_s10 + $0x18] sm:$0xff]   ;;  %v5549_v55 = vld [vmem:[%s8232_s10 + $0x20] sm:$0xff]  }
0x1d26   :  { %v6114_v42 = vpop.eup %6113  ;;  %5419 = vmatpush3.bf16.msra.mxu1 %v5547_v54 }
0x1d27   :  { %6127 = vrcp.f32 %v4025_v16  ;;  %v4026_v50 = vadd.f32 1.0, %v6114_v42  ;;  %5420 = vmatprep.subr.bf16.mxu1 %v5548_v30  ;;  %v5550_v16 = vld [vmem:[%s8232_s10 + $0x28] sm:$0xff]   ;;  %v5551_v42 = vld [vmem:[%s8232_s10 + $0x30] sm:$0xff]  }
0x1d28   :  { %v6116_v4 = vpop.eup %6115 }
0x1d29   :  { %v6118_v62 = vpop.eup %6117  ;;  %6129 = vrcp.f32 %v4026_v50  ;;  %v4027_v60 = vadd.f32 1.0, %v6116_v4  ;;  %v5552_v50 = vld [vmem:[%s8232_s10 + $0x38] sm:$0xff]  }
0x1d2a   :  { %v6120_v51 = vpop.eup %6119  ;;  %v4045_v46 = vmul.f32 %v6118_v62, %v8057_v2  ;;  %5421 = vmatpush3.bf16.msra.mxu1 %v5548_v30 }
0x1d2b   :  { %v6122_v7 = vpop.eup %6121  ;;  %6131 = vrcp.f32 %v4027_v60  ;;  %v4028_v43 = vadd.f32 1.0, %v6120_v51  ;;  %5422 = vmatprep.subr.bf16.mxu1 %v5549_v55 }
0x1d2c   :  { %v4046_v28 = vmul.f32 %v6122_v7, %v8063_v23  ;;  %v8091_v13 = vadd.f32 %v4045_v46, %v3839_v8 }
0x1d2d   :  { %v6124_v5 = vpop.eup %6123  ;;  %6133 = vrcp.f32 %v4028_v43 }
0x1d2e   :  { %v4047_v19 = vmul.f32 %v6124_v5, %v8055_v34  ;;  %v8094_v20 = vadd.f32 %v4046_v28, %v3840_v12  ;;  %v3843_v34 = vmul.f32 0.70710677, %v8039_v36  ;;  %5423 = vmatpush3.bf16.msra.mxu1 %v5549_v55  ;;  %v4061_v9 = vmul.f32 0.70710677, %v8091_v13 }
0x1d2f   :  { %v6126_v59 = vpop.eup %6125  ;;  %5424 = vmatprep.subr.bf16.mxu1 %v5550_v16 }
0x1d30   :  { %v4048_v2 = vmul.f32 %v6126_v59, %v8061_v22  ;;  %v4086_v24 = vpack.c.bf16 %v8094_v20, %v8091_v13  ;;  %v8101_v40 = vadd.f32 %v4047_v19, %v3841_v18  ;;  %v3844_v22 = vmul.f32 0.70710677, %v8041_v10 }
0x1d31   :  { %v6128_v23 = vpop.eup %6127  ;;  %v4062_v55 = vmul.f32 0.70710677, %v8094_v20 }
0x1d32   :  { %5406 = vmatprep.mubr.bf16.mxu0 %v4086_v24  ;;  %v8103_v29 = vadd.f32 %v4048_v2, %v3842_v1  ;;  %v4049_v56 = vmul.f32 %v6128_v23, %v8073_v38  ;;  %5425 = vmatpush3.bf16.msra.mxu1 %v5550_v16 }
0x1d33   :  { %v6130_v31 = vpop.eup %6129  ;;  %5426 = vmatprep.subr.bf16.mxu1 %v5551_v42 }
0x1d34   :  { %v4087_v58 = vpack.c.bf16 %v8103_v29, %v8101_v40  ;;  %v4050_v49 = vmul.f32 %v6130_v31, %v8079_v14  ;;  %v8111_v27 = vadd.f32 %v4049_v56, %v3843_v34  ;;  %v4064_v13 = vmul.f32 0.70710677, %v8103_v29 }
0x1d35   :  { %v6132_v57 = vpop.eup %6131 }
0x1d36   :  { %5407 = vmatmul.mubr.bf16.vlgmr.msra.gmra.mrb[72].mxu0 %v4087_v58  ;;  %v8113_v45 = vadd.f32 %v4050_v49, %v3844_v22  ;;  %v4051_v36 = vmul.f32 %v6132_v57, %v8071_v17  ;;  %5427 = vmatpush3.bf16.msra.mxu1 %v5551_v42 }
0x1d37   :  { %v6134_v32 = vpop.eup %6133  ;;  %5428 = vmatprep.subr.bf16.mxu1 %v5552_v50 }
0x1d38   :  { %v4088_v38 = vpack.c.bf16 %v8113_v45, %v8111_v27  ;;  %v4052_v10 = vmul.f32 %v6134_v32, %v8077_v37  ;;  %v8121_v25 = vadd.f32 %v4051_v36, %v3845_v47 }
0x1d3a   :  { %5410 = vmatprep.mubr.bf16.mxu0 %v4088_v38  ;;  %v8123_v14 = vadd.f32 %v4052_v10, %v3846_v63  ;;  %5429 = vmatpush3.bf16.msra.mxu1 %v5552_v50 }
0x1d3c   :  { %v4089_v53 = vpack.c.bf16 %v8123_v14, %v8121_v25 }
0x1d3e   :  { %5411 = vmatmul.mubr.bf16.gmra.mrb[76].mxu0 %v4089_v53 }
0x1e09   :  { %v8130_v17 = vpop.f32.mrb[72].mxu0 }
0x1e0a   :  { %v8132_v15 = vpop.f32.mrb[73].mxu0 }
0x1e0b   :  { %4203 = vrot.lane.b32.xlu0 %v8132_v15, %s6329_s22  ;;  %v8136_v26 = vpop.f32.mrb[74].mxu0 }
0x1e0c   :  { %v8138_v37 = vpop.f32.mrb[75].mxu0 }
0x1e0d   :  { %4205 = vrot.lane.b32.xlu1 %v8138_v37, %s6329_s22 }
0x1e0f   :  { %4207 = vrot.lane.b32.xlu0 %v8130_v17, %s6329_s22 }
0x1e11   :  { %4209 = vrot.lane.b32.xlu1 %v8136_v26, %s6329_s22  ;;  %v8152_v0 = vpop.f32.mrb[76].mxu0 }
0x1e12   :  { %v8154_v11 = vpop.f32.mrb[77].mxu0 }
0x1e13   :  { %4211 = vrot.lane.b32.xlu0 %v8154_v11, %s6329_s22  ;;  %v8158_v61 = vpop.f32.mrb[78].mxu0 }
0x1e14   :  { %v8160_v52 = vpop.f32.mrb[79].mxu0 }
0x1e15   :  { %4213 = vrot.lane.b32.xlu1 %v8160_v52, %s6329_s22 }
0x1e17   :  { %4215 = vrot.lane.b32.xlu0 %v8152_v0, %s6329_s22 }
0x1e19   :  { %4217 = vrot.lane.b32.xlu1 %v8158_v61, %s6329_s22 }
0x1e7d   :  { %v4204_v4 = vpop.permute.xlu0 %4203 }
0x1e7e   :  { %v4785_v62 = vmul.f32 -1.442695, %v4204_v4  ;;  %v4063_v4 = vmul.f32 0.70710677, %v8101_v40 }
0x1e7f   :  { %v4206_v60 = vpop.permute.xlu1 %4205 }
0x1e80   :  { %6135 = vpow2.f32 %v4785_v62  ;;  %v4786_v51 = vmul.f32 -1.442695, %v4206_v60 }
0x1e81   :  { %v4208_v8 = vpop.permute.xlu0 %4207 }
0x1e82   :  { %6137 = vpow2.f32 %v4786_v51  ;;  %v4787_v46 = vmul.f32 -1.442695, %v4208_v8 }
0x1e83   :  { %v4210_v7 = vpop.permute.xlu1 %4209 }
0x1e84   :  { %6139 = vpow2.f32 %v4787_v46  ;;  %v4788_v43 = vmul.f32 -1.442695, %v4210_v7 }
0x1e85   :  { %v4212_v12 = vpop.permute.xlu0 %4211 }
0x1e86   :  { %6141 = vpow2.f32 %v4788_v43  ;;  %v4789_v28 = vmul.f32 -1.442695, %v4212_v12 }
0x1e87   :  { %v4214_v5 = vpop.permute.xlu1 %4213 }
0x1e88   :  { %6143 = vpow2.f32 %v4789_v28  ;;  %v4790_v19 = vmul.f32 -1.442695, %v4214_v5 }
0x1e89   :  { %v4216_v18 = vpop.permute.xlu0 %4215 }
0x1e8a   :  { %v6136_v59 = vpop.eup %6135  ;;  %6145 = vpow2.f32 %v4790_v19  ;;  %v4791_v2 = vmul.f32 -1.442695, %v4216_v18  ;;  %v4066_v19 = vmul.f32 0.70710677, %v8113_v45 }
0x1e8b   :  { %v4243_v24 = vadd.f32 1.0, %v6136_v59  ;;  %v4218_v1 = vpop.permute.xlu1 %4217 }
0x1e8c   :  { %v6138_v23 = vpop.eup %6137  ;;  %6147 = vpow2.f32 %v4791_v2  ;;  %v4792_v34 = vmul.f32 -1.442695, %v4218_v1 }
0x1e8d   :  { %6149 = vrcp.f32 %v4243_v24  ;;  %v4244_v56 = vadd.f32 1.0, %v6138_v23  ;;  %v4067_v24 = vmul.f32 0.70710677, %v8121_v25 }
0x1e8e   :  { %v6140_v31 = vpop.eup %6139  ;;  %6151 = vpow2.f32 %v4792_v34 }
0x1e8f   :  { %6153 = vrcp.f32 %v4244_v56  ;;  %v4245_v58 = vadd.f32 1.0, %v6140_v31 }
0x1e90   :  { %v6142_v22 = vpop.eup %6141 }
0x1e91   :  { %6155 = vrcp.f32 %v4245_v58  ;;  %v4246_v49 = vadd.f32 1.0, %v6142_v22 }
0x1e92   :  { %v6144_v57 = vpop.eup %6143 }
0x1e93   :  { %6157 = vrcp.f32 %v4246_v49  ;;  %v4247_v47 = vadd.f32 1.0, %v6144_v57 }
0x1e94   :  { %v6146_v36 = vpop.eup %6145 }
0x1e95   :  { %6159 = vrcp.f32 %v4247_v47  ;;  %v4248_v32 = vadd.f32 1.0, %v6146_v36 }
0x1e96   :  { %v6148_v38 = vpop.eup %6147 }
0x1e97   :  { %v6150_v63 = vpop.eup %6149  ;;  %6161 = vrcp.f32 %v4248_v32  ;;  %v4249_v10 = vadd.f32 1.0, %v6148_v38 }
0x1e98   :  { %v6152_v53 = vpop.eup %6151  ;;  %v4267_v21 = vmul.f32 %v6150_v63, %v8132_v15 }
0x1e99   :  { %v6154_v54 = vpop.eup %6153  ;;  %6163 = vrcp.f32 %v4249_v10  ;;  %v4250_v30 = vadd.f32 1.0, %v6152_v53 }
0x1e9a   :  { %v4268_v16 = vmul.f32 %v6154_v54, %v8138_v37  ;;  %v4275_v42 = vadd.f32 %v4267_v21, %v4061_v9 }
0x1e9b   :  { %v6156_v50 = vpop.eup %6155  ;;  %6165 = vrcp.f32 %v4250_v30 }
0x1e9c   :  { %v4269_v62 = vmul.f32 %v6156_v50, %v8130_v17  ;;  %v4276_v60 = vadd.f32 %v4268_v16, %v4062_v55  ;;  %v4283_v51 = vmax.f32 %v4275_v42, 0.0  ;;  %v4065_v17 = vmul.f32 0.70710677, %v8111_v27 }
0x1e9d   :  { %v6158_v8 = vpop.eup %6157  ;;  %v4068_v27 = vmul.f32 0.70710677, %v8123_v14 }
0x1e9e   :  { %v4270_v15 = vmul.f32 %v6158_v8, %v8136_v26  ;;  %v4284_v46 = vmax.f32 %v4276_v60, 0.0  ;;  %v4291_v7 = vadd.f32 %v4283_v51, %v7757_v3  ;;  %v4277_v20 = vadd.f32 %v4269_v62, %v4063_v4 }
0x1e9f   :  { %v6160_v43 = vpop.eup %6159 }
0x1ea0   :  { %v4292_v37 = vadd.f32 %v4284_v46, %v7760_v48  ;;  %v4278_v12 = vadd.f32 %v4270_v15, %v4064_v13  ;;  %v4285_v28 = vmax.f32 %v4277_v20, 0.0  ;;  %v4271_v40 = vmul.f32 %v6160_v43, %v8154_v11 }
0x1ea1   :  { %v6162_v5 = vpop.eup %6161 }
0x1ea2   :  { %v4315_v18 = vpack.c.bf16 %v4292_v37, %v4291_v7  ;;  %v4286_v29 = vmax.f32 %v4278_v12, 0.0  ;;  %v4293_v26 = vadd.f32 %v4285_v28, %v7767_v33  ;;  %v4272_v59 = vmul.f32 %v6162_v5, %v8160_v52 }
0x1ea3   :  { %v6164_v3 = vpop.eup %6163  ;;  %v4279_v2 = vadd.f32 %v4271_v40, %v4065_v17 }
0x1ea4   :  { %5430 = vmatprep.mubr.bf16.mxu1 %v4315_v18  ;;  %v4294_v48 = vadd.f32 %v4286_v29, %v7770_v35  ;;  %v4280_v1 = vadd.f32 %v4272_v59, %v4066_v19  ;;  %v4273_v11 = vmul.f32 %v6164_v3, %v8152_v0 }
0x1ea5   :  { %v6166_v23 = vpop.eup %6165  ;;  %v4287_v45 = vmax.f32 %v4279_v2, 0.0 }
0x1ea6   :  { %v4316_v34 = vpack.c.bf16 %v4294_v48, %v4293_v26  ;;  %v4288_v56 = vmax.f32 %v4280_v1, 0.0  ;;  %v4274_v33 = vmul.f32 %v6166_v23, %v8158_v61  ;;  %v4281_v31 = vadd.f32 %v4273_v11, %v4067_v24  ;;  %v4793_v61 = vld [vmem:[%s8233_s11] ss:$0 sm:$0xff]  ;;  %s6296_s11 = scalar_lea.vmem %s4453_s21, 1024 }
0x1ea7   :  { %v4295_v52 = vadd.f32 %v4287_v45, %v7777_v41  ;;  %p6297_p12 = scmp.ne.s32.totalorder %s4453_s21, %s6296_s11  ;;  %p6302_p0 = scmp.lt.s32.totalorder %s6296_s11, %s6296_s11 }
0x1ea8   :  { %5431 = vmatmul.mubr.bf16.vlgmr.msra.gmra.mrb[72].mxu1 %v4316_v34  ;;  %v4296_v25 = vadd.f32 %v4288_v56, %v7780_v44  ;;  %v4282_v58 = vadd.f32 %v4274_v33, %v4068_v27  ;;  %v4289_v22 = vmax.f32 %v4281_v31, 0.0 }
0x1ea9   :  { %p6303_p1 = por %p6302_p0, %p6301_p13 }
0x1eaa   :  { %v4317_v35 = vpack.c.bf16 %v4296_v25, %v4295_v52  ;;  %v4290_v49 = vmax.f32 %v4282_v58, 0.0  ;;  %v4297_v0 = vadd.f32 %v4289_v22, %v7783_v39 }
0x1eab   :  { %p6304_p2 = pnand %p6303_p1, %p6297_p12 }
0x1eac   :  { %5434 = vmatprep.mubr.bf16.mxu1 %v4317_v35  ;;  %v4298_v14 = vadd.f32 %v4290_v49, %v7785_v6 }
0x1eae   :  { %v4318_v57 = vpack.c.bf16 %v4298_v14, %v4297_v0 }
0x1eb0   :  { %5435 = vmatmul.mubr.bf16.gmra.mrb[76].mxu1 %v4318_v57 }
0x1f7b   :  { %v5432_v47 = vpop.f32.mrb[72].mxu1 }
0x1f7c   :  { %v4417_v41 = vadd.f32 %v5432_v47, %v4793_v61  ;;  %v4408_v36 = vpop.f32.mrb[73].mxu1 }
0x1f7d   :  { %v4409_v32 = vadd.f32 %v4793_v61, %v4408_v36  ;;  %v5433_v44 = vpop.f32.mrb[74].mxu1 }
0x1f7e   :  { %4441 = vst [vmem:[#allocation11 + $0x10] sm:$0xff] %v4417_v41  ;;  %v4420_v38 = vadd.f32 %v5433_v44, %v4793_v61  ;;  %v4411_v63 = vpop.f32.mrb[75].mxu1 }
0x1f7f   :  { %4439 = vst [vmem:[#allocation11] sm:$0xff] %v4409_v32  ;;  %v4412_v10 = vadd.f32 %v4793_v61, %v4411_v63 }
0x1f80   :  { %4442 = vst [vmem:[#allocation11 + $0x18] sm:$0xff] %v4420_v38 }
0x1f81   :  { %4440 = vst [vmem:[#allocation11 + $0x8] sm:$0xff] %v4412_v10 }
0x1f83   :  { %v5436_v39 = vpop.f32.mrb[76].mxu1 }
0x1f84   :  { %v4433_v6 = vadd.f32 %v5436_v39, %v4793_v61  ;;  %v4424_v53 = vpop.f32.mrb[77].mxu1 }
0x1f85   :  { %v4425_v9 = vadd.f32 %v4793_v61, %v4424_v53  ;;  %v5437_v21 = vpop.f32.mrb[78].mxu1 }
0x1f86   :  { %4445 = vst [vmem:[#allocation11 + $0x30] sm:$0xff] %v4433_v6  ;;  %v4436_v54 = vadd.f32 %v5437_v21, %v4793_v61  ;;  %v4427_v30 = vpop.f32.mrb[79].mxu1 }
0x1f87   :  { %4443 = vst [vmem:[#allocation11 + $0x20] sm:$0xff] %v4425_v9  ;;  %v4428_v55 = vadd.f32 %v4793_v61, %v4427_v30 }
0x1f88   :  { %4446 = vst [vmem:[#allocation11 + $0x38] sm:$0xff] %v4436_v54 }
0x1f89   :  { %4444 = vst [vmem:[#allocation11 + $0x28] sm:$0xff] %v4428_v55 }
0x1f8a   :  { %6307 = shalt.err (!%p6304_p2)
}
0x1f8b   :  { %s6308_s4 = scalar_lea.hbm %s8234_s12, 1024 }
0x1f8c   :  { %p6309_p3 = scmp.ne.s32.totalorder %s8234_s12, %s6308_s4  ;;  %p6312_p4 = scmp.lt.u32.totalorder %s6308_s4, %s8234_s12 }
0x1f8e   :  { %p6314_p5 = pnand %p6312_p4, %p6309_p3 }
0x1f90   :  { %6317 = shalt.err (!%p6314_p5)
}
0x1f91   :  { %s6334_s29 = smov 128   ;;  %s6335_s3 = smov 8  }
0x1f92   :  { %4458 = dma.vmem_to_hbm [thread:$0]  %s4453_s21, 1024, %s8234_s12, [#allocation4], %s6334_s29, %s6334_s29, %s6335_s3  }
0x1f93   :  { %6324 = dma.done.wait [#allocation4], 1024  }
0x1f94   :  { %6325 = vsyncadd [#allocation4], 4294966272 }
0x1f95   :  { %4462 = vsyncpa [#allocation3], 1 }
0x1f96   :  { %4463 = vsyncpa [#allocation6], 1 }
0x1f97   :  { %4464 = vsyncpa [#allocation9], 1 }
0x1f98   :  { %4465 = vsyncpa [#allocation4], 1 }

</bundles_post_ra>
